<compile_context>
chip_gen: v6e
topology: v6e:2x2x1
jax: 0.10.0
libtpu: 0.0.40
codegen_flags: <defaults>
</compile_context>

<pallas_src>
import functools

import jax
import jax.numpy as jnp
import numpy as np
from jax import lax
from jax.experimental import pallas as pl
from jax.experimental.pallas import tpu as pltpu

LN_EPS = 1e-5  # nn.LayerNorm default


def _erf(x):
    # Abramowitz & Stegun 7.1.26, max abs error ~1.5e-7 (only one EUP exp).
    ax = jnp.abs(x)
    t = 1.0 / (1.0 + 0.3275911 * ax)
    poly = t * (0.254829592 + t * (-0.284496736 + t * (1.421413741 +
                t * (-1.453152027 + t * 1.061405429))))
    y = 1.0 - poly * jnp.exp(-ax * ax)
    return jnp.where(x >= 0, y, -y)


def _gelu_exact(x):
    # nn.GELU() default: exact erf-based GELU.
    return 0.5 * x * (1.0 + _erf(x * 0.7071067811865476))


def _layernorm(x, w, b):
    # Single-pass statistics (two independent lane reductions), f32 throughout.
    d = x.shape[-1]
    s1 = jnp.sum(x, axis=-1, keepdims=True)
    s2 = jnp.sum(x * x, axis=-1, keepdims=True)
    mu = s1 * (1.0 / d)
    var = jnp.maximum(s2 * (1.0 / d) - mu * mu, 0.0)
    return (x - mu) * lax.rsqrt(var + LN_EPS) * w + b


def _row_chunk(S, H):
    # Smaller row tiles when H is large so the (rows, H) GELU temporaries stay
    # modest (matters under v7x's 64 MiB VMEM).
    max_rows = 128 if H >= 1024 else 256
    for c in (max_rows, 128, 64, 32, 16, 8):
        if c <= S and S % c == 0:
            return c
    return S


def _vmem_capacity_bytes():
    try:
        cap = getattr(pltpu.get_tpu_info(), "vmem_capacity_bytes", None)
        if cap:
            return int(cap)
    except Exception:
        pass
    try:
        if "v7" in jax.devices()[0].device_kind.lower():
            return 64 << 20
    except Exception:
        pass
    return 128 << 20


def _is_v5e():
    try:
        kind = jax.devices()[0].device_kind.lower()
        return ("v5 lite" in kind) or ("v5e" in kind) or ("v5lite" in kind)
    except Exception:
        return False


def _vmem_limit_bytes(S, D, H, rows, x_itemsize):
    dft = 2 * (2 * D * D + 2 * S * S)                       # bf16 DFT matrices (resident)
    layer = 2 * (2 * 2 * D * H) + 2 * 4 * (4 * D + 2 * H)   # W1/W2 bf16 + LN/bias f32, double-buffered
    xio = 2 * 2 * S * D * x_itemsize                        # x / out blocks (double-buffered)
    scratch = 4 * S * D                                     # residual slab (f32)
    temps = 4 * 5 * S * D + 4 * 6 * rows * H                # DFT temps + GELU polynomial temporaries
    est = 2 * (dft + layer + xio + scratch + temps) + (8 << 20)
    cap = int(0.85 * _vmem_capacity_bytes())                # ~109 MiB on v5e/v6e, ~54 MiB on v7x
    return int(min(max(est, 16 << 20), cap))


@functools.lru_cache(maxsize=8)
def _fused_dft(S, D):
    """Cached bf16 fused DFT matrices: [C_D | S_D] (D,2D) and [C_S | -S_S] (S,2S)."""
    def cos_sin(n):
        idx = np.arange(n, dtype=np.float64)
        ang = 2.0 * np.pi * np.outer(idx, idx) / n
        return np.cos(ang), np.sin(ang)
    cd, sd = cos_sin(D)
    cs, ss = cos_sin(S)
    cdsd = jnp.asarray(np.concatenate([cd, sd], axis=1), dtype=jnp.bfloat16)
    csnss = jnp.asarray(np.concatenate([cs, -ss], axis=1), dtype=jnp.bfloat16)
    return cdsd, csnss


def _make_kernel(S, D, H, rows, gelu_bf16):
    n_chunks = S // rows

    def kernel(x_ref, ln1w_ref, ln1b_ref, cdsd_ref, csnss_ref,
               ln2w_ref, ln2b_ref, w1_ref, b1_ref, w2_ref, b2_ref,
               o_ref, xres_ref):
        l = pl.program_id(1)
        n_layers = pl.num_programs(1)

        # Load x into the resident residual slab once per batch element.
        @pl.when(l == 0)
        def _():
            xres_ref[...] = x_ref[...].astype(jnp.float32)

        x_in = xres_ref[...]                                                   # (S, D) f32

        # ---- sublayer 1: PreNorm + FNet Fourier mixing + residual ----
        y = _layernorm(x_in, ln1w_ref[...], ln1b_ref[...]).astype(jnp.bfloat16)
        y2 = jnp.dot(y, cdsd_ref[...],
                     preferred_element_type=jnp.float32).astype(jnp.bfloat16)  # (S, 2D)
        # TODO(synk): on v5e split this into two K=S accumulated matmuls (no concat
        # copy); the fused K=2S form matches the 256-deep MXU on v6e/v7x.
        ycys = jnp.concatenate([y2[:, :D], y2[:, D:]], axis=0)                 # (2S, D)
        f = jnp.dot(csnss_ref[...], ycys, preferred_element_type=jnp.float32)  # (S, D)
        xres_ref[...] = f + x_in                                               # residual (f32)

        # ---- sublayer 2: PreNorm + FeedForward + residual, row-tiled over S ----
        # Hoist all loop-invariant loads/broadcasts out of the row loop.
        ln2w = ln2w_ref[...]
        ln2b = ln2b_ref[...]
        w1 = w1_ref[...]
        b1 = b1_ref[...]
        w2 = w2_ref[...]
        b2 = b2_ref[...]

        def ffn_rows(r0):
            xr = xres_ref[pl.ds(r0, rows), :]                                  # (rows, D) f32
            z = _layernorm(xr, ln2w, ln2b).astype(jnp.bfloat16)
            h = jnp.dot(z, w1, preferred_element_type=jnp.float32) + b1
            if gelu_bf16:
                h = _gelu_exact(h.astype(jnp.bfloat16))                        # bf16 VPU/EUP (v6e/v7x)
            else:
                h = _gelu_exact(h).astype(jnp.bfloat16)                        # f32 path (v5e)
            o = jnp.dot(h, w2, preferred_element_type=jnp.float32) + b2
            xres_ref[pl.ds(r0, rows), :] = o + xr                              # in-place residual

        if n_chunks == 1:
            ffn_rows(0)
        else:
            def body(ci, carry):
                ffn_rows(pl.multiple_of(ci * rows, rows))
                return carry
            lax.fori_loop(0, n_chunks, body, 0, unroll=True)

        # Output block index is constant over the L axis -> write once at the end;
        # HBM writeback happens once per batch element.
        @pl.when(l == n_layers - 1)
        def _():
            o_ref[...] = xres_ref[...].astype(o_ref.dtype)

    return kernel


def fnet_encoder(x, layer_params, attn_mask=None):
    """Equivalent of FNetEncoder.forward: returns (x, attn_mask)."""
    if not layer_params:
        return x, attn_mask
    B, S, D = x.shape
    L = len(layer_params)
    H = layer_params[0]["w1"].shape[1]
    rows = _row_chunk(S, H)
    cdsd, csnss = _fused_dft(S, D)

    stack = lambda k: jnp.stack([p[k] for p in layer_params], axis=0)
    ln1w, ln1b = stack("ln1_w"), stack("ln1_b")            # (L, 1, D)
    ln2w, ln2b = stack("ln2_w"), stack("ln2_b")            # (L, 1, D)
    w1 = stack("w1").astype(jnp.bfloat16)                  # (L, D, H)
    w2 = stack("w2").astype(jnp.bfloat16)                  # (L, H, D)
    b1, b2 = stack("b1"), stack("b2")                      # (L, 1, H) / (L, 1, D)

    kernel = _make_kernel(S, D, H, rows, gelu_bf16=not _is_v5e())

    x_spec = pl.BlockSpec((None, S, D), lambda b, l: (b, 0, 0))
    per_layer = lambda shape: pl.BlockSpec((None,) + shape, lambda b, l: (l, 0, 0))
    resident = pl.BlockSpec(memory_space=pltpu.MemorySpace.VMEM)  # layer-invariant DFT matrices

    # TODO(synk): when B is 1 (or odd) on v7x (2 TCs), split the second-DFT/FFN rows over
    # an extra parallel grid axis so both TensorCores stay busy.
    # TODO(synk): csnss is 2*S^2 bf16 — tile its rows or switch to a radix FFT
    # factorization before scaling S past ~2k on v7x.
    out = pl.pallas_call(
        kernel,
        out_shape=jax.ShapeDtypeStruct((B, S, D), x.dtype),
        grid=(B, L),
        in_specs=[
            x_spec,
            per_layer((1, D)), per_layer((1, D)),          # ln1 w / b
            resident, resident,                            # cdsd, csnss
            per_layer((1, D)), per_layer((1, D)),          # ln2 w / b
            per_layer((D, H)), per_layer((1, H)),          # w1, b1
            per_layer((H, D)), per_layer((1, D)),          # w2, b2
        ],
        out_specs=x_spec,
        scratch_shapes=[pltpu.VMEM((S, D), jnp.float32)],  # residual slab, resident across L
        compiler_params=pltpu.CompilerParams(
            dimension_semantics=("parallel", "arbitrary"),
            vmem_limit_bytes=_vmem_limit_bytes(S, D, H, rows, x.dtype.itemsize),
        ),
    )(x, ln1w, ln1b, cdsd, csnss, ln2w, ln2b, w1, b1, w2, b2)
    return out, attn_mask


def init_params(key, dim, mlp_dim, depth, dtype=jnp.float32):
    layers = []
    for _ in range(2 * depth):  # FNetEncoder builds 2*depth (PreNorm-FNet, PreNorm-FF) pairs
        key, *ks = jax.random.split(key, 9)
        lim1 = 1.0 / np.sqrt(dim)
        lim2 = 1.0 / np.sqrt(mlp_dim)
        layers.append({
            "ln1_w": 1.0 + 0.02 * jax.random.normal(ks[0], (1, dim), dtype),
            "ln1_b": 0.02 * jax.random.normal(ks[1], (1, dim), dtype),
            "ln2_w": 1.0 + 0.02 * jax.random.normal(ks[2], (1, dim), dtype),
            "ln2_b": 0.02 * jax.random.normal(ks[3], (1, dim), dtype),
            "w1": jax.random.uniform(ks[4], (dim, mlp_dim), dtype, -lim1, lim1),
            "b1": jax.random.uniform(ks[5], (1, mlp_dim), dtype, -lim1, lim1),
            "w2": jax.random.uniform(ks[6], (mlp_dim, dim), dtype, -lim2, lim2),
            "b2": jax.random.uniform(ks[7], (1, dim), dtype, -lim2, lim2),
        })
    return layers


def reference_fnet_encoder(x, layer_params):
    # Pure-JAX reference matching the PyTorch forward (dropout is identity in eval).
    def ln(v, w, b):
        mu = jnp.mean(v, axis=-1, keepdims=True)
        var = jnp.mean((v - mu) ** 2, axis=-1, keepdims=True)
        return (v - mu) / jnp.sqrt(var + LN_EPS) * w + b

    with jax.default_matmul_precision("highest"):
        for p in layer_params:
            y = ln(x, p["ln1_w"][0], p["ln1_b"][0])
            f = jnp.real(jnp.fft.fft(jnp.fft.fft(y, axis=-1), axis=-2))
            x = f + x
            z = ln(x, p["ln2_w"][0], p["ln2_b"][0])
            h = jax.nn.gelu(z @ p["w1"] + p["b1"][0], approximate=False)
            x = (h @ p["w2"] + p["b2"][0]) + x
    return x


if __name__ == "__main__":
    # Small but lane-dense demo shapes: batch=2, seq=128, dim=128, mlp_dim=256, depth=1.
    B, S, D, MLP, DEPTH = 2, 128, 128, 256, 1
    key = jax.random.PRNGKey(0)
    kx, kp = jax.random.split(key)
    x = jax.random.normal(kx, (B, S, D), jnp.float32)
    params = init_params(kp, D, MLP, DEPTH)

    out, mask = fnet_encoder(x, params, attn_mask=None)
    out = jax.block_until_ready(out)

    ref = reference_fnet_encoder(x, params)
    # bf16 MXU operands -> compare at a tolerance relative to the output scale
    # (per-element atol is meaningless for bf16 DFT sums with cancellation).
    scale = float(jnp.max(jnp.abs(ref)))
    err = float(jnp.max(jnp.abs(out.astype(jnp.float32) - ref))) / scale
    assert err < 2e-2, f"scaled max error too large: {err:.4e}"
    assert mask is None
    print("KERNEL_OK")
</pallas_src>

<mosaic_0001>
module attributes {stable_mosaic.version = 11 : i64} {
  func.func @kernel(%arg0: i32, %arg1: i32, %arg2: memref<1x128x128xf32, #tpu.memory_space<vmem>>, %arg3: memref<1x1x128xf32, #tpu.memory_space<vmem>>, %arg4: memref<1x1x128xf32, #tpu.memory_space<vmem>>, %arg5: memref<128x256xbf16, #tpu.memory_space<vmem>>, %arg6: memref<128x256xbf16, #tpu.memory_space<vmem>>, %arg7: memref<1x1x128xf32, #tpu.memory_space<vmem>>, %arg8: memref<1x1x128xf32, #tpu.memory_space<vmem>>, %arg9: memref<1x128x256xbf16, #tpu.memory_space<vmem>>, %arg10: memref<1x1x256xf32, #tpu.memory_space<vmem>>, %arg11: memref<1x256x128xbf16, #tpu.memory_space<vmem>>, %arg12: memref<1x1x128xf32, #tpu.memory_space<vmem>>, %arg13: memref<1x128x128xf32, #tpu.memory_space<vmem>>, %arg14: memref<128x128xf32, #tpu.memory_space<vmem>>) attributes {dimension_semantics = [#tpu.dimension_semantics<parallel>, #tpu.dimension_semantics<arbitrary>], iteration_bounds = array<i64: 2, 2>, scalar_prefetch = 0 : i64, scratch_operands = 1 : i64, tpu.core_type = #tpu.core_type<tc>, window_params = [{transform_indices = @transform_0, window_bounds = array<i64: 1, 128, 128>}, {transform_indices = @transform_1, window_bounds = array<i64: 1, 1, 128>}, {transform_indices = @transform_2, window_bounds = array<i64: 1, 1, 128>}, {pipeline_mode = #tpu.pipeline_mode<synchronous>, transform_indices = @transform_3, window_bounds = array<i64: 128, 256>}, {pipeline_mode = #tpu.pipeline_mode<synchronous>, transform_indices = @transform_4, window_bounds = array<i64: 128, 256>}, {transform_indices = @transform_5, window_bounds = array<i64: 1, 1, 128>}, {transform_indices = @transform_6, window_bounds = array<i64: 1, 1, 128>}, {transform_indices = @transform_7, window_bounds = array<i64: 1, 128, 256>}, {transform_indices = @transform_8, window_bounds = array<i64: 1, 1, 256>}, {transform_indices = @transform_9, window_bounds = array<i64: 1, 256, 128>}, {transform_indices = @transform_10, window_bounds = array<i64: 1, 1, 128>}, {transform_indices = @transform_11, window_bounds = array<i64: 1, 128, 128>}]} {
    %c0_i32 = arith.constant 0 : i32
    %0 = arith.cmpi eq, %arg1, %c0_i32 : i32
    %1 = arith.extui %0 : i1 to i32
    %c0_i32_0 = arith.constant 0 : i32
    %2 = arith.cmpi ne, %1, %c0_i32_0 : i32
    scf.if %2 {
      %c0_67 = arith.constant 0 : index
      %c0_68 = arith.constant 0 : index
      %c0_69 = arith.constant 0 : index
      %133 = vector.load %arg2[%c0_67, %c0_68, %c0_69] : memref<1x128x128xf32, #tpu.memory_space<vmem>>, vector<1x128x128xf32>
      %134 = vector.shape_cast %133 : vector<1x128x128xf32> to vector<128x128xf32>
      %c0_70 = arith.constant 0 : index
      %c0_71 = arith.constant 0 : index
      %135 = vector.load %arg14[%c0_70, %c0_71] : memref<128x128xf32, #tpu.memory_space<vmem>>, vector<128x128xf32>
      tpu.vector_store %arg14[%c0_70, %c0_71], %134 {strides = array<i32>} : memref<128x128xf32, #tpu.memory_space<vmem>>, vector<128x128xf32>,
    } else {
    }
    %c0 = arith.constant 0 : index
    %c0_1 = arith.constant 0 : index
    %3 = vector.load %arg14[%c0, %c0_1] : memref<128x128xf32, #tpu.memory_space<vmem>>, vector<128x128xf32>
    %c0_2 = arith.constant 0 : index
    %c0_3 = arith.constant 0 : index
    %c0_4 = arith.constant 0 : index
    %4 = vector.load %arg3[%c0_2, %c0_3, %c0_4] : memref<1x1x128xf32, #tpu.memory_space<vmem>>, vector<1x1x128xf32>
    %5 = vector.shape_cast %4 : vector<1x1x128xf32> to vector<1x128xf32>
    %c0_5 = arith.constant 0 : index
    %c0_6 = arith.constant 0 : index
    %c0_7 = arith.constant 0 : index
    %6 = vector.load %arg4[%c0_5, %c0_6, %c0_7] : memref<1x1x128xf32, #tpu.memory_space<vmem>>, vector<1x1x128xf32>
    %7 = vector.shape_cast %6 : vector<1x1x128xf32> to vector<1x128xf32>
    %cst = arith.constant dense<0.000000e+00> : vector<128xf32>
    %8 = vector.multi_reduction <add>, %3, %cst [1] : vector<128x128xf32> to vector<128xf32>
    %9 = vector.shape_cast %8 : vector<128xf32> to vector<128x1xf32>
    %10 = arith.mulf %3, %3 : vector<128x128xf32>
    %cst_8 = arith.constant dense<0.000000e+00> : vector<128xf32>
    %11 = vector.multi_reduction <add>, %10, %cst_8 [1] : vector<128x128xf32> to vector<128xf32>
    %12 = vector.shape_cast %11 : vector<128xf32> to vector<128x1xf32>
    %cst_9 = arith.constant 7.812500e-03 : f32
    %13 = vector.broadcast %cst_9 : f32 to vector<128x1xf32>
    %14 = arith.mulf %9, %13 : vector<128x1xf32>
    %cst_10 = arith.constant 7.812500e-03 : f32
    %15 = vector.broadcast %cst_10 : f32 to vector<128x1xf32>
    %16 = arith.mulf %12, %15 : vector<128x1xf32>
    %17 = arith.mulf %14, %14 : vector<128x1xf32>
    %18 = arith.subf %16, %17 : vector<128x1xf32>
    %cst_11 = arith.constant 0.000000e+00 : f32
    %19 = vector.broadcast %cst_11 : f32 to vector<128x1xf32>
    %20 = arith.maximumf %18, %19 : vector<128x1xf32>
    %21 = vector.broadcast %14 : vector<128x1xf32> to vector<128x128xf32>
    %22 = arith.subf %3, %21 : vector<128x128xf32>
    %cst_12 = arith.constant 9.99999974E-6 : f32
    %23 = vector.broadcast %cst_12 : f32 to vector<128x1xf32>
    %24 = arith.addf %20, %23 : vector<128x1xf32>
    %25 = math.rsqrt %24 : vector<128x1xf32>
    %26 = vector.broadcast %25 : vector<128x1xf32> to vector<128x128xf32>
    %27 = arith.mulf %22, %26 : vector<128x128xf32>
    %28 = vector.broadcast %5 : vector<1x128xf32> to vector<128x128xf32>
    %29 = arith.mulf %27, %28 : vector<128x128xf32>
    %30 = vector.broadcast %7 : vector<1x128xf32> to vector<128x128xf32>
    %31 = arith.addf %29, %30 : vector<128x128xf32>
    %32 = arith.truncf %31 : vector<128x128xf32> to vector<128x128xbf16>
    %c0_13 = arith.constant 0 : index
    %c0_14 = arith.constant 0 : index
    %33 = vector.load %arg5[%c0_13, %c0_14] : memref<128x256xbf16, #tpu.memory_space<vmem>>, vector<128x256xbf16>
    %cst_15 = arith.constant dense<0.000000e+00> : vector<128x256xf32>
    %34 = tpu.matmul %32, %33, %cst_15 {dimension_numbers = #tpu.dot_dimension_numbers<[1], [0], [0], [1], [0, 0, 1, 1], [], []>} : vector<128x128xbf16>, vector<128x256xbf16>, vector<128x256xf32> -> vector<128x256xf32>
    %35 = arith.truncf %34 : vector<128x256xf32> to vector<128x256xbf16>
    %36 = vector.extract_strided_slice %35 {offsets = [0, 0], sizes = [128, 128], strides = [1, 1]} : vector<128x256xbf16> to vector<128x128xbf16>
    %37 = vector.extract_strided_slice %35 {offsets = [0, 128], sizes = [128, 128], strides = [1, 1]} : vector<128x256xbf16> to vector<128x128xbf16>
    %38 = tpu.concatenate %36, %37 in 0 : vector<128x128xbf16>, vector<128x128xbf16> -> vector<256x128xbf16>
    %c0_16 = arith.constant 0 : index
    %c0_17 = arith.constant 0 : index
    %39 = vector.load %arg6[%c0_16, %c0_17] : memref<128x256xbf16, #tpu.memory_space<vmem>>, vector<128x256xbf16>
    %cst_18 = arith.constant dense<0.000000e+00> : vector<128x128xf32>
    %40 = tpu.matmul %39, %38, %cst_18 {dimension_numbers = #tpu.dot_dimension_numbers<[1], [0], [0], [1], [0, 0, 1, 1], [], []>} : vector<128x256xbf16>, vector<256x128xbf16>, vector<128x128xf32> -> vector<128x128xf32>
    %41 = arith.addf %40, %3 : vector<128x128xf32>
    %c0_19 = arith.constant 0 : index
    %c0_20 = arith.constant 0 : index
    %42 = vector.load %arg14[%c0_19, %c0_20] : memref<128x128xf32, #tpu.memory_space<vmem>>, vector<128x128xf32>
    tpu.vector_store %arg14[%c0_19, %c0_20], %41 {strides = array<i32>} : memref<128x128xf32, #tpu.memory_space<vmem>>, vector<128x128xf32>,
    %c0_21 = arith.constant 0 : index
    %c0_22 = arith.constant 0 : index
    %c0_23 = arith.constant 0 : index
    %43 = vector.load %arg7[%c0_21, %c0_22, %c0_23] : memref<1x1x128xf32, #tpu.memory_space<vmem>>, vector<1x1x128xf32>
    %44 = vector.shape_cast %43 : vector<1x1x128xf32> to vector<1x128xf32>
    %c0_24 = arith.constant 0 : index
    %c0_25 = arith.constant 0 : index
    %c0_26 = arith.constant 0 : index
    %45 = vector.load %arg8[%c0_24, %c0_25, %c0_26] : memref<1x1x128xf32, #tpu.memory_space<vmem>>, vector<1x1x128xf32>
    %46 = vector.shape_cast %45 : vector<1x1x128xf32> to vector<1x128xf32>
    %c0_27 = arith.constant 0 : index
    %c0_28 = arith.constant 0 : index
    %c0_29 = arith.constant 0 : index
    %47 = vector.load %arg9[%c0_27, %c0_28, %c0_29] : memref<1x128x256xbf16, #tpu.memory_space<vmem>>, vector<1x128x256xbf16>
    %48 = vector.shape_cast %47 : vector<1x128x256xbf16> to vector<128x256xbf16>
    %c0_30 = arith.constant 0 : index
    %c0_31 = arith.constant 0 : index
    %c0_32 = arith.constant 0 : index
    %49 = vector.load %arg10[%c0_30, %c0_31, %c0_32] : memref<1x1x256xf32, #tpu.memory_space<vmem>>, vector<1x1x256xf32>
    %50 = vector.shape_cast %49 : vector<1x1x256xf32> to vector<1x256xf32>
    %c0_33 = arith.constant 0 : index
    %c0_34 = arith.constant 0 : index
    %c0_35 = arith.constant 0 : index
    %51 = vector.load %arg11[%c0_33, %c0_34, %c0_35] : memref<1x256x128xbf16, #tpu.memory_space<vmem>>, vector<1x256x128xbf16>
    %52 = vector.shape_cast %51 : vector<1x256x128xbf16> to vector<256x128xbf16>
    %c0_36 = arith.constant 0 : index
    %c0_37 = arith.constant 0 : index
    %c0_38 = arith.constant 0 : index
    %53 = vector.load %arg12[%c0_36, %c0_37, %c0_38] : memref<1x1x128xf32, #tpu.memory_space<vmem>>, vector<1x1x128xf32>
    %54 = vector.shape_cast %53 : vector<1x1x128xf32> to vector<1x128xf32>
    %c0_39 = arith.constant 0 : index
    %c0_40 = arith.constant 0 : index
    %55 = vector.load %arg14[%c0_39, %c0_40] : memref<128x128xf32, #tpu.memory_space<vmem>>, vector<128x128xf32>
    %cst_41 = arith.constant dense<0.000000e+00> : vector<128xf32>
    %56 = vector.multi_reduction <add>, %55, %cst_41 [1] : vector<128x128xf32> to vector<128xf32>
    %57 = vector.shape_cast %56 : vector<128xf32> to vector<128x1xf32>
    %58 = arith.mulf %55, %55 : vector<128x128xf32>
    %cst_42 = arith.constant dense<0.000000e+00> : vector<128xf32>
    %59 = vector.multi_reduction <add>, %58, %cst_42 [1] : vector<128x128xf32> to vector<128xf32>
    %60 = vector.shape_cast %59 : vector<128xf32> to vector<128x1xf32>
    %cst_43 = arith.constant 7.812500e-03 : f32
    %61 = vector.broadcast %cst_43 : f32 to vector<128x1xf32>
    %62 = arith.mulf %57, %61 : vector<128x1xf32>
    %cst_44 = arith.constant 7.812500e-03 : f32
    %63 = vector.broadcast %cst_44 : f32 to vector<128x1xf32>
    %64 = arith.mulf %60, %63 : vector<128x1xf32>
    %65 = arith.mulf %62, %62 : vector<128x1xf32>
    %66 = arith.subf %64, %65 : vector<128x1xf32>
    %cst_45 = arith.constant 0.000000e+00 : f32
    %67 = vector.broadcast %cst_45 : f32 to vector<128x1xf32>
    %68 = arith.maximumf %66, %67 : vector<128x1xf32>
    %69 = vector.broadcast %62 : vector<128x1xf32> to vector<128x128xf32>
    %70 = arith.subf %55, %69 : vector<128x128xf32>
    %cst_46 = arith.constant 9.99999974E-6 : f32
    %71 = vector.broadcast %cst_46 : f32 to vector<128x1xf32>
    %72 = arith.addf %68, %71 : vector<128x1xf32>
    %73 = math.rsqrt %72 : vector<128x1xf32>
    %74 = vector.broadcast %73 : vector<128x1xf32> to vector<128x128xf32>
    %75 = arith.mulf %70, %74 : vector<128x128xf32>
    %76 = vector.broadcast %44 : vector<1x128xf32> to vector<128x128xf32>
    %77 = arith.mulf %75, %76 : vector<128x128xf32>
    %78 = vector.broadcast %46 : vector<1x128xf32> to vector<128x128xf32>
    %79 = arith.addf %77, %78 : vector<128x128xf32>
    %80 = arith.truncf %79 : vector<128x128xf32> to vector<128x128xbf16>
    %cst_47 = arith.constant dense<0.000000e+00> : vector<128x256xf32>
    %81 = tpu.matmul %80, %48, %cst_47 {dimension_numbers = #tpu.dot_dimension_numbers<[1], [0], [0], [1], [0, 0, 1, 1], [], []>} : vector<128x128xbf16>, vector<128x256xbf16>, vector<128x256xf32> -> vector<128x256xf32>
    %82 = vector.broadcast %50 : vector<1x256xf32> to vector<128x256xf32>
    %83 = arith.addf %81, %82 : vector<128x256xf32>
    %84 = arith.truncf %83 : vector<128x256xf32> to vector<128x256xbf16>
    %cst_48 = arith.constant 5.000000e-01 : bf16
    %85 = vector.broadcast %cst_48 : bf16 to vector<128x256xbf16>
    %86 = arith.mulf %85, %84 : vector<128x256xbf16>
    %cst_49 = arith.constant 7.070310e-01 : bf16
    %87 = vector.broadcast %cst_49 : bf16 to vector<128x256xbf16>
    %88 = arith.mulf %84, %87 : vector<128x256xbf16>
    %89 = math.absf %88 : vector<128x256xbf16>
    %cst_50 = arith.constant 3.281250e-01 : bf16
    %90 = vector.broadcast %cst_50 : bf16 to vector<128x256xbf16>
    %91 = arith.mulf %90, %89 : vector<128x256xbf16>
    %cst_51 = arith.constant 1.000000e+00 : bf16
    %92 = vector.broadcast %cst_51 : bf16 to vector<128x256xbf16>
    %93 = arith.addf %92, %91 : vector<128x256xbf16>
    %cst_52 = arith.constant 1.000000e+00 : bf16
    %94 = vector.broadcast %cst_52 : bf16 to vector<128x256xbf16>
    %95 = arith.divf %94, %93 : vector<128x256xbf16>
    %cst_53 = arith.constant 1.062500e+00 : bf16
    %96 = vector.broadcast %cst_53 : bf16 to vector<128x256xbf16>
    %97 = arith.mulf %95, %96 : vector<128x256xbf16>
    %cst_54 = arith.constant -1.453130e+00 : bf16
    %98 = vector.broadcast %cst_54 : bf16 to vector<128x256xbf16>
    %99 = arith.addf %98, %97 : vector<128x256xbf16>
    %100 = arith.mulf %95, %99 : vector<128x256xbf16>
    %cst_55 = arith.constant 1.421880e+00 : bf16
    %101 = vector.broadcast %cst_55 : bf16 to vector<128x256xbf16>
    %102 = arith.addf %101, %100 : vector<128x256xbf16>
    %103 = arith.mulf %95, %102 : vector<128x256xbf16>
    %cst_56 = arith.constant -2.851560e-01 : bf16
    %104 = vector.broadcast %cst_56 : bf16 to vector<128x256xbf16>
    %105 = arith.addf %104, %103 : vector<128x256xbf16>
    %106 = arith.mulf %95, %105 : vector<128x256xbf16>
    %cst_57 = arith.constant 2.539060e-01 : bf16
    %107 = vector.broadcast %cst_57 : bf16 to vector<128x256xbf16>
    %108 = arith.addf %107, %106 : vector<128x256xbf16>
    %109 = arith.mulf %95, %108 : vector<128x256xbf16>
    %cst_58 = arith.constant 0.000000e+00 : bf16
    %110 = vector.broadcast %cst_58 : bf16 to vector<128x256xbf16>
    %111 = arith.subf %110, %89 : vector<128x256xbf16>
    %112 = arith.mulf %111, %89 : vector<128x256xbf16>
    %113 = math.exp %112 : vector<128x256xbf16>
    %114 = arith.mulf %109, %113 : vector<128x256xbf16>
    %cst_59 = arith.constant 1.000000e+00 : bf16
    %115 = vector.broadcast %cst_59 : bf16 to vector<128x256xbf16>
    %116 = arith.subf %115, %114 : vector<128x256xbf16>
    %cst_60 = arith.constant 0.000000e+00 : bf16
    %117 = vector.broadcast %cst_60 : bf16 to vector<128x256xbf16>
    %118 = arith.cmpf oge, %88, %117 : vector<128x256xbf16>
    %cst_61 = arith.constant 0.000000e+00 : bf16
    %119 = vector.broadcast %cst_61 : bf16 to vector<128x256xbf16>
    %120 = arith.subf %119, %116 : vector<128x256xbf16>
    %121 = arith.select %118, %116, %120 : vector<128x256xi1>, vector<128x256xbf16>
    %cst_62 = arith.constant 1.000000e+00 : bf16
    %122 = vector.broadcast %cst_62 : bf16 to vector<128x256xbf16>
    %123 = arith.addf %122, %121 : vector<128x256xbf16>
    %124 = arith.mulf %86, %123 : vector<128x256xbf16>
    %cst_63 = arith.constant dense<0.000000e+00> : vector<128x128xf32>
    %125 = tpu.matmul %124, %52, %cst_63 {dimension_numbers = #tpu.dot_dimension_numbers<[1], [0], [0], [1], [0, 0, 1, 1], [], []>} : vector<128x256xbf16>, vector<256x128xbf16>, vector<128x128xf32> -> vector<128x128xf32>
    %126 = vector.broadcast %54 : vector<1x128xf32> to vector<128x128xf32>
    %127 = arith.addf %125, %126 : vector<128x128xf32>
    %128 = arith.addf %127, %55 : vector<128x128xf32>
    %c0_64 = arith.constant 0 : index
    %c0_65 = arith.constant 0 : index
    %129 = vector.load %arg14[%c0_64, %c0_65] : memref<128x128xf32, #tpu.memory_space<vmem>>, vector<128x128xf32>
    tpu.vector_store %arg14[%c0_64, %c0_65], %128 {strides = array<i32>} : memref<128x128xf32, #tpu.memory_space<vmem>>, vector<128x128xf32>,
    %c1_i32 = arith.constant 1 : i32
    %130 = arith.cmpi eq, %arg1, %c1_i32 : i32
    %131 = arith.extui %130 : i1 to i32
    %c0_i32_66 = arith.constant 0 : i32
    %132 = arith.cmpi ne, %131, %c0_i32_66 : i32
    scf.if %132 {
      %c0_67 = arith.constant 0 : index
      %c0_68 = arith.constant 0 : index
      %133 = vector.load %arg14[%c0_67, %c0_68] : memref<128x128xf32, #tpu.memory_space<vmem>>, vector<128x128xf32>
      %c0_69 = arith.constant 0 : index
      %c0_70 = arith.constant 0 : index
      %c0_71 = arith.constant 0 : index
      %134 = vector.load %arg13[%c0_69, %c0_70, %c0_71] : memref<1x128x128xf32, #tpu.memory_space<vmem>>, vector<1x128x128xf32>
      %135 = vector.shape_cast %134 : vector<1x128x128xf32> to vector<128x128xf32>
      %136 = vector.shape_cast %133 : vector<128x128xf32> to vector<1x128x128xf32>
      tpu.vector_store %arg13[%c0_69, %c0_70, %c0_71], %136 {strides = array<i32>} : memref<1x128x128xf32, #tpu.memory_space<vmem>>, vector<1x128x128xf32>,
    } else {
    }
    return
  }
  func.func @transform_0(%arg0: i32, %arg1: i32) -> (i32, i32, i32) {
    %c0_i32 = arith.constant 0 : i32
    %c0_i32_0 = arith.constant 0 : i32
    %c0_i32_1 = arith.constant 0 : i32
    return %arg0, %c0_i32, %c0_i32_0 : i32, i32, i32
  }
  func.func @transform_1(%arg0: i32, %arg1: i32) -> (i32, i32, i32) {
    %c0_i32 = arith.constant 0 : i32
    %c0_i32_0 = arith.constant 0 : i32
    %c0_i32_1 = arith.constant 0 : i32
    return %arg1, %c0_i32, %c0_i32_0 : i32, i32, i32
  }
  func.func @transform_2(%arg0: i32, %arg1: i32) -> (i32, i32, i32) {
    %c0_i32 = arith.constant 0 : i32
    %c0_i32_0 = arith.constant 0 : i32
    %c0_i32_1 = arith.constant 0 : i32
    return %arg1, %c0_i32, %c0_i32_0 : i32, i32, i32
  }
  func.func @transform_3(%arg0: i32, %arg1: i32) -> (i32, i32) {
    %c0_i32 = arith.constant 0 : i32
    %c0_i32_0 = arith.constant 0 : i32
    %c0_i32_1 = arith.constant 0 : i32
    return %c0_i32, %c0_i32_0 : i32, i32
  }
  func.func @transform_4(%arg0: i32, %arg1: i32) -> (i32, i32) {
    %c0_i32 = arith.constant 0 : i32
    %c0_i32_0 = arith.constant 0 : i32
    %c0_i32_1 = arith.constant 0 : i32
    return %c0_i32, %c0_i32_0 : i32, i32
  }
  func.func @transform_5(%arg0: i32, %arg1: i32) -> (i32, i32, i32) {
    %c0_i32 = arith.constant 0 : i32
    %c0_i32_0 = arith.constant 0 : i32
    %c0_i32_1 = arith.constant 0 : i32
    return %arg1, %c0_i32, %c0_i32_0 : i32, i32, i32
  }
  func.func @transform_6(%arg0: i32, %arg1: i32) -> (i32, i32, i32) {
    %c0_i32 = arith.constant 0 : i32
    %c0_i32_0 = arith.constant 0 : i32
    %c0_i32_1 = arith.constant 0 : i32
    return %arg1, %c0_i32, %c0_i32_0 : i32, i32, i32
  }
  func.func @transform_7(%arg0: i32, %arg1: i32) -> (i32, i32, i32) {
    %c0_i32 = arith.constant 0 : i32
    %c0_i32_0 = arith.constant 0 : i32
    %c0_i32_1 = arith.constant 0 : i32
    return %arg1, %c0_i32, %c0_i32_0 : i32, i32, i32
  }
  func.func @transform_8(%arg0: i32, %arg1: i32) -> (i32, i32, i32) {
    %c0_i32 = arith.constant 0 : i32
    %c0_i32_0 = arith.constant 0 : i32
    %c0_i32_1 = arith.constant 0 : i32
    return %arg1, %c0_i32, %c0_i32_0 : i32, i32, i32
  }
  func.func @transform_9(%arg0: i32, %arg1: i32) -> (i32, i32, i32) {
    %c0_i32 = arith.constant 0 : i32
    %c0_i32_0 = arith.constant 0 : i32
    %c0_i32_1 = arith.constant 0 : i32
    return %arg1, %c0_i32, %c0_i32_0 : i32, i32, i32
  }
  func.func @transform_10(%arg0: i32, %arg1: i32) -> (i32, i32, i32) {
    %c0_i32 = arith.constant 0 : i32
    %c0_i32_0 = arith.constant 0 : i32
    %c0_i32_1 = arith.constant 0 : i32
    return %arg1, %c0_i32, %c0_i32_0 : i32, i32, i32
  }
  func.func @transform_11(%arg0: i32, %arg1: i32) -> (i32, i32, i32) {
    %c0_i32 = arith.constant 0 : i32
    %c0_i32_0 = arith.constant 0 : i32
    %c0_i32_1 = arith.constant 0 : i32
    return %arg0, %c0_i32, %c0_i32_0 : i32, i32, i32
  }
}

</mosaic_0001>

<bundles_post_ra>
// kernel: tpu_custom_call.1
= control target key start
LH: loop header
LB: loop body
LE: loop exit
PB: predicated region body
PF: predicated region fallthrough
CT: control target
= control target key end

     0   :  { %s5227_s0 = inlined_call_operand.hbm [shape: f32[2,128,128], index: 0, kind: input, shape index: {}]   ;;  %s5228_s1 = inlined_call_operand.hbm [shape: f32[2,1,128], index: 1, kind: input, shape index: {}]   ;;  %s5229_s2 = inlined_call_operand.vmem [shape: f32[2,1,128], index: 2, kind: input, shape index: {}]   ;;  %s5230_s3 = inlined_call_operand.hbm [shape: bf16[128,256], index: 3, kind: input, shape index: {}]   ;;  %s5231_s4 = inlined_call_operand.hbm [shape: bf16[128,256], index: 4, kind: input, shape index: {}]   ;;  %s5232_s5 = inlined_call_operand.vmem [shape: f32[2,1,128], index: 5, kind: input, shape index: {}]   ;;  %s5233_s6 = inlined_call_operand.vmem [shape: f32[2,1,128], index: 6, kind: input, shape index: {}]   ;;  %s5234_s7 = inlined_call_operand.hbm [shape: bf16[2,128,256], index: 7, kind: input, shape index: {}]   ;;  %s5235_s8 = inlined_call_operand.vmem [shape: f32[2,1,256], index: 8, kind: input, shape index: {}]   ;;  %s5236_s9 = inlined_call_operand.hbm [shape: bf16[2,256,128], index: 9, kind: input, shape index: {}]   ;;  %s5237_s10 = inlined_call_operand.vmem [shape: f32[2,1,128], index: 10, kind: input, shape index: {}]   ;;  %s5238_s11 = inlined_call_operand.hbm [shape: f32[2,128,128], index: 11, kind: output, shape index: {}]  }
   0x1   :  { %5295 = sst [smem:[#allocation49_spill]] %s5227_s0 }
   0x2   :  { %5296 = sst [smem:[#allocation50_spill]] %s5228_s1 }
   0x3   :  { %5297 = sst [smem:[#allocation51_spill]] %s5229_s2 }
   0x4   :  { %5298 = sst [smem:[#allocation52_spill]] %s5230_s3 }
   0x5   :  { %5299 = sst [smem:[#allocation53_spill]] %s5231_s4 }
   0x6   :  { %5300 = sst [smem:[#allocation54_spill]] %s5232_s5 }
   0x7   :  { %5301 = sst [smem:[#allocation55_spill]] %s5233_s6 }
   0x8   :  { %5302 = sst [smem:[#allocation56_spill]] %s5234_s7 }
   0x9   :  { %5303 = sst [smem:[#allocation57_spill]] %s5235_s8 }
   0xa   :  { %5304 = sst [smem:[#allocation58_spill]] %s5236_s9 }
   0xb   :  { %5305 = sst [smem:[#allocation59_spill]] %s5237_s10 }
   0xc   :  { %5306 = sst [smem:[#allocation60_spill]] %s5238_s11 }
   0xd   :  { %16 = vsyncpa [#allocation4], 0 }
   0xe   :  { %18 = vsyncpa [#allocation4 + $0x1], 0 }
   0xf   :  { %19 = vsyncpa [#allocation7], 0 }
  0x10   :  { %21 = vsyncpa [#allocation7 + $0x1], 0 }
  0x11   :  { %22 = vsyncpa [#allocation10], 0 }
  0x12   :  { %23 = vsyncpa [#allocation5], 0 }
  0x13   :  { %25 = vsyncpa [#allocation5 + $0x1], 0  ;;  %s3886_s17 = smov 0   ;;  %s3888_s18 = smov 0  }
  0x14   :  { %s3890_s19 = smov 0   ;;  %s3892_s20 = smov 0  }
  0x15   :  { %s3894_s21 = smov 0   ;;  %s3896_s22 = smov 0  }
  0x16   :  { %s3898_s23 = smov 0   ;;  %s3900_s24 = smov 0  }
  0x17   :  { %s3902_s25 = smov 0   ;;  %s3904_s26 = smov 0  }
  0x18   :  { %s3906_s27 = smov 0  }
  0x19 LB: > { %5307 = sst [smem:[#allocation21_spill]] %s3774_s18  ;;  %s3942_s28 = sadd.s32 4294967295, %s3810_s27   ;;  %s3810_s27 = sphi %s3906_s27, %s31_s27   ;;  %s3806_s26 = sphi %s3904_s26, %s5452_s26   ;;  %s3802_s25 = sphi %s3902_s25, %s5451_s25   ;;  %s3798_s24 = sphi %s3900_s24, %s5458_s24   ;;  %s3794_s23 = sphi %s3898_s23, %s5449_s23   ;;  %s3790_s22 = sphi %s3896_s22, %s5448_s22   ;;  %s3786_s21 = sphi %s3894_s21, %s5457_s21   ;;  %s3782_s20 = sphi %s3892_s20, %s5456_s20   ;;  %s3778_s19 = sphi %s3890_s19, %s5455_s19   ;;  %s3774_s18 = sphi %s3888_s18, %s5454_s18   ;;  %s3770_s17 = sphi %s3886_s17, %s5453_s17  }
  0x1a   : > { %5308 = sst [smem:[#allocation22_spill]] %s3782_s20  ;;  %s2906_s29 = sadd.s32 4294967294, %s3810_s27  }
  0x1b   : > { %5309 = sst [smem:[#allocation23_spill]] %s3790_s22  ;;  %p63_p0 = scmp.ne.s32.totalorder %s3786_s21, %s3782_s20 }
  0x1c   : > { %5310 = sst [smem:[#allocation24_spill]] %s3794_s23  ;;  %p5249_p1 = scmp.eq.s32.totalorder %s3942_s28, 0 }
  0x1d   : > { %5311 = sst [smem:[#allocation25_spill]] %s3798_s24  ;;  %p343_p3 = scmp.eq.s32.totalorder %s2906_s29, 3 }
  0x1e   : > { %5312 = sst [smem:[#allocation26_spill]] %s3802_s25  ;;  %p3951_p4 = por %p5249_p1, %p63_p0 }
  0x1f   : > { %5313 = sst [smem:[#allocation27_spill]] %s3806_s26  ;;  %p2907_p5 = scmp.ge.s32.totalorder %s3810_s27, 1 }
  0x20   : > { %s5314_s30 = scalar_select %p3951_p4, 1, 0 }
  0x21   : > { %p3956_p6 = por %p343_p3, %p63_p0  ;;  %p350_p7 = scmp.lt.s32.totalorder %s3810_s27, 5 }
  0x22   : > { %5315 = sst [smem:[#allocation28_spill]] %s5314_s30  ;;  %s3812_s14 = smov [#allocation8]  }
  0x23   : > { %s5316_s12 = scalar_select %p3956_p6, 1, 0 }
  0x24   : > { %p3961_p8 = pnand %p2907_p5, %p350_p7  ;;  %s362_s15 = sshll.u32 %s3812_s14, 4  ;;  %s363_s15 = int_to_ptr.vmem [resolvable:$true] %s362_s15 }
  0x25   : > { %5317 = sst [smem:[#allocation29_spill]] %s5316_s12  ;;  %s3517_s12 = scalar_lea.vmem %s363_s15, 2048 }
  0x26   : > { %p3155_p9 = pneg %p3961_p8  ;;  %p3518_p12 = scmp.ne.s32.totalorder %s363_s15, %s3517_s12 }
  0x27   : > { %p3525_p3 = scmp.lt.s32.totalorder %s363_s15, %s363_s15  ;;  %p3526_p5 = scmp.lt.s32.totalorder %s3517_s12, %s3517_s12 }
  0x28   : > { %p3969_p10 = pnand %p3155_p9, %p5249_p1 }
  0x29   : > { %p3527_p7 = por %p3526_p5, %p3525_p3 }
  0x2a   : > { %p5247_p11 = pneg %p3969_p10 }
  0x2c   : > { %p3520_p13 = pnand %p3518_p12, %p5247_p11 }
  0x2e   : > { %p3521_p0 = pneg %p3520_p13 }
  0x30   : > { %p3528_p2 = pnand %p3527_p7, %p3521_p0 }
  0x32   : > { %3531 = shalt.err (!%p3528_p2)
}
  0x33   : > { %s5243_s14 = smov 128   ;;  %s5245_s29 = smov 8  }
  0x34   : > { %s5320_s3 = sld [smem:[#allocation52_spill]]  ;;  %p57_p2 = scmp.ne.s32.totalorder %s3790_s22, %s3786_s21 }
  0x35   : > { %p5250_p9 = scmp.eq.s32.totalorder %s3810_s27, 0  ;;  %p5248_p12 = scmp.lt.s32.totalorder %s3810_s27, 4 }
  0x36   : > { %p5321_p13 = scmp.eq.s32.totalorder %s3942_s28, 3  ;;  %s5251_s10 = sand.u32 1, %s3810_s27  }
  0x37   : > { %p59_p3 = por %p5250_p9, %p57_p2  ;;  %s391_s8 = sand.u32 1, %s3790_s22  }
  0x38   : > { %p3994_p0 = por %p5321_p13, %p57_p2  ;;  %s3005_s6 = sshll.u32 %s3806_s26, 11 }
  0x39   : > { %s2911_s5 = sshll.u32 %s391_s8, 7  ;;  %s5324_s0 = sld [smem:[#allocation49_spill]] }
  0x3a   : > { %3158 = dma.hbm_to_vmem [thread:$0]  (!%p3969_p10), %s5320_s3, 2048, %s363_s15, [#allocation7], %s5243_s14, %s5243_s14, %s5245_s29  }
  0x3b   : > { %s5322_s24 = scalar_select %p3994_p0, 1, 0 }
  0x3c   : > { %p4008_p5 = pnand %p5248_p12, %p59_p3  ;;  %s393_s12 = scalar_lea.vmem [#allocation3], %s2911_s5 }
  0x3d   : > { %5323 = sst [smem:[#allocation30_spill]] %s5322_s24  ;;  %s400_s11 = sshll.u32 %s393_s12, 4  ;;  %s401_s11 = int_to_ptr.vmem [resolvable:$true] %s400_s11 }
  0x3e   : > { %s4014_s14 = scalar_lea.sflag [#allocation4], %s5251_s10  ;;  %p3534_p7 = pneg %p4008_p5 }
  0x3f   : > { %s399_s20 = scalar_lea.hbm %s5324_s0, %s3005_s6  ;;  %s3545_s29 = scalar_lea.vmem %s401_s11, 2048 }
  0x40   : > { %p3546_p2 = scmp.ne.s32.totalorder %s401_s11, %s3545_s29  ;;  %s3815_s2 = smov [#allocation3]  }
  0x41   : > { %s3550_s6 = sshll.u32 %s3815_s2, 4  ;;  %s3551_s6 = int_to_ptr.vmem [resolvable:$false] %s3550_s6 }
  0x42   : > { %p3548_p13 = pnand %p3546_p2, %p3534_p7  ;;  %s3552_s8 = scalar_lea.vmem %s3551_s6, 4096 }
  0x43   : > { %p3553_p3 = scmp.lt.s32.totalorder %s401_s11, %s3551_s6  ;;  %p3554_p12 = scmp.lt.s32.totalorder %s3552_s8, %s3545_s29 }
  0x44   : > { %p3549_p11 = pneg %p3548_p13 }
  0x45   : > { %p3555_p1 = por %p3554_p12, %p3553_p3 }
  0x47   : > { %p3556_p9 = pnand %p3555_p1, %p3549_p11 }
  0x49   : > { %3559 = shalt.err (!%p3556_p9)
}
  0x4a   : > { %s5326_s5 = smov 8   ;;  %s5327_s23 = smov 128  }
  0x4b   : > { %3165 = dma.hbm_to_vmem [thread:$0]  (!%p4008_p5), %s399_s20, 2048, %s401_s11, %s4014_s14, %s5327_s23, %s5327_s23, %s5326_s5  }
  0x4c   : > { %s40_s29 = sadd.s32 1, %s3802_s25  ;;  %s76_s15 = sadd.s32 1, %s3778_s19 }
  0x4d   : > { %p41_p1 = scmp.ge.s32.totalorder %s40_s29, 2  ;;  %p83_p11 = scmp.ne.s32.totalorder %s3778_s19, %s3774_s18 }
  0x4e   : > { %p89_p9 = scmp.ne.s32.totalorder %s3774_s18, %s3770_s17  ;;  %s5329_s12 = sadd.s32 1, %s3806_s26 }
  0x4f   : > { %s5460_s29 = smov (%p41_p1, %s40_s29), 0  ;;  %s5462_s12 = smov (!%p41_p1, %s5329_s12), %s3806_s26 }
  0x50   : > { %5328 = sst [smem:[#allocation31_spill]] %s5460_s29  ;;  %s73_s2 = ssub.s32 %s3802_s25, %s5460_s29 }
  0x51   : > { %p5330_p12 = scmp.eq.s32.totalorder %s3810_s27, 0  ;;  %p45_p5 = scmp.ge.s32.totalorder %s5462_s12, 2 }
  0x52   : > { %p74_p2 = scmp.eq.s32.totalorder %s73_s2, 0  ;;  %p5332_p13 = scmp.eq.s32.totalorder %s3942_s28, 0 }
  0x53   : > { %p4039_p7 = por %p83_p11, %p5330_p12  ;;  %s5464_s12 = smov (%p45_p5, %s5462_s12), 0 }
  0x54   : > { %p4045_p3 = por %p89_p9, %p5332_p13  ;;  %5335 = sst [smem:[#allocation33_spill]] %s5464_s12 }
  0x55   : > { %s4052_s17 = scalar_select %p74_p2, %s3778_s19, %s76_s15  }
  0x56   : > { %s5333_s11 = scalar_select %p4045_p3, 1, 0 }
  0x57   : > { %s47_s20 = ssub.s32 %s3806_s26, %s5464_s12  ;;  %s412_s8 = sand.u32 1, %s3778_s19  }
  0x58   : > { %5334 = sst [smem:[#allocation32_spill]] %s5333_s11  ;;  %p48_p1 = scmp.eq.s32.totalorder %s47_s20, 0 }
  0x59   : > { %s2914_s10 = sshll.u32 %s3802_s25, 4  ;;  %s413_s0 = scalar_lea.vmem [#allocation6], %s412_s8 }
  0x5a   : > { %s420_s3 = sshll.u32 %s413_s0, 4  ;;  %s5336_s29 = sadd.s32 1, %s3790_s22  ;;  %s421_s3 = int_to_ptr.vmem [resolvable:$true] %s420_s3 }
  0x5b   : > { %s4061_s24 = scalar_select %p48_p1, %s3790_s22, %s5336_s29  }
  0x5c   : > { %s5338_s1 = sld [smem:[#allocation50_spill]]  ;;  %p5339_p11 = scmp.lt.s32.totalorder %s3810_s27, 4 }
  0x5d   : > { %5337 = sst [smem:[#allocation34_spill]] %s4061_s24  ;;  %s2915_s15 = sshll.u32 %s412_s8, 7 }
  0x5e   : > { %p4070_p9 = pnand %p5339_p11, %p4039_p7  ;;  %s449_s20 = scalar_lea.vmem [#allocation11], %s2915_s15 }
  0x5f   : > { %s456_s12 = sshll.u32 %s449_s20, 4  ;;  %s5341_s0 = sand.u32 1, %s3810_s27   ;;  %s4086_s12 = int_to_ptr.vmem [resolvable:$true] %s456_s12 }
  0x60   : > { %s4076_s26 = scalar_lea.sflag [#allocation7], %s5341_s0  ;;  %p5262_p12 = pneg %p4070_p9 }
  0x61   : > { %s3573_s29 = scalar_lea.vmem %s421_s3, 16 }
  0x62   : > { %s418_s30 = scalar_lea.hbm %s5338_s1, %s2914_s10  ;;  %p3574_p5 = scmp.ne.s32.totalorder %s421_s3, %s3573_s29 }
  0x63   : > { %s3816_s10 = smov [#allocation6]  }
  0x64   : > { %p3576_p2 = pnand %p3574_p5, %p5262_p12  ;;  %s3578_s18 = sshll.u32 %s3816_s10, 4  ;;  %s3579_s18 = int_to_ptr.vmem [resolvable:$false] %s3578_s18 }
  0x65   : > { %s3580_s6 = scalar_lea.vmem %s3579_s18, 32  ;;  %p3581_p7 = scmp.lt.s32.totalorder %s421_s3, %s3579_s18 }
  0x66   : > { %p3577_p13 = pneg %p3576_p2  ;;  %p3582_p1 = scmp.lt.s32.totalorder %s3580_s6, %s3573_s29 }
  0x68   : > { %p3583_p11 = por %p3582_p1, %p3581_p7 }
  0x6a   : > { %p3584_p6 = pnand %p3583_p11, %p3577_p13 }
  0x6c   : > { %3587 = shalt.err (!%p3584_p6)
}
  0x6d   : > { %3168 = dma.hbm_to_vmem [thread:$0]  (!%p4070_p9), %s418_s30, 16, %s421_s3, %s4076_s26  }
  0x6e   : > { %s477_s8 = scalar_lea.vmem [#allocation12], %s2915_s15  ;;  %s3817_s20 = smov [#allocation9]  }
  0x6f   : > { %s484_s2 = sshll.u32 %s477_s8, 4  ;;  %s375_s0 = sshll.u32 %s3817_s20, 4  ;;  %s4088_s2 = int_to_ptr.vmem [resolvable:$true] %s484_s2  ;;  %s376_s0 = int_to_ptr.vmem [resolvable:$true] %s375_s0 }
  0x70   : > { %s3006_s10 = sshll.u32 %s3802_s25, 11  ;;  %s5342_s7 = sld [smem:[#allocation56_spill]] }
  0x71   : > { %s3599_s1 = scalar_lea.vmem %s376_s0, 2048  ;;  %p5343_p5 = pneg %p3969_p10 }
  0x72   : > { %p3600_p6 = scmp.ne.s32.totalorder %s376_s0, %s3599_s1  ;;  %p3607_p7 = scmp.lt.s32.totalorder %s376_s0, %s376_s0 }
  0x73   : > { %p3608_p1 = scmp.lt.s32.totalorder %s3599_s1, %s3599_s1 }
  0x74   : > { %p3602_p2 = pnand %p3600_p6, %p5343_p5 }
  0x75   : > { %p3609_p11 = por %p3608_p1, %p3607_p7 }
  0x76   : > { %s455_s6 = scalar_lea.hbm %s5342_s7, %s3006_s10  ;;  %p3603_p13 = pneg %p3602_p2 }
  0x78   : > { %p3610_p12 = pnand %p3609_p11, %p3603_p13 }
  0x7a   : > { %3613 = shalt.err (!%p3610_p12)
}
  0x7b   : > { %s5344_s4 = sld [smem:[#allocation53_spill]]  ;;  %s3627_s15 = scalar_lea.vmem %s4086_s12, 2048 }
  0x7c   : > { %p3628_p6 = scmp.ne.s32.totalorder %s4086_s12, %s3627_s15  ;;  %p5345_p5 = pneg %p4070_p9 }
  0x7d   : > { %s3818_s1 = smov [#allocation11]  }
  0x7e   : > { %p3630_p2 = pnand %p3628_p6, %p5345_p5  ;;  %s3632_s8 = sshll.u32 %s3818_s1, 4  ;;  %s3633_s8 = int_to_ptr.vmem [resolvable:$false] %s3632_s8 }
  0x7f   : > { %s3634_s16 = scalar_lea.vmem %s3633_s8, 4096  ;;  %p3635_p12 = scmp.lt.s32.totalorder %s4086_s12, %s3633_s8 }
  0x80   : > { %p3631_p13 = pneg %p3630_p2  ;;  %p3636_p7 = scmp.lt.s32.totalorder %s3634_s16, %s3627_s15 }
  0x81   : > { %3161 = dma.hbm_to_vmem [thread:$0]  (!%p3969_p10), %s5344_s4, 2048, %s376_s0, [#allocation10], %s5327_s23, %s5327_s23, %s5326_s5  }
  0x82   : > { %p3637_p1 = por %p3636_p7, %p3635_p12 }
  0x84   : > { %p3638_p11 = pnand %p3637_p1, %p3631_p13 }
  0x86   : > { %3641 = shalt.err (!%p3638_p11)
}
  0x87   : > { %3171 = dma.hbm_to_vmem [thread:$0]  (!%p4070_p9), %s455_s6, 2048, %s4086_s12, %s4014_s14, %s5327_s23, %s5327_s23, %s5326_s5  }
  0x88   : > { %s5346_s9 = sld [smem:[#allocation58_spill]]  ;;  %s3655_s18 = scalar_lea.vmem %s4088_s2, 2048 }
  0x89   : > { %p3656_p10 = scmp.ne.s32.totalorder %s4088_s2, %s3655_s18  ;;  %p5347_p6 = pmov %p5345_p5 }
  0x8a   : > { %s3819_s3 = smov [#allocation12]  }
  0x8b   : > { %p3658_p5 = pnand %p3656_p10, %p5347_p6  ;;  %s3660_s30 = sshll.u32 %s3819_s3, 4  ;;  %s3661_s30 = int_to_ptr.vmem [resolvable:$false] %s3660_s30 }
  0x8c   : > { %s3662_s15 = scalar_lea.vmem %s3661_s30, 4096  ;;  %p3663_p13 = scmp.lt.s32.totalorder %s4088_s2, %s3661_s30 }
  0x8d   : > { %p3659_p2 = pneg %p3658_p5  ;;  %p3664_p12 = scmp.lt.s32.totalorder %s3662_s15, %s3655_s18 }
  0x8e   : > { %s483_s29 = scalar_lea.hbm %s5346_s9, %s3006_s10 }
  0x8f   : > { %p3665_p7 = por %p3664_p12, %p3663_p13 }
  0x91   : > { %p3666_p1 = pnand %p3665_p7, %p3659_p2 }
  0x93   : > { %3669 = shalt.err (!%p3666_p1)
}
  0x94   : > { %s3820_s14 = smov 64   ;;  %s3821_s5 = smov 4  }
  0x95   : > { %3174 = dma.hbm_to_vmem [thread:$0]  (!%p4070_p9), %s483_s29, 2048, %s4088_s2, %s4076_s26, %s3820_s14, %s3820_s14, %s3821_s5  }
  0x96   : > { %502 = sbr.rel (%p3961_p8) target bundleno = 1636 (0x664), region = 64 }
  0x9b   : > { %s504_s12 = sand.u32 1, %s3942_s28   ;;  %s5263_s10 = sand.u32 1, %s3786_s21  }
  0x9c   : > { %s4141_s6 = sshll.u32 %s5263_s10, 7  ;;  %s505_s1 = scalar_lea.sflag [#allocation4], %s504_s12 }
  0x9d   : > { %s4144_s8 = scalar_lea.vmem [#allocation3], %s4141_s6 }
  0x9e   : > { %3741 = dma.done.wait (%p3951_p4), %s505_s1, 2048  }
  0x9f   : > { %3743 = vsyncadd (%p3951_p4), %s505_s1, 4294965248  ;;  %s5349_s26 = sld [smem:[#allocation21_spill]]  ;;  %s514_s2 = scalar_lea.sflag [#allocation7], %s504_s12 }
  0xa5   : > { %s515_s11 = sand.u32 1, %s5349_s26  }
  0xa6   : > { %s4151_s16 = scalar_lea.vmem [#allocation6], %s515_s11 }
  0xa7   : > { %3745 = dma.done.wait (%p4045_p3), %s514_s2, 16  }
  0xa8   : > { %3747 = vsyncadd (%p4045_p3), %s514_s2, 4294967280  ;;  %p5351_p8 = scmp.eq.s32.totalorder %s3942_s28, 0 }
  0xaa   : > { %3749 = dma.done.wait (%p5351_p8), [#allocation7], 2048   ;;  %p5352_p9 = pmov %p5351_p8 }
  0xab   : > { %p5353_p11 = pmov %p5351_p8 }
  0xac   : > { %3751 = vsyncadd (%p5352_p9), [#allocation7], 4294965248 }
  0xad   : > { %3753 = dma.done.wait (%p5353_p11), [#allocation10], 2048   ;;  %p5354_p4 = pmov %p5351_p8 }
  0xae   : > { %s2925_s20 = sshll.u32 %s515_s11, 7 }
  0xaf   : > { %3755 = vsyncadd (%p5354_p4), [#allocation10], 4294965248  ;;  %s4165_s0 = scalar_lea.vmem [#allocation11], %s2925_s20 }
  0xb0   : > { %3757 = dma.done.wait (%p4045_p3), %s505_s1, 2048  }
  0xb1   : > { %3759 = vsyncadd (%p4045_p3), %s505_s1, 4294965248  ;;  %s4171_s29 = scalar_lea.vmem [#allocation12], %s2925_s20 }
  0xb2   : > { %3761 = dma.done.wait (%p4045_p3), %s514_s2, 2048  }
  0xb3   : > { %3763 = vsyncadd (%p4045_p3), %s514_s2, 4294965248  ;;  %s5355_s18 = sld [smem:[#allocation24_spill]]  ;;  %s4204_s22 = scalar_lea.vmem [#allocation13], %s4141_s6 }
  0xb4   : > { %s5356_s15 = sld [smem:[#allocation51_spill]] }
  0xb5   : > { %s5357_s12 = sld [smem:[#allocation54_spill]] }
  0xb6   : > { %s5358_s11 = sld [smem:[#allocation55_spill]] }
  0xb7   : > { %s5359_s7 = sld [smem:[#allocation57_spill]] }
  0xb8   : > { %s5360_s25 = sld [smem:[#allocation59_spill]] }
  0xb9   : > { %p611_p10 = scmp.lt.s32.totalorder %s5355_s18, 1  ;;  %p2929_p3 = scmp.ne.s32.totalorder %s5355_s18, 0 }
  0xbb   : > { %s4179_s28 = scalar_select %p611_p10, %s5355_s18, 1 }
  0xbc   : > { %640 = sbr.rel (%p2929_p3) target bundleno = 202 (0xca), region = 92 }
  0xbd   : > { %s613_s14 = scalar_lea.vmem %s5356_s15, %s4179_s28  ;;  %s616_s1 = scalar_lea.vmem %s5357_s12, %s4179_s28 }
  0xbe   : > { %s619_s2 = scalar_lea.vmem %s5358_s11, %s4179_s28  ;;  %s2928_s20 = sshll.u32 %s4179_s28, 1 }
  0xbf   : > { %s4197_s9 = scalar_lea.vmem %s5359_s7, %s2928_s20  ;;  %s626_s24 = scalar_lea.vmem %s5360_s25, %s4179_s28 }
  0xc1   : > { %v641_v0 = vld [vmem:[%s4144_s8] sm:$0xff]  ;;  %v642_v1 = vld [vmem:[%s4144_s8 + $0x8] sm:$0xff]  ;;  %v643_v2 = vld [vmem:[%s4144_s8 + $0x10] sm:$0xff] }
  0xc2   : > { %657 = vst [vmem:[#allocation2 + $0x30] sm:$0xff] %v641_v0  ;;  %658 = vst [vmem:[#allocation2] sm:$0xff] %v642_v1  ;;  %v644_v3 = vld [vmem:[%s4144_s8 + $0x18] sm:$0xff]  ;;  %v645_v4 = vld [vmem:[%s4144_s8 + $0x20] sm:$0xff] }
  0xc3   : > { %659 = vst [vmem:[#allocation2 + $0x58] sm:$0xff] %v643_v2  ;;  %v646_v5 = vld [vmem:[%s4144_s8 + $0x28] sm:$0xff]  ;;  %660 = vst [vmem:[#allocation2 + $0x18] sm:$0xff] %v644_v3  ;;  %v647_v6 = vld [vmem:[%s4144_s8 + $0x30] sm:$0xff] }
  0xc4   : > { %661 = vst [vmem:[#allocation2 + $0x50] sm:$0xff] %v645_v4  ;;  %662 = vst [vmem:[#allocation2 + $0x68] sm:$0xff] %v646_v5  ;;  %v648_v7 = vld [vmem:[%s4144_s8 + $0x38] sm:$0xff]  ;;  %v649_v8 = vld [vmem:[%s4144_s8 + $0x40] sm:$0xff] }
  0xc5   : > { %663 = vst [vmem:[#allocation2 + $0x8] sm:$0xff] %v647_v6  ;;  %664 = vst [vmem:[#allocation2 + $0x48] sm:$0xff] %v648_v7  ;;  %v650_v9 = vld [vmem:[%s4144_s8 + $0x48] sm:$0xff]  ;;  %v651_v10 = vld [vmem:[%s4144_s8 + $0x50] sm:$0xff] }
  0xc6   : > { %665 = vst [vmem:[#allocation2 + $0x40] sm:$0xff] %v649_v8  ;;  %v652_v11 = vld [vmem:[%s4144_s8 + $0x58] sm:$0xff]  ;;  %666 = vst [vmem:[#allocation2 + $0x20] sm:$0xff] %v650_v9  ;;  %v653_v12 = vld [vmem:[%s4144_s8 + $0x60] sm:$0xff] }
  0xc7   : > { %667 = vst [vmem:[#allocation2 + $0x10] sm:$0xff] %v651_v10  ;;  %668 = vst [vmem:[#allocation2 + $0x38] sm:$0xff] %v652_v11  ;;  %v654_v13 = vld [vmem:[%s4144_s8 + $0x68] sm:$0xff]  ;;  %v655_v14 = vld [vmem:[%s4144_s8 + $0x70] sm:$0xff] }
  0xc8   : > { %669 = vst [vmem:[#allocation2 + $0x60] sm:$0xff] %v653_v12  ;;  %670 = vst [vmem:[#allocation2 + $0x70] sm:$0xff] %v654_v13  ;;  %v656_v15 = vld [vmem:[%s4144_s8 + $0x78] sm:$0xff] }
  0xc9   : > { %671 = vst [vmem:[#allocation2 + $0x78] sm:$0xff] %v655_v14  ;;  %672 = vst [vmem:[#allocation2 + $0x28] sm:$0xff] %v656_v15 }
  0xca PF: > { %v4223_v16 = vld [vmem:[#allocation2 + $0x30] sm:$0xff]  ;;  %v4225_v17 = vld [vmem:[#allocation2] sm:$0xff]  ;;  %v4233_v20 = vld [vmem:[#allocation2 + $0x58] sm:$0xff]  ;;  %v3822_v57 = vmov 0  }
  0xcb   : > { %691 = vadd.xlane.f32.xlu0 %v4223_v16  ;;  %v723_v18 = vmul.f32 %v4223_v16, %v4223_v16  ;;  %v724_v19 = vmul.f32 %v4225_v17, %v4225_v17  ;;  %v4235_v21 = vld [vmem:[#allocation2 + $0x18] sm:$0xff]  ;;  %v725_v22 = vmul.f32 %v4233_v20, %v4233_v20  ;;  %v4243_v24 = vld [vmem:[#allocation2 + $0x50] sm:$0xff]  ;;  %v4245_v26 = vld [vmem:[#allocation2 + $0x68] sm:$0xff]  ;;  %1095 = vmatprep.mubr.bf16.mxu0 %v3822_v57 }
  0xcc   : > { %v726_v23 = vmul.f32 %v4235_v21, %v4235_v21  ;;  %v3282_v25 = vld [vmem:[#allocation8 + $0x74] ss:$8 sps:$4 sm:$0xff]   ;;  %v3284_v27 = vld [vmem:[#allocation8 + $0x70] ss:$8 sps:$4 sm:$0xff]   ;;  %v727_v28 = vmul.f32 %v4243_v24, %v4243_v24  ;;  %v3285_v29 = vld [vmem:[#allocation8 + $0x64] ss:$8 sps:$4 sm:$0xff]   ;;  %v728_v31 = vmul.f32 %v4245_v26, %v4245_v26 }
  0xcd   : > { %739 = vadd.xlane.f32.xlu1 %v723_v18  ;;  %1063 = vmatprep.subr.bf16.mxu0 %v3282_v25  ;;  %v3287_v30 = vld [vmem:[#allocation8 + $0x60] ss:$8 sps:$4 sm:$0xff]   ;;  %v3288_v34 = vld [vmem:[#allocation8 + $0x54] ss:$8 sps:$4 sm:$0xff]   ;;  %v3290_v35 = vld [vmem:[#allocation8 + $0x50] ss:$8 sps:$4 sm:$0xff]  }
  0xce   : > { %1064 = vmatpush1.bf16.msra.mxu0 %v3284_v27  ;;  %v4253_v32 = vld [vmem:[#allocation2 + $0x8] sm:$0xff]  ;;  %v4263_v40 = vld [vmem:[#allocation2 + $0x40] sm:$0xff]  ;;  %v3296_v43 = vld [vmem:[#allocation8 + $0x30] ss:$8 sps:$4 sm:$0xff]  }
  0xcf   : > { %693 = vadd.xlane.f32.xlu0 %v4225_v17  ;;  %1065 = vmatprep.subr.bf16.mxu0 %v3285_v29  ;;  %v4255_v33 = vld [vmem:[#allocation2 + $0x48] sm:$0xff]  ;;  %v729_v36 = vmul.f32 %v4253_v32, %v4253_v32  ;;  %v4265_v41 = vld [vmem:[#allocation2 + $0x20] sm:$0xff]  ;;  %v731_v44 = vmul.f32 %v4263_v40, %v4263_v40  ;;  %v4273_v48 = vld [vmem:[#allocation2 + $0x10] sm:$0xff] }
  0xd0   : > { %v3291_v37 = vld [vmem:[#allocation8 + $0x44] ss:$8 sps:$4 sm:$0xff]   ;;  %v730_v38 = vmul.f32 %v4255_v33, %v4255_v33  ;;  %v3293_v39 = vld [vmem:[#allocation8 + $0x40] ss:$8 sps:$4 sm:$0xff]   ;;  %v3294_v42 = vld [vmem:[#allocation8 + $0x34] ss:$8 sps:$4 sm:$0xff]   ;;  %v732_v46 = vmul.f32 %v4265_v41, %v4265_v41  ;;  %v733_v52 = vmul.f32 %v4273_v48, %v4273_v48 }
  0xd1   : > { %741 = vadd.xlane.f32.xlu1 %v724_v19  ;;  %v3297_v45 = vld [vmem:[#allocation8 + $0x24] ss:$8 sps:$4 sm:$0xff]   ;;  %v3299_v47 = vld [vmem:[#allocation8 + $0x20] ss:$8 sps:$4 sm:$0xff]   ;;  %v3300_v49 = vld [vmem:[#allocation8 + $0x14] ss:$8 sps:$4 sm:$0xff]  }
  0xd2   : > { %1066 = vmatpush1.bf16.msra.mxu0 %v3287_v30  ;;  %v3302_v50 = vld [vmem:[#allocation8 + $0x10] ss:$8 sps:$4 sm:$0xff]   ;;  %v3303_v53 = vld [vmem:[#allocation8 + $0x4] ss:$8 sps:$4 sm:$0xff]   ;;  %v3305_v55 = vld [vmem:[#allocation8] ss:$8 sps:$4 sm:$0xff]  }
  0xd3   : > { %695 = vadd.xlane.f32.xlu0 %v4233_v20  ;;  %1067 = vmatprep.subr.bf16.mxu0 %v3288_v34  ;;  %v4275_v51 = vld [vmem:[#allocation2 + $0x38] sm:$0xff]  ;;  %v4283_v56 = vld [vmem:[#allocation2 + $0x60] sm:$0xff]  ;;  %v4286_v58 = vld [vmem:[#allocation2 + $0x70] sm:$0xff] }
  0xd4   : > { %v734_v54 = vmul.f32 %v4275_v51, %v4275_v51  ;;  %v735_v59 = vmul.f32 %v4283_v56, %v4283_v56  ;;  %v736_v60 = vmul.f32 %v4286_v58, %v4286_v58  ;;  %v4294_v61 = vld [vmem:[#allocation2 + $0x78] sm:$0xff]  ;;  %v4296_v62 = vld [vmem:[#allocation2 + $0x28] sm:$0xff] }
  0xd5   : > { %697 = vadd.xlane.f32.xlu1 %v4235_v21  ;;  %v737_v63 = vmul.f32 %v4294_v61, %v4294_v61  ;;  %v738_v0 = vmul.f32 %v4296_v62, %v4296_v62 }
  0xd6   : > { %1068 = vmatpush1.bf16.msra.mxu0 %v3290_v35 }
  0xd7   : > { %743 = vadd.xlane.f32.xlu0 %v725_v22  ;;  %1069 = vmatprep.subr.bf16.mxu0 %v3291_v37 }
  0xd9   : > { %745 = vadd.xlane.f32.xlu1 %v726_v23 }
  0xda   : > { %1070 = vmatpush1.bf16.msra.mxu0 %v3293_v39 }
  0xdb   : > { %699 = vadd.xlane.f32.xlu0 %v4243_v24  ;;  %1071 = vmatprep.subr.bf16.mxu0 %v3294_v42 }
  0xdd   : > { %701 = vadd.xlane.f32.xlu1 %v4245_v26 }
  0xde   : > { %1072 = vmatpush1.bf16.msra.mxu0 %v3296_v43 }
  0xdf   : > { %747 = vadd.xlane.f32.xlu0 %v727_v28  ;;  %1073 = vmatprep.subr.bf16.mxu0 %v3297_v45 }
  0xe1   : > { %749 = vadd.xlane.f32.xlu1 %v728_v31 }
  0xe2   : > { %1074 = vmatpush1.bf16.msra.mxu0 %v3299_v47 }
  0xe3   : > { %703 = vadd.xlane.f32.xlu0 %v4253_v32  ;;  %1075 = vmatprep.subr.bf16.mxu0 %v3300_v49 }
  0xe5   : > { %705 = vadd.xlane.f32.xlu1 %v4255_v33 }
  0xe6   : > { %1076 = vmatpush1.bf16.msra.mxu0 %v3302_v50 }
  0xe7   : > { %751 = vadd.xlane.f32.xlu0 %v729_v36  ;;  %1077 = vmatprep.subr.bf16.mxu0 %v3303_v53 }
  0xe9   : > { %753 = vadd.xlane.f32.xlu1 %v730_v38 }
  0xea   : > { %1078 = vmatpush1.bf16.msra.mxu0 %v3305_v55 }
  0xeb   : > { %707 = vadd.xlane.f32.xlu0 %v4263_v40 }
  0xed   : > { %709 = vadd.xlane.f32.xlu1 %v4265_v41 }
  0xef   : > { %755 = vadd.xlane.f32.xlu0 %v731_v44 }
  0xf1   : > { %757 = vadd.xlane.f32.xlu1 %v732_v46 }
  0xf3   : > { %711 = vadd.xlane.f32.xlu0 %v4273_v48 }
  0xf5   : > { %713 = vadd.xlane.f32.xlu1 %v4275_v51 }
  0xf7   : > { %759 = vadd.xlane.f32.xlu0 %v733_v52 }
  0xf9   : > { %761 = vadd.xlane.f32.xlu1 %v734_v54 }
  0xfb   : > { %715 = vadd.xlane.f32.xlu0 %v4283_v56 }
  0xfd   : > { %717 = vadd.xlane.f32.xlu1 %v4286_v58 }
  0xff   : > { %763 = vadd.xlane.f32.xlu0 %v735_v59 }
 0x101   : > { %765 = vadd.xlane.f32.xlu1 %v736_v60 }
 0x103   : > { %719 = vadd.xlane.f32.xlu0 %v4294_v61 }
 0x105   : > { %721 = vadd.xlane.f32.xlu1 %v4296_v62 }
 0x107   : > { %767 = vadd.xlane.f32.xlu0 %v737_v63 }
 0x109   : > { %769 = vadd.xlane.f32.xlu1 %v738_v0 }
 0x154   : > { %v692_v1 = vpop.xlane.xlu0 %691 }
 0x155   : > { %v771_v2 = vmul.f32 0.0078125, %v692_v1 }
 0x156   : > { %v740_v3 = vpop.xlane.xlu1 %739 }
 0x157   : > { %v803_v4 = vmul.f32 %v771_v2, %v771_v2  ;;  %v787_v5 = vmul.f32 0.0078125, %v740_v3  ;;  %v851_v60 = vsub.f32 %v4223_v16, %v771_v2 }
 0x158   : > { %v694_v6 = vpop.xlane.xlu0 %693 }
 0x159   : > { %v819_v7 = vsub.f32 %v787_v5, %v803_v4  ;;  %v772_v8 = vmul.f32 0.0078125, %v694_v6 }
 0x15a   : > { %v742_v9 = vpop.xlane.xlu1 %741 }
 0x15b   : > { %v835_v10 = vmax.f32 %v819_v7, 0.0  ;;  %v804_v11 = vmul.f32 %v772_v8, %v772_v8  ;;  %v788_v12 = vmul.f32 0.0078125, %v742_v9  ;;  %v852_v6 = vsub.f32 %v4225_v17, %v772_v8 }
 0x15c   : > { %v696_v13 = vpop.xlane.xlu0 %695 }
 0x15d   : > { %v867_v14 = vadd.f32 1e-05, %v835_v10  ;;  %v820_v15 = vsub.f32 %v788_v12, %v804_v11  ;;  %v4304_v18 = vmul.f32 0.0078125, %v696_v13  ;;  %v4327_v11 = vld [vmem:[%s4151_s16] ss:$0 sm:$0xff] }
 0x15e   : > { %v698_v19 = vpop.xlane.xlu1 %697 }
 0x15f   : > { %3370 = vrsqrt.f32 %v867_v14  ;;  %v836_v22 = vmax.f32 %v820_v15, 0.0  ;;  %v805_v23 = vmul.f32 %v4304_v18, %v4304_v18  ;;  %v4308_v25 = vmul.f32 0.0078125, %v698_v19 }
 0x160   : > { %v744_v27 = vpop.xlane.xlu0 %743 }
 0x161   : > { %v868_v28 = vadd.f32 1e-05, %v836_v22  ;;  %v789_v29 = vmul.f32 0.0078125, %v744_v27  ;;  %v806_v31 = vmul.f32 %v4308_v25, %v4308_v25  ;;  %v4339_v27 = vld [vmem:[%s613_s14] ss:$0 sm:$0xff] }
 0x162   : > { %v746_v30 = vpop.xlane.xlu1 %745 }
 0x163   : > { %3372 = vrsqrt.f32 %v868_v28  ;;  %v821_v34 = vsub.f32 %v789_v29, %v805_v23  ;;  %v790_v35 = vmul.f32 0.0078125, %v746_v30 }
 0x164   : > { %v700_v36 = vpop.xlane.xlu0 %699 }
 0x165   : > { %v837_v37 = vmax.f32 %v821_v34, 0.0  ;;  %v822_v38 = vsub.f32 %v790_v35, %v806_v31  ;;  %v4312_v39 = vmul.f32 0.0078125, %v700_v36 }
 0x166   : > { %v702_v42 = vpop.xlane.xlu1 %701 }
 0x167   : > { %v869_v43 = vadd.f32 1e-05, %v837_v37  ;;  %v838_v44 = vmax.f32 %v822_v38, 0.0  ;;  %v807_v45 = vmul.f32 %v4312_v39, %v4312_v39  ;;  %v4316_v46 = vmul.f32 0.0078125, %v702_v42 }
 0x168   : > { %v748_v47 = vpop.xlane.xlu0 %747  ;;  %v853_v37 = vsub.f32 %v4233_v20, %v4304_v18 }
 0x169   : > { %3374 = vrsqrt.f32 %v869_v43  ;;  %v870_v49 = vadd.f32 1e-05, %v838_v44  ;;  %v791_v50 = vmul.f32 0.0078125, %v748_v47  ;;  %v808_v53 = vmul.f32 %v4316_v46, %v4316_v46 }
 0x16a   : > { %v750_v52 = vpop.xlane.xlu1 %749  ;;  %v854_v43 = vsub.f32 %v4235_v21, %v4308_v25 }
 0x16b   : > { %3376 = vrsqrt.f32 %v870_v49  ;;  %v823_v54 = vsub.f32 %v791_v50, %v807_v45  ;;  %v792_v55 = vmul.f32 0.0078125, %v750_v52 }
 0x16c   : > { %v3371_v59 = vpop.eup %3370  ;;  %v704_v63 = vpop.xlane.xlu0 %703 }
 0x16d   : > { %v839_v0 = vmax.f32 %v823_v54, 0.0  ;;  %v824_v1 = vsub.f32 %v792_v55, %v808_v53  ;;  %v4321_v3 = vmul.f32 0.0078125, %v704_v63  ;;  %v899_v5 = vmul.f32 %v3371_v59, %v851_v60 }
 0x16e   : > { %v706_v4 = vpop.xlane.xlu1 %705 }
 0x16f   : > { %v871_v7 = vadd.f32 1e-05, %v839_v0  ;;  %v840_v9 = vmax.f32 %v824_v1, 0.0  ;;  %v809_v10 = vmul.f32 %v4321_v3, %v4321_v3  ;;  %v4329_v13 = vmul.f32 0.0078125, %v706_v4 }
 0x170   : > { %v3373_v12 = vpop.eup %3372  ;;  %v752_v16 = vpop.xlane.xlu0 %751  ;;  %v921_v8 = vmul.f32 %v4327_v11, %v899_v5 }
 0x171   : > { %3378 = vrsqrt.f32 %v871_v7  ;;  %v872_v2 = vadd.f32 1e-05, %v840_v9  ;;  %v793_v14 = vmul.f32 0.0078125, %v752_v16  ;;  %v900_v15 = vmul.f32 %v3373_v12, %v852_v6 }
 0x172   : > { %v810_v19 = vmul.f32 %v4329_v13, %v4329_v13  ;;  %v754_v17 = vpop.xlane.xlu1 %753  ;;  %v943_v42 = vadd.f32 %v4339_v27, %v921_v8 }
 0x173   : > { %3380 = vrsqrt.f32 %v872_v2  ;;  %v825_v22 = vsub.f32 %v793_v14, %v809_v10  ;;  %v794_v23 = vmul.f32 0.0078125, %v754_v17  ;;  %v922_v28 = vmul.f32 %v4327_v11, %v900_v15 }
 0x174   : > { %v708_v29 = vpop.xlane.xlu0 %707  ;;  %v855_v10 = vsub.f32 %v4243_v24, %v4312_v39  ;;  %v856_v2 = vsub.f32 %v4245_v26, %v4316_v46 }
 0x175   : > { %v841_v30 = vmax.f32 %v825_v22, 0.0  ;;  %v826_v31 = vsub.f32 %v794_v23, %v810_v19  ;;  %v4342_v34 = vmul.f32 0.0078125, %v708_v29  ;;  %v944_v35 = vadd.f32 %v4339_v27, %v922_v28 }
 0x176   : > { %v3375_v36 = vpop.eup %3374  ;;  %v710_v38 = vpop.xlane.xlu1 %709 }
 0x177   : > { %v873_v44 = vadd.f32 1e-05, %v841_v30  ;;  %v842_v45 = vmax.f32 %v826_v31, 0.0  ;;  %v811_v47 = vmul.f32 %v4342_v34, %v4342_v34  ;;  %v4352_v50 = vmul.f32 0.0078125, %v710_v38 }
 0x178   : > { %v3377_v49 = vpop.eup %3376  ;;  %v756_v52 = vpop.xlane.xlu0 %755  ;;  %v959_v53 = vpack.c.bf16 %v944_v35, %v943_v42  ;;  %v901_v54 = vmul.f32 %v3375_v36, %v853_v37 }
 0x179   : > { %3382 = vrsqrt.f32 %v873_v44  ;;  %v874_v55 = vadd.f32 1e-05, %v842_v45  ;;  %v795_v20 = vmul.f32 0.0078125, %v756_v52  ;;  %v902_v18 = vmul.f32 %v3377_v49, %v854_v43 }
 0x17a   : > { %v812_v59 = vmul.f32 %v4352_v50, %v4352_v50  ;;  %1096 = vmatmul.mubr.bf16.vlgmr.msra.gmra.mxu0 %v959_v53  ;;  %v758_v21 = vpop.xlane.xlu1 %757  ;;  %v923_v25 = vmul.f32 %v4327_v11, %v901_v54  ;;  %v858_v53 = vsub.f32 %v4255_v33, %v4329_v13 }
 0x17b   : > { %3384 = vrsqrt.f32 %v874_v55  ;;  %v827_v60 = vsub.f32 %v795_v20, %v811_v47  ;;  %v796_v63 = vmul.f32 0.0078125, %v758_v21  ;;  %1105 = vmatprep.mubr.bf16.mxu0 %v3822_v57  ;;  %v924_v0 = vmul.f32 %v4327_v11, %v902_v18 }
 0x17c   : > { %v712_v1 = vpop.xlane.xlu0 %711  ;;  %v945_v16 = vadd.f32 %v4339_v27, %v923_v25  ;;  %v857_v47 = vsub.f32 %v4253_v32, %v4321_v3 }
 0x17d   : > { %v843_v4 = vmax.f32 %v827_v60, 0.0  ;;  %v828_v5 = vsub.f32 %v796_v63, %v812_v59  ;;  %v4359_v6 = vmul.f32 0.0078125, %v712_v1  ;;  %v946_v7 = vadd.f32 %v4339_v27, %v924_v0 }
 0x17e   : > { %v3379_v9 = vpop.eup %3378  ;;  %v714_v12 = vpop.xlane.xlu1 %713 }
 0x17f   : > { %v875_v14 = vadd.f32 1e-05, %v843_v4  ;;  %v844_v15 = vmax.f32 %v828_v5, 0.0  ;;  %v813_v19 = vmul.f32 %v4359_v6, %v4359_v6  ;;  %v4369_v8 = vmul.f32 0.0078125, %v714_v12 }
 0x180   : > { %v3381_v17 = vpop.eup %3380  ;;  %v760_v22 = vpop.xlane.xlu0 %759  ;;  %v960_v23 = vpack.c.bf16 %v946_v7, %v945_v16  ;;  %v903_v28 = vmul.f32 %v3379_v9, %v855_v10 }
 0x181   : > { %3386 = vrsqrt.f32 %v875_v14  ;;  %v876_v29 = vadd.f32 1e-05, %v844_v15  ;;  %v797_v24 = vmul.f32 0.0078125, %v760_v22  ;;  %v904_v39 = vmul.f32 %v3381_v17, %v856_v2 }
 0x182   : > { %v814_v30 = vmul.f32 %v4369_v8, %v4369_v8  ;;  %1106 = vmatmul.mubr.bf16.gmra.mxu0 %v960_v23  ;;  %v762_v26 = vpop.xlane.xlu1 %761  ;;  %v925_v46 = vmul.f32 %v4327_v11, %v903_v28  ;;  %v859_v14 = vsub.f32 %v4263_v40, %v4342_v34  ;;  %v860_v17 = vsub.f32 %v4265_v41, %v4352_v50 }
 0x183   : > { %3388 = vrsqrt.f32 %v876_v29  ;;  %v829_v31 = vsub.f32 %v797_v24, %v813_v19  ;;  %v798_v35 = vmul.f32 0.0078125, %v762_v26  ;;  %1115 = vmatprep.mubr.bf16.mxu0 %v3822_v57  ;;  %v926_v36 = vmul.f32 %v4327_v11, %v904_v39 }
 0x184   : > { %v716_v37 = vpop.xlane.xlu0 %715  ;;  %v947_v52 = vadd.f32 %v4339_v27, %v925_v46 }
 0x185   : > { %v845_v38 = vmax.f32 %v829_v31, 0.0  ;;  %v830_v42 = vsub.f32 %v798_v35, %v814_v30  ;;  %v4376_v43 = vmul.f32 0.0078125, %v716_v37  ;;  %v948_v44 = vadd.f32 %v4339_v27, %v926_v36 }
 0x186   : > { %v3383_v45 = vpop.eup %3382  ;;  %v718_v49 = vpop.xlane.xlu1 %717 }
 0x187   : > { %v877_v54 = vadd.f32 1e-05, %v845_v38  ;;  %v846_v55 = vmax.f32 %v830_v42, 0.0  ;;  %v815_v20 = vmul.f32 %v4376_v43, %v4376_v43  ;;  %v4386_v59 = vmul.f32 0.0078125, %v718_v49 }
 0x188   : > { %v3385_v18 = vpop.eup %3384  ;;  %v764_v21 = vpop.xlane.xlu0 %763  ;;  %v961_v25 = vpack.c.bf16 %v948_v44, %v947_v52  ;;  %v905_v60 = vmul.f32 %v3383_v45, %v857_v47  ;;  %v861_v44 = vsub.f32 %v4273_v48, %v4359_v6 }
 0x189   : > { %3390 = vrsqrt.f32 %v877_v54  ;;  %v878_v63 = vadd.f32 1e-05, %v846_v55  ;;  %v799_v32 = vmul.f32 0.0078125, %v764_v21  ;;  %v906_v3 = vmul.f32 %v3385_v18, %v858_v53 }
 0x18a   : > { %v816_v0 = vmul.f32 %v4386_v59, %v4386_v59  ;;  %1116 = vmatmul.mubr.bf16.gmra.mxu0 %v961_v25  ;;  %v766_v33 = vpop.xlane.xlu1 %765  ;;  %v927_v13 = vmul.f32 %v4327_v11, %v905_v60  ;;  %v862_v54 = vsub.f32 %v4275_v51, %v4369_v8 }
 0x18b   : > { %3392 = vrsqrt.f32 %v878_v63  ;;  %v831_v1 = vsub.f32 %v799_v32, %v815_v20  ;;  %v800_v4 = vmul.f32 0.0078125, %v766_v33  ;;  %1125 = vmatprep.mubr.bf16.mxu0 %v3822_v57  ;;  %v928_v5 = vmul.f32 %v4327_v11, %v906_v3 }
 0x18c   : > { %v720_v7 = vpop.xlane.xlu0 %719  ;;  %v949_v19 = vadd.f32 %v4339_v27, %v927_v13  ;;  %v863_v3 = vsub.f32 %v4283_v56, %v4376_v43  ;;  %v864_v13 = vsub.f32 %v4286_v58, %v4386_v59 }
 0x18d   : > { %v847_v9 = vmax.f32 %v831_v1, 0.0  ;;  %v832_v10 = vsub.f32 %v800_v4, %v816_v0  ;;  %v4393_v12 = vmul.f32 0.0078125, %v720_v7  ;;  %v950_v16 = vadd.f32 %v4339_v27, %v928_v5 }
 0x18e   : > { %v3387_v2 = vpop.eup %3386  ;;  %v722_v15 = vpop.xlane.xlu1 %721 }
 0x18f   : > { %v879_v22 = vadd.f32 1e-05, %v847_v9  ;;  %v848_v23 = vmax.f32 %v832_v10, 0.0  ;;  %v817_v28 = vmul.f32 %v4393_v12, %v4393_v12  ;;  %v786_v24 = vmul.f32 0.0078125, %v722_v15 }
 0x190   : > { %v3389_v29 = vpop.eup %3388  ;;  %v768_v39 = vpop.xlane.xlu0 %767  ;;  %v962_v30 = vpack.c.bf16 %v950_v16, %v949_v19  ;;  %v907_v26 = vmul.f32 %v3387_v2, %v859_v14  ;;  %v865_v43 = vsub.f32 %v4294_v61, %v4393_v12 }
 0x191   : > { %3394 = vrsqrt.f32 %v879_v22  ;;  %v880_v46 = vadd.f32 1e-05, %v848_v23  ;;  %v801_v31 = vmul.f32 0.0078125, %v768_v39  ;;  %v908_v34 = vmul.f32 %v3389_v29, %v860_v17 }
 0x192   : > { %v818_v35 = vmul.f32 %v786_v24, %v786_v24  ;;  %1126 = vmatmul.mubr.bf16.gmra.mxu0 %v962_v30  ;;  %v770_v36 = vpop.xlane.xlu1 %769  ;;  %v929_v37 = vmul.f32 %v4327_v11, %v907_v26  ;;  %v866_v59 = vsub.f32 %v4296_v62, %v786_v24  ;;  %v3308_v24 = vld [vmem:[#allocation9 + $0x4] ss:$8 sps:$4 sm:$0xff]  }
 0x193   : > { %3396 = vrsqrt.f32 %v880_v46  ;;  %v833_v50 = vsub.f32 %v801_v31, %v817_v28  ;;  %v802_v38 = vmul.f32 0.0078125, %v770_v36  ;;  %1135 = vmatprep.mubr.bf16.mxu0 %v3822_v57  ;;  %v930_v42 = vmul.f32 %v4327_v11, %v908_v34  ;;  %1320 = vmatprep.mubr.bf16.mxu1 %v3308_v24  ;;  %v3317_v24 = vld [vmem:[#allocation9 + $0x30] ss:$8 sps:$4 sm:$0xff]  }
 0x194   : > { %v951_v49 = vadd.f32 %v4339_v27, %v929_v37 }
 0x195   : > { %v849_v45 = vmax.f32 %v833_v50, 0.0  ;;  %v834_v47 = vsub.f32 %v802_v38, %v818_v35  ;;  %v952_v52 = vadd.f32 %v4339_v27, %v930_v42 }
 0x196   : > { %v3391_v53 = vpop.eup %3390 }
 0x197   : > { %v881_v55 = vadd.f32 1e-05, %v849_v45  ;;  %v850_v20 = vmax.f32 %v834_v47, 0.0  ;;  %v963_v18 = vpack.c.bf16 %v952_v52, %v951_v49  ;;  %v909_v21 = vmul.f32 %v3391_v53, %v861_v44 }
 0x198   : > { %v3393_v25 = vpop.eup %3392 }
 0x199   : > { %3398 = vrsqrt.f32 %v881_v55  ;;  %v882_v60 = vadd.f32 1e-05, %v850_v20  ;;  %v910_v63 = vmul.f32 %v3393_v25, %v862_v54  ;;  %v931_v6 = vmul.f32 %v4327_v11, %v909_v21 }
 0x19a   : > { %1136 = vmatmul.mubr.bf16.gmra.mxu0 %v963_v18 }
 0x19b   : > { %3400 = vrsqrt.f32 %v882_v60  ;;  %1145 = vmatprep.mubr.bf16.mxu0 %v3822_v57  ;;  %v932_v32 = vmul.f32 %v4327_v11, %v910_v63  ;;  %v953_v8 = vadd.f32 %v4339_v27, %v931_v6 }
 0x19d   : > { %v954_v0 = vadd.f32 %v4339_v27, %v932_v32 }
 0x19e   : > { %v3395_v33 = vpop.eup %3394 }
 0x19f   : > { %v964_v1 = vpack.c.bf16 %v954_v0, %v953_v8  ;;  %v911_v4 = vmul.f32 %v3395_v33, %v863_v3 }
 0x1a0   : > { %v3397_v5 = vpop.eup %3396 }
 0x1a1   : > { %v912_v7 = vmul.f32 %v3397_v5, %v864_v13  ;;  %v933_v9 = vmul.f32 %v4327_v11, %v911_v4 }
 0x1a2   : > { %1146 = vmatmul.mubr.bf16.gmra.mxu0 %v964_v1 }
 0x1a3   : > { %1155 = vmatprep.mubr.bf16.mxu0 %v3822_v57  ;;  %v934_v10 = vmul.f32 %v4327_v11, %v912_v7  ;;  %v955_v16 = vadd.f32 %v4339_v27, %v933_v9 }
 0x1a5   : > { %v956_v2 = vadd.f32 %v4339_v27, %v934_v10 }
 0x1a6   : > { %v3399_v14 = vpop.eup %3398 }
 0x1a7   : > { %v965_v15 = vpack.c.bf16 %v956_v2, %v955_v16  ;;  %v913_v19 = vmul.f32 %v3399_v14, %v865_v43 }
 0x1a8   : > { %v3401_v17 = vpop.eup %3400 }
 0x1a9   : > { %v914_v22 = vmul.f32 %v3401_v17, %v866_v59  ;;  %v935_v23 = vmul.f32 %v4327_v11, %v913_v19 }
 0x1aa   : > { %1156 = vmatmul.mubr.bf16.gmra.mxu0 %v965_v15 }
 0x1ab   : > { %1165 = vmatprep.mubr.bf16.mxu0 %v3822_v57  ;;  %v936_v28 = vmul.f32 %v4327_v11, %v914_v22  ;;  %v957_v12 = vadd.f32 %v4339_v27, %v935_v23  ;;  %v3306_v22 = vld [vmem:[#allocation9] ss:$8 sps:$4 sm:$0xff]   ;;  %v3309_v23 = vld [vmem:[#allocation9 + $0x14] ss:$8 sps:$4 sm:$0xff]  }
 0x1ad   : > { %v958_v29 = vadd.f32 %v4339_v27, %v936_v28  ;;  %v3311_v28 = vld [vmem:[#allocation9 + $0x10] ss:$8 sps:$4 sm:$0xff]  }
 0x1af   : > { %v966_v39 = vpack.c.bf16 %v958_v29, %v957_v12  ;;  %v3312_v12 = vld [vmem:[#allocation9 + $0x24] ss:$8 sps:$4 sm:$0xff]   ;;  %v3314_v29 = vld [vmem:[#allocation9 + $0x20] ss:$8 sps:$4 sm:$0xff]  }
 0x1b2   : > { %1166 = vmatmul.mubr.bf16.gmra.mxu0 %v966_v39  ;;  %v3315_v39 = vld [vmem:[#allocation9 + $0x34] ss:$8 sps:$4 sm:$0xff]  }
 0x1b3   : > { %1868 = vmatprep.mubr.bf16.mxu0 %v3822_v57 }
 0x23a   : > { %v4435_v30 = vpop.f32.mrf.mxu0 }
 0x23c   : > { %v1099_v26 = vpop.f32.mrf.mxu0 }
 0x23e   : > { %v1101_v46 = vpop.f32.mrf.mxu0 }
 0x23f   : > { %v1176_v31 = vpack.c.bf16 %v1101_v46, %v4435_v30  ;;  %v3318_v30 = vld [vmem:[#allocation9 + $0x44] ss:$8 sps:$4 sm:$0xff]   ;;  %v3321_v46 = vld [vmem:[#allocation9 + $0x54] ss:$8 sps:$4 sm:$0xff]  }
 0x240   : > { %v1103_v34 = vpop.f32.mrf.mxu0 }
 0x241   : > { %v1177_v35 = vpack.c.bf16 %v1103_v34, %v1099_v26  ;;  %v3320_v26 = vld [vmem:[#allocation9 + $0x40] ss:$8 sps:$4 sm:$0xff]   ;;  %v3324_v34 = vld [vmem:[#allocation9 + $0x64] ss:$8 sps:$4 sm:$0xff]  }
 0x242   : > { %v1107_v36 = vpop.f32.mrf.mxu0 }
 0x244   : > { %v1109_v11 = vpop.f32.mrf.mxu0 }
 0x246   : > { %v1111_v37 = vpop.f32.mrf.mxu0 }
 0x247   : > { %v1178_v50 = vpack.c.bf16 %v1111_v37, %v1107_v36  ;;  %v3327_v36 = vld [vmem:[#allocation9 + $0x74] ss:$8 sps:$4 sm:$0xff]   ;;  %v3330_v37 = vld [vmem:[%s4165_s0 + $0x70] ss:$8 sps:$4 sm:$0xff]  }
 0x248   : > { %v1113_v38 = vpop.f32.mrf.mxu0 }
 0x249   : > { %v1179_v27 = vpack.c.bf16 %v1113_v38, %v1109_v11  ;;  %v3329_v11 = vld [vmem:[#allocation9 + $0x70] ss:$8 sps:$4 sm:$0xff]   ;;  %v3335_v38 = vld [vmem:[%s4165_s0 + $0x64] ss:$8 sps:$4 sm:$0xff]  }
 0x24a   : > { %v1117_v42 = vpop.f32.mrf.mxu0 }
 0x24c   : > { %v1119_v44 = vpop.f32.mrf.mxu0 }
 0x24e   : > { %v1121_v45 = vpop.f32.mrf.mxu0 }
 0x24f   : > { %v1180_v17 = vpack.c.bf16 %v1121_v45, %v1117_v42  ;;  %v3338_v42 = vld [vmem:[%s4165_s0 + $0x54] ss:$8 sps:$4 sm:$0xff]   ;;  %v3341_v45 = vld [vmem:[%s4165_s0 + $0x44] ss:$8 sps:$4 sm:$0xff]  }
 0x250   : > { %v1123_v47 = vpop.f32.mrf.mxu0 }
 0x251   : > { %v1181_v19 = vpack.c.bf16 %v1123_v47, %v1119_v44  ;;  %v3336_v44 = vld [vmem:[%s4165_s0 + $0x50] ss:$8 sps:$4 sm:$0xff]   ;;  %v3339_v47 = vld [vmem:[%s4165_s0 + $0x40] ss:$8 sps:$4 sm:$0xff]  }
 0x252   : > { %v1127_v49 = vpop.f32.mrf.mxu0 }
 0x254   : > { %v1129_v52 = vpop.f32.mrf.mxu0 }
 0x256   : > { %v1131_v53 = vpop.f32.mrf.mxu0 }
 0x257   : > { %v1182_v15 = vpack.c.bf16 %v1131_v53, %v1127_v49 }
 0x258   : > { %v1133_v54 = vpop.f32.mrf.mxu0 }
 0x259   : > { %v1183_v59 = vpack.c.bf16 %v1133_v54, %v1129_v52 }
 0x25a   : > { %v1137_v55 = vpop.f32.mrf.mxu0 }
 0x25c   : > { %v1139_v20 = vpop.f32.mrf.mxu0 }
 0x25e   : > { %v1141_v18 = vpop.f32.mrf.mxu0 }
 0x25f   : > { %v1184_v14 = vpack.c.bf16 %v1141_v18, %v1137_v55  ;;  %v3498_v55 = vld [vmem:[#allocation2 + $0x30] sm:$0xff] }
 0x260   : > { %v1143_v21 = vpop.f32.mrf.mxu0 }
 0x261   : > { %v1185_v2 = vpack.c.bf16 %v1143_v21, %v1139_v20 }
 0x262   : > { %v1147_v25 = vpop.f32.mrf.mxu0 }
 0x264   : > { %v1149_v60 = vpop.f32.mrf.mxu0 }
 0x266   : > { %v1151_v63 = vpop.f32.mrf.mxu0 }
 0x267   : > { %v1186_v16 = vpack.c.bf16 %v1151_v63, %v1147_v25 }
 0x268   : > { %v1153_v6 = vpop.f32.mrf.mxu0 }
 0x269   : > { %v1187_v43 = vpack.c.bf16 %v1153_v6, %v1149_v60  ;;  %v3499_v60 = vld [vmem:[#allocation2] sm:$0xff] }
 0x26a   : > { %v1157_v32 = vpop.f32.mrf.mxu0 }
 0x26c   : > { %v1159_v3 = vpop.f32.mrf.mxu0 }
 0x26e   : > { %v1161_v8 = vpop.f32.mrf.mxu0 }
 0x26f   : > { %v1188_v10 = vpack.c.bf16 %v1161_v8, %v1157_v32 }
 0x270   : > { %v1163_v0 = vpop.f32.mrf.mxu0 }
 0x271   : > { %v1189_v9 = vpack.c.bf16 %v1163_v0, %v1159_v3  ;;  %v3500_v0 = vld [vmem:[#allocation2 + $0x58] sm:$0xff] }
 0x272   : > { %v1167_v33 = vpop.f32.mrf.mxu0 }
 0x274   : > { %v1169_v13 = vpop.f32.mrf.mxu0 }
 0x276   : > { %v1171_v1 = vpop.f32.mrf.mxu0 }
 0x277   : > { %v1190_v7 = vpack.c.bf16 %v1171_v1, %v1167_v33 }
 0x278   : > { %v1173_v4 = vpop.f32.mrf.mxu0 }
 0x279   : > { %v1191_v5 = vpack.c.bf16 %v1173_v4, %v1169_v13 }
 0x27b   : > { %3009 = vmatprep.subr.bf16.mxu1 %v1191_v5 }
 0x27c   : > { %3010 = vmatpush3.bf16.msra.mxu1 %v1190_v7  ;;  %v3501_v7 = vld [vmem:[#allocation2 + $0x18] sm:$0xff] }
 0x27d   : > { %3011 = vmatprep.subr.bf16.mxu1 %v1189_v9 }
 0x280   : > { %3012 = vmatpush3.bf16.msra.mxu1 %v1188_v10 }
 0x281   : > { %3013 = vmatprep.subr.bf16.mxu1 %v1187_v43 }
 0x284   : > { %3014 = vmatpush3.bf16.msra.mxu1 %v1186_v16 }
 0x285   : > { %3015 = vmatprep.subr.bf16.mxu1 %v1185_v2 }
 0x288   : > { %3016 = vmatpush3.bf16.msra.mxu1 %v1184_v14  ;;  %v3502_v14 = vld [vmem:[#allocation2 + $0x50] sm:$0xff] }
 0x289   : > { %3017 = vmatprep.subr.bf16.mxu1 %v1183_v59 }
 0x28c   : > { %3018 = vmatpush3.bf16.msra.mxu1 %v1182_v15 }
 0x28d   : > { %3019 = vmatprep.subr.bf16.mxu1 %v1181_v19 }
 0x290   : > { %3020 = vmatpush3.bf16.msra.mxu1 %v1180_v17 }
 0x291   : > { %3021 = vmatprep.subr.bf16.mxu1 %v1179_v27  ;;  %v3333_v27 = vld [vmem:[%s4165_s0 + $0x60] ss:$8 sps:$4 sm:$0xff]  }
 0x294   : > { %3022 = vmatpush3.bf16.msra.mxu1 %v1178_v50  ;;  %v3332_v50 = vld [vmem:[%s4165_s0 + $0x74] ss:$8 sps:$4 sm:$0xff]  }
 0x295   : > { %3023 = vmatprep.subr.bf16.mxu1 %v1177_v35  ;;  %v3326_v35 = vld [vmem:[#allocation9 + $0x60] ss:$8 sps:$4 sm:$0xff]   ;;  %1836 = vmatprep.subr.bf16.mxu0 %v3332_v50 }
 0x296   : > { %1837 = vmatpush1.bf16.msra.mxu0 %v3330_v37  ;;  %v3505_v37 = vld [vmem:[#allocation2 + $0x48] sm:$0xff] }
 0x297   : > { %1838 = vmatprep.subr.bf16.mxu0 %v3335_v38 }
 0x298   : > { %3024 = vmatpush3.bf16.msra.mxu1 %v1176_v31  ;;  %v3323_v31 = vld [vmem:[#allocation9 + $0x50] ss:$8 sps:$4 sm:$0xff]  }
 0x29a   : > { %1839 = vmatpush1.bf16.msra.mxu0 %v3333_v27 }
 0x29b   : > { %1321 = vmatmul.mubr.bf16.vlgmr.msra.gmra.mxu1 %v3306_v22  ;;  %1840 = vmatprep.subr.bf16.mxu0 %v3338_v42 }
 0x29c   : > { %1328 = vmatprep.mubr.bf16.mxu1 %v3309_v23  ;;  %v3503_v23 = vld [vmem:[#allocation2 + $0x68] sm:$0xff] }
 0x29e   : > { %1841 = vmatpush1.bf16.msra.mxu0 %v3336_v44 }
 0x29f   : > { %1842 = vmatprep.subr.bf16.mxu0 %v3341_v45 }
 0x2a2   : > { %1843 = vmatpush1.bf16.msra.mxu0 %v3339_v47 }
 0x2a3   : > { %1329 = vmatmul.mubr.bf16.gmra.mxu1 %v3311_v28 }
 0x2a4   : > { %1336 = vmatprep.mubr.bf16.mxu1 %v3312_v12 }
 0x2ab   : > { %1337 = vmatmul.mubr.bf16.gmra.mxu1 %v3314_v29 }
 0x2ac   : > { %1344 = vmatprep.mubr.bf16.mxu1 %v3315_v39 }
 0x2b3   : > { %1345 = vmatmul.mubr.bf16.gmra.mxu1 %v3317_v24 }
 0x2b4   : > { %1352 = vmatprep.mubr.bf16.mxu1 %v3318_v30  ;;  %v3504_v30 = vld [vmem:[#allocation2 + $0x8] sm:$0xff] }
 0x2bb   : > { %1353 = vmatmul.mubr.bf16.gmra.mxu1 %v3320_v26 }
 0x2bc   : > { %1360 = vmatprep.mubr.bf16.mxu1 %v3321_v46 }
 0x2c3   : > { %1361 = vmatmul.mubr.bf16.gmra.mxu1 %v3323_v31  ;;  %v3342_v31 = vld [vmem:[%s4165_s0 + $0x30] ss:$8 sps:$4 sm:$0xff]  }
 0x2c4   : > { %1368 = vmatprep.mubr.bf16.mxu1 %v3324_v34  ;;  %v3344_v34 = vld [vmem:[%s4165_s0 + $0x34] ss:$8 sps:$4 sm:$0xff]  }
 0x2c5   : > { %1844 = vmatprep.subr.bf16.mxu0 %v3344_v34 }
 0x2c6   : > { %1845 = vmatpush1.bf16.msra.mxu0 %v3342_v31 }
 0x2cb   : > { %1369 = vmatmul.mubr.bf16.gmra.mxu1 %v3326_v35 }
 0x2cc   : > { %1376 = vmatprep.mubr.bf16.mxu1 %v3327_v36 }
 0x2d3   : > { %1377 = vmatmul.mubr.bf16.gmra.mxu1 %v3329_v11 }
 0x35b   : > { %v3025_v49 = vpop.f32.mrf.mxu1 }
 0x35d   : > { %v3026_v52 = vpop.f32.mrf.mxu1 }
 0x35e   : > { %v3027_v53 = vadd.f32 %v3026_v52, %v3025_v49  ;;  %v3345_v49 = vld [vmem:[%s4165_s0 + $0x20] ss:$8 sps:$4 sm:$0xff]   ;;  %v3347_v52 = vld [vmem:[%s4165_s0 + $0x24] ss:$8 sps:$4 sm:$0xff]  }
 0x35f   : > { %v3028_v54 = vpop.f32.mrf.mxu1  ;;  %1846 = vmatprep.subr.bf16.mxu0 %v3347_v52 }
 0x360   : > { %v4446_v20 = vadd.f32 %v3498_v55, %v3027_v53  ;;  %1847 = vmatpush1.bf16.msra.mxu0 %v3345_v49 }
 0x361   : > { %v3029_v18 = vpop.f32.mrf.mxu1 }
 0x362   : > { %v3030_v21 = vadd.f32 %v3029_v18, %v3028_v54  ;;  %1469 = vadd.xlane.f32.xlu0 %v4446_v20  ;;  %v1501_v6 = vmul.f32 %v4446_v20, %v4446_v20 }
 0x363   : > { %v3031_v25 = vpop.f32.mrf.mxu1 }
 0x364   : > { %v4449_v63 = vadd.f32 %v3499_v60, %v3030_v21 }
 0x365   : > { %v3032_v32 = vpop.f32.mrf.mxu1 }
 0x366   : > { %v3033_v3 = vadd.f32 %v3032_v32, %v3031_v25  ;;  %1471 = vadd.xlane.f32.xlu1 %v4449_v63  ;;  %1517 = vadd.xlane.f32.xlu0 %v1501_v6  ;;  %v1502_v13 = vmul.f32 %v4449_v63, %v4449_v63 }
 0x367   : > { %v3034_v8 = vpop.f32.mrf.mxu1 }
 0x368   : > { %v4454_v33 = vadd.f32 %v3500_v0, %v3033_v3  ;;  %v3350_v3 = vld [vmem:[%s4165_s0 + $0x14] ss:$8 sps:$4 sm:$0xff]  }
 0x369   : > { %v3035_v1 = vpop.f32.mrf.mxu1  ;;  %1848 = vmatprep.subr.bf16.mxu0 %v3350_v3 }
 0x36a   : > { %5362 = vst [vmem:[#allocation35_spill] sm:$0xff] %v4454_v33  ;;  %v3036_v4 = vadd.f32 %v3035_v1, %v3034_v8  ;;  %1519 = vadd.xlane.f32.xlu1 %v1502_v13  ;;  %1473 = vadd.xlane.f32.xlu0 %v4454_v33  ;;  %v1503_v10 = vmul.f32 %v4454_v33, %v4454_v33 }
 0x36b   : > { %v3037_v5 = vpop.f32.mrf.mxu1 }
 0x36c   : > { %v4459_v9 = vadd.f32 %v3501_v7, %v3036_v4  ;;  %v3351_v7 = vld [vmem:[%s4165_s0] ss:$8 sps:$4 sm:$0xff]  }
 0x36d   : > { %v3038_v43 = vpop.f32.mrf.mxu1 }
 0x36e   : > { %5363 = vst [vmem:[#allocation36_spill] sm:$0xff] %v4459_v9  ;;  %v3039_v16 = vadd.f32 %v3038_v43, %v3037_v5  ;;  %1475 = vadd.xlane.f32.xlu1 %v4459_v9  ;;  %1521 = vadd.xlane.f32.xlu0 %v1503_v10  ;;  %v1504_v15 = vmul.f32 %v4459_v9, %v4459_v9 }
 0x36f   : > { %v3040_v2 = vpop.f32.mrf.mxu1 }
 0x370   : > { %v4464_v59 = vadd.f32 %v3502_v14, %v3039_v16 }
 0x371   : > { %v3041_v19 = vpop.f32.mrf.mxu1 }
 0x372   : > { %5364 = vst [vmem:[#allocation37_spill] sm:$0xff] %v4464_v59  ;;  %v3042_v17 = vadd.f32 %v3041_v19, %v3040_v2  ;;  %1523 = vadd.xlane.f32.xlu1 %v1504_v15  ;;  %1477 = vadd.xlane.f32.xlu0 %v4464_v59  ;;  %v1505_v12 = vmul.f32 %v4464_v59, %v4464_v59 }
 0x373   : > { %v3043_v22 = vpop.f32.mrf.mxu1 }
 0x374   : > { %v4469_v28 = vadd.f32 %v3503_v23, %v3042_v17 }
 0x375   : > { %v3044_v29 = vpop.f32.mrf.mxu1 }
 0x376   : > { %5365 = vst [vmem:[#allocation38_spill] sm:$0xff] %v4469_v28  ;;  %v3045_v39 = vadd.f32 %v3044_v29, %v3043_v22  ;;  %1479 = vadd.xlane.f32.xlu1 %v4469_v28  ;;  %1525 = vadd.xlane.f32.xlu0 %v1505_v12  ;;  %v1506_v46 = vmul.f32 %v4469_v28, %v4469_v28 }
 0x377   : > { %v3046_v24 = vpop.f32.mrf.mxu1 }
 0x378   : > { %v4474_v26 = vadd.f32 %v3504_v30, %v3045_v39 }
 0x379   : > { %v3047_v35 = vpop.f32.mrf.mxu1 }
 0x37a   : > { %5366 = vst [vmem:[#allocation39_spill] sm:$0xff] %v4474_v26  ;;  %v3048_v36 = vadd.f32 %v3047_v35, %v3046_v24  ;;  %1527 = vadd.xlane.f32.xlu1 %v1506_v46  ;;  %1481 = vadd.xlane.f32.xlu0 %v4474_v26  ;;  %v1507_v38 = vmul.f32 %v4474_v26, %v4474_v26 }
 0x37b   : > { %v3049_v11 = vpop.f32.mrf.mxu1 }
 0x37c   : > { %v4481_v50 = vadd.f32 %v3505_v37, %v3048_v36 }
 0x37d   : > { %v3050_v27 = vpop.f32.mrf.mxu1 }
 0x37e   : > { %5367 = vst [vmem:[#allocation40_spill] sm:$0xff] %v4481_v50  ;;  %v3051_v42 = vadd.f32 %v3050_v27, %v3049_v11  ;;  %1483 = vadd.xlane.f32.xlu1 %v4481_v50  ;;  %1529 = vadd.xlane.f32.xlu0 %v1507_v38  ;;  %v1508_v47 = vmul.f32 %v4481_v50, %v4481_v50 }
 0x37f   : > { %v3052_v44 = vpop.f32.mrf.mxu1 }
 0x380   : > { %v4487_v45 = vadd.f32 %v3051_v42, %v4263_v40 }
 0x381   : > { %v3053_v53 = vpop.f32.mrf.mxu1 }
 0x382   : > { %5368 = vst [vmem:[#allocation41_spill] sm:$0xff] %v4487_v45  ;;  %v3054_v54 = vadd.f32 %v3053_v53, %v3052_v44  ;;  %1531 = vadd.xlane.f32.xlu1 %v1508_v47  ;;  %1485 = vadd.xlane.f32.xlu0 %v4487_v45  ;;  %v1509_v40 = vmul.f32 %v4487_v45, %v4487_v45 }
 0x383   : > { %v3055_v55 = vpop.f32.mrf.mxu1 }
 0x384   : > { %v4495_v18 = vadd.f32 %v3054_v54, %v4265_v41  ;;  %v3348_v41 = vld [vmem:[%s4165_s0 + $0x10] ss:$8 sps:$4 sm:$0xff]  }
 0x385   : > { %v3056_v21 = vpop.f32.mrf.mxu1  ;;  %1849 = vmatpush1.bf16.msra.mxu0 %v3348_v41 }
 0x386   : > { %5369 = vst [vmem:[#allocation42_spill] sm:$0xff] %v4495_v18  ;;  %v3057_v25 = vadd.f32 %v3056_v21, %v3055_v55  ;;  %1487 = vadd.xlane.f32.xlu1 %v4495_v18  ;;  %1533 = vadd.xlane.f32.xlu0 %v1509_v40  ;;  %v1510_v32 = vmul.f32 %v4495_v18, %v4495_v18 }
 0x387   : > { %v3058_v60 = vpop.f32.mrf.mxu1 }
 0x388   : > { %v4501_v6 = vadd.f32 %v3057_v25, %v4273_v48  ;;  %v3353_v48 = vld [vmem:[%s4165_s0 + $0x4] ss:$8 sps:$4 sm:$0xff]  }
 0x389   : > { %v3059_v8 = vpop.f32.mrf.mxu1  ;;  %1850 = vmatprep.subr.bf16.mxu0 %v3353_v48 }
 0x38a   : > { %5370 = vst [vmem:[#allocation43_spill] sm:$0xff] %v4501_v6  ;;  %v3060_v0 = vadd.f32 %v3059_v8, %v3058_v60  ;;  %1535 = vadd.xlane.f32.xlu1 %v1510_v32  ;;  %1489 = vadd.xlane.f32.xlu0 %v4501_v6  ;;  %v1511_v4 = vmul.f32 %v4501_v6, %v4501_v6 }
 0x38b   : > { %v3061_v13 = vpop.f32.mrf.mxu1  ;;  %1851 = vmatpush1.bf16.msra.mxu0 %v3351_v7 }
 0x38c   : > { %v4509_v1 = vadd.f32 %v3060_v0, %v4275_v51 }
 0x38d   : > { %v3062_v5 = vpop.f32.mrf.mxu1 }
 0x38e   : > { %5371 = vst [vmem:[#allocation44_spill] sm:$0xff] %v4509_v1  ;;  %v3063_v10 = vadd.f32 %v3062_v5, %v3061_v13  ;;  %1491 = vadd.xlane.f32.xlu1 %v4509_v1  ;;  %1537 = vadd.xlane.f32.xlu0 %v1511_v4  ;;  %v1512_v51 = vmul.f32 %v4509_v1, %v4509_v1 }
 0x38f   : > { %v3064_v43 = vpop.f32.mrf.mxu1 }
 0x390   : > { %v4517_v16 = vadd.f32 %v3063_v10, %v4283_v56 }
 0x391   : > { %v3065_v2 = vpop.f32.mrf.mxu1 }
 0x392   : > { %5372 = vst [vmem:[#allocation45_spill] sm:$0xff] %v4517_v16  ;;  %v3066_v14 = vadd.f32 %v3065_v2, %v3064_v43  ;;  %1539 = vadd.xlane.f32.xlu1 %v1512_v51  ;;  %1493 = vadd.xlane.f32.xlu0 %v4517_v16  ;;  %v1513_v17 = vmul.f32 %v4517_v16, %v4517_v16 }
 0x393   : > { %v3067_v15 = vpop.f32.mrf.mxu1 }
 0x394   : > { %v4523_v19 = vadd.f32 %v3066_v14, %v4286_v58 }
 0x395   : > { %v3068_v22 = vpop.f32.mrf.mxu1 }
 0x396   : > { %5373 = vst [vmem:[#allocation46_spill] sm:$0xff] %v4523_v19  ;;  %v3069_v23 = vadd.f32 %v3068_v22, %v3067_v15  ;;  %1495 = vadd.xlane.f32.xlu1 %v4523_v19  ;;  %1541 = vadd.xlane.f32.xlu0 %v1513_v17  ;;  %v1514_v29 = vmul.f32 %v4523_v19, %v4523_v19 }
 0x397   : > { %v3070_v56 = vpop.f32.mrf.mxu1 }
 0x398   : > { %v4529_v12 = vadd.f32 %v3069_v23, %v4294_v61 }
 0x399   : > { %v3071_v39 = vpop.f32.mrf.mxu1 }
 0x39a   : > { %5374 = vst [vmem:[#allocation47_spill] sm:$0xff] %v4529_v12  ;;  %v3072_v24 = vadd.f32 %v3071_v39, %v3070_v56  ;;  %1543 = vadd.xlane.f32.xlu1 %v1514_v29  ;;  %1497 = vadd.xlane.f32.xlu0 %v4529_v12  ;;  %v1515_v30 = vmul.f32 %v4529_v12, %v4529_v12 }
 0x39c   : > { %v4535_v58 = vadd.f32 %v3072_v24, %v4296_v62 }
 0x39e   : > { %5375 = vst [vmem:[#allocation48_spill] sm:$0xff] %v4535_v58  ;;  %1499 = vadd.xlane.f32.xlu1 %v4535_v58  ;;  %1545 = vadd.xlane.f32.xlu0 %v1515_v30  ;;  %v1516_v61 = vmul.f32 %v4535_v58, %v4535_v58 }
 0x3a2   : > { %1547 = vadd.xlane.f32.xlu1 %v1516_v61 }
 0x3eb   : > { %v1470_v46 = vpop.xlane.xlu0 %1469 }
 0x3ec   : > { %v1549_v31 = vmul.f32 0.0078125, %v1470_v46 }
 0x3ee   : > { %v1581_v36 = vmul.f32 %v1549_v31, %v1549_v31  ;;  %v1629_v46 = vsub.f32 %v4446_v20, %v1549_v31 }
 0x3ef   : > { %v1472_v34 = vpop.xlane.xlu1 %1471  ;;  %v1518_v35 = vpop.xlane.xlu0 %1517 }
 0x3f0   : > { %v4542_v11 = vmul.f32 0.0078125, %v1472_v34  ;;  %v1565_v37 = vmul.f32 0.0078125, %v1518_v35 }
 0x3f2   : > { %v1597_v62 = vsub.f32 %v1565_v37, %v1581_v36  ;;  %v1582_v42 = vmul.f32 %v4542_v11, %v4542_v11 }
 0x3f3   : > { %v1520_v38 = vpop.xlane.xlu1 %1519  ;;  %v1474_v27 = vpop.xlane.xlu0 %1473 }
 0x3f4   : > { %v1613_v44 = vmax.f32 %v1597_v62, 0.0  ;;  %v1566_v47 = vmul.f32 0.0078125, %v1520_v38  ;;  %v4546_v49 = vmul.f32 0.0078125, %v1474_v27 }
 0x3f6   : > { %v1645_v52 = vadd.f32 1e-05, %v1613_v44  ;;  %v1598_v53 = vsub.f32 %v1566_v47, %v1582_v42  ;;  %v1583_v54 = vmul.f32 %v4546_v49, %v4546_v49  ;;  %v4574_v47 = vld [vmem:[%s616_s1] ss:$0 sm:$0xff] }
 0x3f7   : > { %v1476_v55 = vpop.xlane.xlu1 %1475  ;;  %v1522_v40 = vpop.xlane.xlu0 %1521 }
 0x3f8   : > { %3402 = vrsqrt.f32 %v1645_v52  ;;  %v1614_v21 = vmax.f32 %v1598_v53, 0.0  ;;  %v4550_v25 = vmul.f32 0.0078125, %v1476_v55  ;;  %v1567_v60 = vmul.f32 0.0078125, %v1522_v40 }
 0x3f9   : > { %v1630_v52 = vsub.f32 %v4449_v63, %v4542_v11  ;;  %v4588_v11 = vld [vmem:[%s619_s2] ss:$0 sm:$0xff] }
 0x3fa   : > { %v1646_v32 = vadd.f32 1e-05, %v1614_v21  ;;  %v1599_v41 = vsub.f32 %v1567_v60, %v1583_v54  ;;  %v1584_v3 = vmul.f32 %v4550_v25, %v4550_v25 }
 0x3fb   : > { %v1524_v8 = vpop.xlane.xlu1 %1523  ;;  %v1478_v0 = vpop.xlane.xlu0 %1477 }
 0x3fc   : > { %3404 = vrsqrt.f32 %v1646_v32  ;;  %v1615_v13 = vmax.f32 %v1599_v41, 0.0  ;;  %v1568_v4 = vmul.f32 0.0078125, %v1524_v8  ;;  %v4554_v48 = vmul.f32 0.0078125, %v1478_v0 }
 0x3fe   : > { %v1647_v5 = vadd.f32 1e-05, %v1615_v13  ;;  %v1600_v7 = vsub.f32 %v1568_v4, %v1584_v3  ;;  %v1585_v10 = vmul.f32 %v4554_v48, %v4554_v48  ;;  %v1631_v13 = vsub.f32 %v4454_v33, %v4546_v49 }
 0x3ff   : > { %v1480_v43 = vpop.xlane.xlu1 %1479  ;;  %v1526_v51 = vpop.xlane.xlu0 %1525 }
 0x400   : > { %3406 = vrsqrt.f32 %v1647_v5  ;;  %v1616_v2 = vmax.f32 %v1600_v7, 0.0  ;;  %v4558_v14 = vmul.f32 0.0078125, %v1480_v43  ;;  %v1569_v15 = vmul.f32 0.0078125, %v1526_v51 }
 0x402   : > { %v1648_v17 = vadd.f32 1e-05, %v1616_v2  ;;  %v1601_v22 = vsub.f32 %v1569_v15, %v1585_v10  ;;  %v1586_v23 = vmul.f32 %v4558_v14, %v4558_v14 }
 0x403   : > { %v1528_v56 = vpop.xlane.xlu1 %1527  ;;  %v1482_v29 = vpop.xlane.xlu0 %1481 }
 0x404   : > { %3408 = vrsqrt.f32 %v1648_v17  ;;  %v1617_v39 = vmax.f32 %v1601_v22, 0.0  ;;  %v1570_v24 = vmul.f32 0.0078125, %v1528_v56  ;;  %v4562_v30 = vmul.f32 0.0078125, %v1482_v29 }
 0x405   : > { %v3403_v61 = vpop.eup %3402  ;;  %v1632_v29 = vsub.f32 %v4459_v9, %v4550_v25 }
 0x406   : > { %v1649_v34 = vadd.f32 1e-05, %v1617_v39  ;;  %v1602_v35 = vsub.f32 %v1570_v24, %v1586_v23  ;;  %v1587_v36 = vmul.f32 %v4562_v30, %v4562_v30  ;;  %v1677_v38 = vmul.f32 %v3403_v61, %v1629_v46 }
 0x407   : > { %v1484_v37 = vpop.xlane.xlu1 %1483  ;;  %v1530_v62 = vpop.xlane.xlu0 %1529 }
 0x408   : > { %3410 = vrsqrt.f32 %v1649_v34  ;;  %v1618_v27 = vmax.f32 %v1602_v35, 0.0  ;;  %v4567_v42 = vmul.f32 0.0078125, %v1484_v37  ;;  %v1571_v44 = vmul.f32 0.0078125, %v1530_v62 }
 0x409   : > { %v3405_v31 = vpop.eup %3404  ;;  %v1699_v32 = vmul.f32 %v4574_v47, %v1677_v38 }
 0x40a   : > { %v1650_v53 = vadd.f32 1e-05, %v1618_v27  ;;  %v1603_v54 = vsub.f32 %v1571_v44, %v1587_v36  ;;  %v1588_v55 = vmul.f32 %v4567_v42, %v4567_v42  ;;  %v1678_v60 = vmul.f32 %v3405_v31, %v1630_v52 }
 0x40b   : > { %v1532_v40 = vpop.xlane.xlu1 %1531  ;;  %v1486_v21 = vpop.xlane.xlu0 %1485  ;;  %v1721_v2 = vadd.f32 %v4588_v11, %v1699_v32  ;;  %v1633_v44 = vsub.f32 %v4464_v59, %v4554_v48 }
 0x40c   : > { %3412 = vrsqrt.f32 %v1650_v53  ;;  %v1619_v41 = vmax.f32 %v1603_v54, 0.0  ;;  %v1572_v3 = vmul.f32 0.0078125, %v1532_v40  ;;  %v4581_v8 = vmul.f32 0.0078125, %v1486_v21 }
 0x40d   : > { %v3407_v0 = vpop.eup %3406  ;;  %v1700_v4 = vmul.f32 %v4574_v47, %v1678_v60 }
 0x40e   : > { %v1651_v5 = vadd.f32 1e-05, %v1619_v41  ;;  %v1604_v7 = vsub.f32 %v1572_v3, %v1588_v55  ;;  %v1589_v10 = vmul.f32 %v4581_v8, %v4581_v8  ;;  %v1679_v17 = vmul.f32 %v3407_v0, %v1631_v13 }
 0x40f   : > { %v1488_v43 = vpop.xlane.xlu1 %1487  ;;  %v1534_v51 = vpop.xlane.xlu0 %1533  ;;  %v1722_v15 = vadd.f32 %v4588_v11, %v1700_v4  ;;  %v1634_v13 = vsub.f32 %v4469_v28, %v4558_v14 }
 0x410   : > { %3414 = vrsqrt.f32 %v1651_v5  ;;  %v1620_v22 = vmax.f32 %v1604_v7, 0.0  ;;  %v4597_v23 = vmul.f32 0.0078125, %v1488_v43  ;;  %v1573_v56 = vmul.f32 0.0078125, %v1534_v51 }
 0x411   : > { %v3409_v49 = vpop.eup %3408  ;;  %v1737_v39 = vpack.c.bf16 %v1722_v15, %v1721_v2  ;;  %v1701_v37 = vmul.f32 %v4574_v47, %v1679_v17 }
 0x412   : > { %v1652_v24 = vadd.f32 1e-05, %v1620_v22  ;;  %v1605_v61 = vsub.f32 %v1573_v56, %v1589_v10  ;;  %v1590_v46 = vmul.f32 %v4597_v23, %v4597_v23  ;;  %v1680_v36 = vmul.f32 %v3409_v49, %v1632_v29 }
 0x413   : > { %1869 = vmatmul.mubr.bf16.vlgmr.msra.gmra.mxu0 %v1737_v39  ;;  %v1536_v34 = vpop.xlane.xlu1 %1535  ;;  %v1490_v35 = vpop.xlane.xlu0 %1489  ;;  %v1723_v21 = vadd.f32 %v4588_v11, %v1701_v37  ;;  %v1635_v49 = vsub.f32 %v4474_v26, %v4562_v30 }
 0x414   : > { %3416 = vrsqrt.f32 %v1652_v24  ;;  %v1621_v62 = vmax.f32 %v1605_v61, 0.0  ;;  %v1574_v38 = vmul.f32 0.0078125, %v1536_v34  ;;  %v4604_v27 = vmul.f32 0.0078125, %v1490_v35  ;;  %1878 = vmatprep.mubr.bf16.mxu0 %v3822_v57 }
 0x415   : > { %v3411_v25 = vpop.eup %3410  ;;  %v1702_v31 = vmul.f32 %v4574_v47, %v1680_v36 }
 0x416   : > { %v1653_v52 = vadd.f32 1e-05, %v1621_v62  ;;  %v1606_v53 = vsub.f32 %v1574_v38, %v1590_v46  ;;  %v1591_v54 = vmul.f32 %v4604_v27, %v4604_v27  ;;  %v1681_v32 = vmul.f32 %v3411_v25, %v1633_v44 }
 0x417   : > { %v1492_v55 = vpop.xlane.xlu1 %1491  ;;  %v1538_v40 = vpop.xlane.xlu0 %1537  ;;  %v1724_v60 = vadd.f32 %v4588_v11, %v1702_v31  ;;  %v1636_v44 = vsub.f32 %v4481_v50, %v4567_v42 }
 0x418   : > { %3418 = vrsqrt.f32 %v1653_v52  ;;  %v1622_v41 = vmax.f32 %v1606_v53, 0.0  ;;  %v4614_v3 = vmul.f32 0.0078125, %v1492_v55  ;;  %v1575_v0 = vmul.f32 0.0078125, %v1538_v40 }
 0x419   : > { %v3413_v48 = vpop.eup %3412  ;;  %v1738_v4 = vpack.c.bf16 %v1724_v60, %v1723_v21  ;;  %v1703_v15 = vmul.f32 %v4574_v47, %v1681_v32 }
 0x41a   : > { %v1654_v5 = vadd.f32 1e-05, %v1622_v41  ;;  %v1607_v7 = vsub.f32 %v1575_v0, %v1591_v54  ;;  %v1592_v10 = vmul.f32 %v4614_v3, %v4614_v3  ;;  %v1682_v2 = vmul.f32 %v3413_v48, %v1634_v13 }
 0x41b   : > { %1879 = vmatmul.mubr.bf16.gmra.mxu0 %v1738_v4  ;;  %v1540_v43 = vpop.xlane.xlu1 %1539  ;;  %v1494_v51 = vpop.xlane.xlu0 %1493  ;;  %v1725_v35 = vadd.f32 %v4588_v11, %v1703_v15  ;;  %v1637_v48 = vsub.f32 %v4487_v45, %v4581_v8  ;;  %v1638_v8 = vsub.f32 %v4495_v18, %v4597_v23 }
 0x41c   : > { %3420 = vrsqrt.f32 %v1654_v5  ;;  %v1623_v17 = vmax.f32 %v1607_v7, 0.0  ;;  %v1576_v22 = vmul.f32 0.0078125, %v1540_v43  ;;  %v4621_v56 = vmul.f32 0.0078125, %v1494_v51  ;;  %1888 = vmatprep.mubr.bf16.mxu0 %v3822_v57 }
 0x41d   : > { %v3415_v14 = vpop.eup %3414  ;;  %v1704_v29 = vmul.f32 %v4574_v47, %v1682_v2 }
 0x41e   : > { %v1655_v39 = vadd.f32 1e-05, %v1623_v17  ;;  %v1608_v24 = vsub.f32 %v1576_v22, %v1592_v10  ;;  %v1593_v61 = vmul.f32 %v4621_v56, %v4621_v56  ;;  %v1683_v37 = vmul.f32 %v3415_v14, %v1635_v49 }
 0x41f   : > { %v1496_v46 = vpop.xlane.xlu1 %1495  ;;  %v1542_v34 = vpop.xlane.xlu0 %1541  ;;  %v1726_v36 = vadd.f32 %v4588_v11, %v1704_v29 }
 0x420   : > { %3422 = vrsqrt.f32 %v1655_v39  ;;  %v1624_v62 = vmax.f32 %v1608_v24, 0.0  ;;  %v4631_v38 = vmul.f32 0.0078125, %v1496_v46  ;;  %v1577_v25 = vmul.f32 0.0078125, %v1542_v34 }
 0x421   : > { %v3417_v30 = vpop.eup %3416  ;;  %v1739_v31 = vpack.c.bf16 %v1726_v36, %v1725_v35  ;;  %v1705_v60 = vmul.f32 %v4574_v47, %v1683_v37 }
 0x422   : > { %v1656_v52 = vadd.f32 1e-05, %v1624_v62  ;;  %v1609_v53 = vsub.f32 %v1577_v25, %v1593_v61  ;;  %v1594_v54 = vmul.f32 %v4631_v38, %v4631_v38  ;;  %v1684_v21 = vmul.f32 %v3417_v30, %v1636_v44 }
 0x423   : > { %1889 = vmatmul.mubr.bf16.gmra.mxu0 %v1739_v31  ;;  %v1544_v55 = vpop.xlane.xlu1 %1543  ;;  %v1498_v40 = vpop.xlane.xlu0 %1497  ;;  %v1727_v51 = vadd.f32 %v4588_v11, %v1705_v60  ;;  %v1639_v61 = vsub.f32 %v4501_v6, %v4604_v27 }
 0x424   : > { %3424 = vrsqrt.f32 %v1656_v52  ;;  %v1625_v32 = vmax.f32 %v1609_v53, 0.0  ;;  %v1578_v41 = vmul.f32 0.0078125, %v1544_v55  ;;  %v4638_v0 = vmul.f32 0.0078125, %v1498_v40  ;;  %1898 = vmatprep.mubr.bf16.mxu0 %v3822_v57 }
 0x425   : > { %v3419_v42 = vpop.eup %3418  ;;  %v1706_v13 = vmul.f32 %v4574_v47, %v1684_v21  ;;  %v1640_v53 = vsub.f32 %v4509_v1, %v4614_v3 }
 0x426   : > { %v1657_v4 = vadd.f32 1e-05, %v1625_v32  ;;  %v1610_v5 = vsub.f32 %v1578_v41, %v1594_v54  ;;  %v1595_v7 = vmul.f32 %v4638_v0, %v4638_v0  ;;  %v1685_v15 = vmul.f32 %v3419_v42, %v1637_v48 }
 0x427   : > { %v1500_v10 = vpop.xlane.xlu1 %1499  ;;  %v1546_v43 = vpop.xlane.xlu0 %1545  ;;  %v1728_v2 = vadd.f32 %v4588_v11, %v1706_v13  ;;  %v1641_v41 = vsub.f32 %v4517_v16, %v4621_v56  ;;  %v1643_v56 = vsub.f32 %v4529_v12, %v4638_v0 }
 0x428   : > { %3426 = vrsqrt.f32 %v1657_v4  ;;  %v1626_v17 = vmax.f32 %v1610_v5, 0.0  ;;  %v1564_v22 = vmul.f32 0.0078125, %v1500_v10  ;;  %v1579_v14 = vmul.f32 0.0078125, %v1546_v43 }
 0x429   : > { %v3421_v49 = vpop.eup %3420  ;;  %v1740_v29 = vpack.c.bf16 %v1728_v2, %v1727_v51  ;;  %v1707_v35 = vmul.f32 %v4574_v47, %v1685_v15  ;;  %v1642_v5 = vsub.f32 %v4523_v19, %v4631_v38 }
 0x42a   : > { %v1658_v39 = vadd.f32 1e-05, %v1626_v17  ;;  %v1611_v24 = vsub.f32 %v1579_v14, %v1595_v7  ;;  %v1686_v34 = vmul.f32 %v3421_v49, %v1638_v8  ;;  %v1596_v36 = vmul.f32 %v1564_v22, %v1564_v22 }
 0x42b   : > { %1899 = vmatmul.mubr.bf16.gmra.mxu0 %v1740_v29  ;;  %v1548_v46 = vpop.xlane.xlu1 %1547  ;;  %v1729_v52 = vadd.f32 %v4588_v11, %v1707_v35  ;;  %v1644_v49 = vsub.f32 %v4535_v58, %v1564_v22  ;;  %v3355_v35 = vld [vmem:[%s4171_s29 + $0x38] sm:$0xff]  }
 0x42c   : > { %3428 = vrsqrt.f32 %v1658_v39  ;;  %v1627_v37 = vmax.f32 %v1611_v24, 0.0  ;;  %v1580_v62 = vmul.f32 0.0078125, %v1548_v46  ;;  %1908 = vmatprep.mubr.bf16.mxu0 %v3822_v57  ;;  %v1708_v23 = vmul.f32 %v4574_v47, %v1686_v34  ;;  %v3354_v34 = vld [vmem:[%s4171_s29 + $0x78] sm:$0xff]  }
 0x42d   : > { %v3423_v25 = vpop.eup %3422  ;;  %3073 = vmatprep.subr.bf16.mxu1 %v3354_v34 }
 0x42e   : > { %v1659_v30 = vadd.f32 1e-05, %v1627_v37  ;;  %v1612_v44 = vsub.f32 %v1580_v62, %v1596_v36  ;;  %v1687_v31 = vmul.f32 %v3423_v25, %v1639_v61  ;;  %v1730_v27 = vadd.f32 %v4588_v11, %v1708_v23  ;;  %3074 = vmatpush3.bf16.msra.mxu1 %v3355_v35  ;;  %v3356_v36 = vld [vmem:[%s4171_s29 + $0x70] sm:$0xff]   ;;  %v3361_v62 = vld [vmem:[%s4171_s29 + $0x20] sm:$0xff]   ;;  %v3362_v25 = vld [vmem:[%s4171_s29 + $0x58] sm:$0xff]  }
 0x42f   : > { %v3357_v37 = vld [vmem:[%s4171_s29 + $0x30] sm:$0xff]   ;;  %3075 = vmatprep.subr.bf16.mxu1 %v3356_v36  ;;  %v3363_v23 = vld [vmem:[%s4171_s29 + $0x18] sm:$0xff]  }
 0x430   : > { %3430 = vrsqrt.f32 %v1659_v30  ;;  %v1628_v54 = vmax.f32 %v1612_v44, 0.0  ;;  %v1741_v40 = vpack.c.bf16 %v1730_v27, %v1729_v52  ;;  %v1709_v32 = vmul.f32 %v4574_v47, %v1687_v31  ;;  %v3364_v30 = vld [vmem:[%s4171_s29 + $0x50] sm:$0xff]   ;;  %v3366_v31 = vld [vmem:[%s4171_s29 + $0x48] sm:$0xff]   ;;  %v3368_v27 = vld [vmem:[%s4171_s29 + $0x40] sm:$0xff]  }
 0x431   : > { %v3425_v55 = vpop.eup %3424  ;;  %v3365_v44 = vld [vmem:[%s4171_s29 + $0x10] sm:$0xff]   ;;  %v3367_v52 = vld [vmem:[%s4171_s29 + $0x8] sm:$0xff]  }
 0x432   : > { %v1660_v21 = vadd.f32 1e-05, %v1628_v54  ;;  %v1688_v60 = vmul.f32 %v3425_v55, %v1640_v53  ;;  %v1731_v3 = vadd.f32 %v4588_v11, %v1709_v32  ;;  %3076 = vmatpush3.bf16.msra.mxu1 %v3357_v37  ;;  %v3369_v53 = vld [vmem:[%s4171_s29] sm:$0xff]   ;;  %v1746_v54 = vlaneseq }
 0x433   : > { %1909 = vmatmul.mubr.bf16.gmra.mxu0 %v1741_v40 }
 0x434   : > { %3432 = vrsqrt.f32 %v1660_v21  ;;  %1918 = vmatprep.mubr.bf16.mxu0 %v3822_v57  ;;  %v1710_v42 = vmul.f32 %v4574_v47, %v1688_v60  ;;  %v1747_v55 = vshrl.u32 %v1746_v54, 7  ;;  %v1419_v21 = vld [vmem:[%s4197_s9] sm:$0x3] }
 0x435   : > { %v3427_v48 = vpop.eup %3426 }
 0x436   : > { %v1732_v13 = vadd.f32 %v4588_v11, %v1710_v42  ;;  %v1689_v4 = vmul.f32 %v3427_v48, %v1641_v41  ;;  %v1748_v40 = vsub.s32 0, %v1747_v55  ;;  %v1752_v32 = vsub.s32 1, %v1747_v55 }
 0x438   : > { %v1742_v7 = vpack.c.bf16 %v1732_v13, %v1731_v3  ;;  %v1711_v51 = vmul.f32 %v4574_v47, %v1689_v4  ;;  %v4698_v41 = vrot.slane %v1419_v21, %v1748_v40  ;;  %v4700_v48 = vrot.slane %v1419_v21, %v1752_v32 }
 0x439   : > { %v3429_v10 = vpop.eup %3428 }
 0x43a   : > { %v1690_v43 = vmul.f32 %v3429_v10, %v1642_v5  ;;  %v1733_v17 = vadd.f32 %v4588_v11, %v1711_v51 }
 0x43b   : > { %1919 = vmatmul.mubr.bf16.gmra.mxu0 %v1742_v7 }
 0x43c   : > { %1928 = vmatprep.mubr.bf16.mxu0 %v3822_v57  ;;  %v1712_v2 = vmul.f32 %v4574_v47, %v1690_v43 }
 0x43d   : > { %v3431_v15 = vpop.eup %3430 }
 0x43e   : > { %v1734_v14 = vadd.f32 %v4588_v11, %v1712_v2  ;;  %v1691_v38 = vmul.f32 %v3431_v15, %v1643_v56 }
 0x440   : > { %v1743_v8 = vpack.c.bf16 %v1734_v14, %v1733_v17  ;;  %v1713_v0 = vmul.f32 %v4574_v47, %v1691_v38 }
 0x441   : > { %v3433_v29 = vpop.eup %3432 }
 0x442   : > { %v1692_v39 = vmul.f32 %v3433_v29, %v1644_v49  ;;  %v1735_v61 = vadd.f32 %v4588_v11, %v1713_v0 }
 0x443   : > { %1929 = vmatmul.mubr.bf16.gmra.mxu0 %v1743_v8 }
 0x444   : > { %1938 = vmatprep.mubr.bf16.mxu0 %v3822_v57  ;;  %v1714_v24 = vmul.f32 %v4574_v47, %v1692_v39  ;;  %v3358_v57 = vld [vmem:[%s4171_s29 + $0x68] sm:$0xff]  }
 0x445   : > { %v3359_v47 = vld [vmem:[%s4171_s29 + $0x28] sm:$0xff]   ;;  %3077 = vmatprep.subr.bf16.mxu1 %v3358_v57 }
 0x446   : > { %v1736_v46 = vadd.f32 %v4588_v11, %v1714_v24  ;;  %3078 = vmatpush3.bf16.msra.mxu1 %v3359_v47  ;;  %v3360_v11 = vld [vmem:[%s4171_s29 + $0x60] sm:$0xff]  }
 0x447   : > { %3079 = vmatprep.subr.bf16.mxu1 %v3360_v11 }
 0x448   : > { %v1744_v22 = vpack.c.bf16 %v1736_v46, %v1735_v61 }
 0x44a   : > { %3080 = vmatpush3.bf16.msra.mxu1 %v3361_v62 }
 0x44b   : > { %1939 = vmatmul.mubr.bf16.gmra.mxu0 %v1744_v22  ;;  %3081 = vmatprep.subr.bf16.mxu1 %v3362_v25 }
 0x44e   : > { %3082 = vmatpush3.bf16.msra.mxu1 %v3363_v23 }
 0x44f   : > { %3083 = vmatprep.subr.bf16.mxu1 %v3364_v30 }
 0x452   : > { %3084 = vmatpush3.bf16.msra.mxu1 %v3365_v44 }
 0x453   : > { %3085 = vmatprep.subr.bf16.mxu1 %v3366_v31 }
 0x456   : > { %3086 = vmatpush3.bf16.msra.mxu1 %v3367_v52 }
 0x457   : > { %3087 = vmatprep.subr.bf16.mxu1 %v3368_v27 }
 0x45a   : > { %3088 = vmatpush3.bf16.msra.mxu1 %v3369_v53 }
 0x4d3   : > { %v1870_v60 = vpop.f32.mrf.mxu0 }
 0x4d4   : > { %v1871_v13 = vadd.f32 %v1870_v60, %v4698_v41 }
 0x4d5   : > { %v1872_v42 = vpop.f32.mrf.mxu0 }
 0x4d6   : > { %v1873_v43 = vadd.f32 %v1872_v42, %v4700_v48 }
 0x4d7   : > { %v1874_v3 = vpop.f32.mrf.mxu0 }
 0x4d8   : > { %v1875_v4 = vadd.f32 %v1874_v3, %v4698_v41 }
 0x4d9   : > { %v1876_v5 = vpop.f32.mrf.mxu0 }
 0x4da   : > { %v4704_v7 = vpack.c.bf16 %v1875_v4, %v1871_v13  ;;  %v1877_v10 = vadd.f32 %v1876_v5, %v4700_v48 }
 0x4db   : > { %v1880_v51 = vpop.f32.mrf.mxu0 }
 0x4dc   : > { %v1981_v56 = vmul.bf16 1060454197, %v4704_v7  ;;  %v4709_v2 = vpack.c.bf16 %v1877_v10, %v1873_v43  ;;  %v1881_v49 = vadd.f32 %v1880_v51, %v4698_v41 }
 0x4dd   : > { %v1882_v15 = vpop.f32.mrf.mxu0 }
 0x4de   : > { %v1997_v17 = vand.u32 2147450879, %v1981_v56  ;;  %v5274_v29 = vmul.bf16 1060454197, %v4709_v2  ;;  %v1883_v46 = vadd.f32 %v1882_v15, %v4700_v48  ;;  %vm4803_vm0 = vcmp.ge.bf16.partialorder %v1981_v56, 0 }
 0x4df   : > { %v1884_v14 = vpop.f32.mrf.mxu0 }
 0x4e0   : > { %v2013_v38 = vmul.bf16 1051213480, %v1997_v17  ;;  %v1885_v8 = vadd.f32 %v1884_v14, %v4698_v41  ;;  %v1998_v34 = vand.u32 2147450879, %v5274_v29  ;;  %v2221_v25 = vsub.bf16 0, %v1997_v17 }
 0x4e1   : > { %v1886_v39 = vpop.f32.mrf.mxu0 }
 0x4e2   : > { %v2029_v0 = vadd.bf16 1065369472, %v2013_v38  ;;  %v4716_v24 = vpack.c.bf16 %v1885_v8, %v1881_v49  ;;  %v1887_v61 = vadd.f32 %v1886_v39, %v4700_v48  ;;  %v2014_v23 = vmul.bf16 1051213480, %v1998_v34 }
 0x4e3   : > { %v1890_v22 = vpop.f32.mrf.mxu0  ;;  %v2222_v27 = vsub.bf16 0, %v1998_v34  ;;  %v2237_v40 = vmul.bf16 %v2221_v25, %v1997_v17 }
 0x4e4   : > { %3434 = vrcp.bf16 %v2029_v0  ;;  %v4722_v35 = vpack.c.bf16 %v1887_v61, %v1883_v46  ;;  %v5272_v37 = vmul.bf16 1060454197, %v4716_v24  ;;  %v1891_v11 = vadd.f32 %v1890_v22, %v4698_v41 }
 0x4e5   : > { %v1892_v36 = vpop.f32.mrf.mxu0  ;;  %v2030_v21 = vadd.bf16 1065369472, %v2014_v23  ;;  %v2238_v13 = vmul.bf16 %v2222_v27, %v1998_v34  ;;  %v2254_v17 = vmul.bf16 1069105081, %v2237_v40 }
 0x4e6   : > { %v5273_v47 = vmul.bf16 1060454197, %v4722_v35  ;;  %v1999_v44 = vand.u32 2147450879, %v5272_v37  ;;  %v1893_v53 = vadd.f32 %v1892_v36, %v4700_v48 }
 0x4e7   : > { %v1894_v57 = vpop.f32.mrf.mxu0  ;;  %3436 = vrcp.bf16 %v2030_v21  ;;  %v2257_v22 = vmul.bf16 1069105081, %v2238_v13 }
 0x4e8   : > { %v1895_v62 = vadd.f32 %v1894_v57, %v4698_v41  ;;  %v2000_v55 = vand.u32 2147450879, %v5273_v47  ;;  %v2223_v42 = vsub.bf16 0, %v1999_v44  ;;  %v2015_v4 = vmul.bf16 1051213480, %v1999_v44 }
 0x4e9   : > { %v1896_v30 = vpop.f32.mrf.mxu0  ;;  %3438 = vpow.bf16 %v2254_v17 }
 0x4ea   : > { %v4730_v31 = vpack.c.bf16 %v1895_v62, %v1891_v11  ;;  %v1897_v52 = vadd.f32 %v1896_v30, %v4700_v48  ;;  %v2224_v10 = vsub.bf16 0, %v2000_v55  ;;  %v2239_v8 = vmul.bf16 %v2223_v42, %v1999_v44 }
 0x4eb   : > { %v1900_v54 = vpop.f32.mrf.mxu0  ;;  %v2016_v34 = vmul.bf16 1051213480, %v2000_v55  ;;  %v2031_v11 = vadd.bf16 1065369472, %v2015_v4  ;;  %3440 = vpow.bf16 %v2257_v22 }
 0x4ec   : > { %v4736_v60 = vpack.c.bf16 %v1897_v52, %v1893_v53  ;;  %v5269_v3 = vmul.bf16 1060454197, %v4730_v31  ;;  %v1901_v51 = vadd.f32 %v1900_v54, %v4698_v41  ;;  %v2240_v62 = vmul.bf16 %v2224_v10, %v2000_v55 }
 0x4ed   : > { %v1902_v32 = vpop.f32.mrf.mxu0  ;;  %v2260_v54 = vmul.bf16 1069105081, %v2239_v8  ;;  %v2032_v42 = vadd.bf16 1065369472, %v2016_v34  ;;  %3442 = vrcp.bf16 %v2031_v11 }
 0x4ee   : > { %v5270_v43 = vmul.bf16 1060454197, %v4736_v60  ;;  %v2001_v39 = vand.u32 2147450879, %v5269_v3  ;;  %v1903_v36 = vadd.f32 %v1902_v32, %v4700_v48  ;;  %v2263_v4 = vmul.bf16 1069105081, %v2240_v62 }
 0x4ef   : > { %v1904_v5 = vpop.f32.mrf.mxu0  ;;  %3444 = vpow.bf16 %v2260_v54 }
 0x4f0   : > { %v1905_v15 = vadd.f32 %v1904_v5, %v4698_v41  ;;  %v2002_v25 = vand.u32 2147450879, %v5270_v43  ;;  %v2017_v40 = vmul.bf16 1051213480, %v2001_v39  ;;  %3446 = vrcp.bf16 %v2032_v42 }
 0x4f1   : > { %v1906_v38 = vpop.f32.mrf.mxu0  ;;  %3448 = vpow.bf16 %v2263_v4 }
 0x4f2   : > { %v3435_v49 = vpop.eup %3434  ;;  %v4745_v0 = vpack.c.bf16 %v1905_v15, %v1901_v51  ;;  %v1907_v61 = vadd.f32 %v1906_v38, %v4700_v48  ;;  %v2018_v5 = vmul.bf16 1051213480, %v2002_v25  ;;  %v2225_v15 = vsub.bf16 0, %v2001_v39 }
 0x4f3   : > { %v4748_v46 = vmul.bf16 1065369472, %v3435_v49  ;;  %v1910_v57 = vpop.f32.mrf.mxu0  ;;  %v2033_v8 = vadd.bf16 1065369472, %v2017_v40 }
 0x4f4   : > { %v5266_v23 = vmul.bf16 1060454197, %v4745_v0  ;;  %v4757_v27 = vpack.c.bf16 %v1907_v61, %v1903_v36  ;;  %v1911_v17 = vadd.f32 %v1910_v57, %v4698_v41  ;;  %v2226_v57 = vsub.bf16 0, %v2002_v25 }
 0x4f5   : > { %v2077_v30 = vmul.bf16 1065893768, %v4748_v46  ;;  %v1912_v53 = vpop.f32.mrf.mxu0  ;;  %3450 = vrcp.bf16 %v2033_v8 }
 0x4f6   : > { %v2003_v55 = vand.u32 2147450879, %v5266_v23  ;;  %v5267_v10 = vmul.bf16 1060454197, %v4757_v27  ;;  %v1913_v36 = vadd.f32 %v1912_v53, %v4700_v48 }
 0x4f7   : > { %v2093_v21 = vadd.bf16 3216687034, %v2077_v30  ;;  %v1914_v13 = vpop.f32.mrf.mxu0 }
 0x4f8   : > { %v1915_v38 = vadd.f32 %v1914_v13, %v4698_v41  ;;  %v2019_v61 = vmul.bf16 1051213480, %v2003_v55  ;;  %v2004_v22 = vand.u32 2147450879, %v5267_v10  ;;  %v2227_v52 = vsub.bf16 0, %v2003_v55 }
 0x4f9   : > { %v2109_v51 = vmul.bf16 %v2093_v21, %v4748_v46  ;;  %v1916_v49 = vpop.f32.mrf.mxu0  ;;  %v2034_v21 = vadd.bf16 1065369472, %v2018_v5  ;;  %v2242_v10 = vmul.bf16 %v2226_v57, %v2002_v25 }
 0x4fa   : > { %v4769_v11 = vpack.c.bf16 %v1915_v38, %v1911_v17  ;;  %v1917_v62 = vadd.f32 %v1916_v49, %v4700_v48  ;;  %v2020_v54 = vmul.bf16 1051213480, %v2004_v22  ;;  %v3437_v38 = vpop.eup %3436  ;;  %v2035_v42 = vadd.bf16 1065369472, %v2019_v61 }
 0x4fb   : > { %v2125_v34 = vadd.bf16 1068908470, %v2109_v51  ;;  %v1920_v30 = vpop.f32.mrf.mxu0  ;;  %v2241_v51 = vmul.bf16 %v2225_v15, %v2001_v39  ;;  %3452 = vrcp.bf16 %v2034_v21  ;;  %v2243_v44 = vmul.bf16 %v2227_v52, %v2003_v55  ;;  %v3439_v55 = vpop.eup %3438 }
 0x4fc   : > { %v5268_v40 = vmul.bf16 1060454197, %v4769_v11  ;;  %v4774_v23 = vpack.c.bf16 %v1917_v62, %v1913_v36  ;;  %v2036_v62 = vadd.bf16 1065369472, %v2020_v54  ;;  %v2228_v53 = vsub.bf16 0, %v2004_v22  ;;  %v4792_v43 = vpop.eup %3440 }
 0x4fd   : > { %v2141_v13 = vmul.bf16 %v2125_v34, %v4748_v46  ;;  %v1922_v32 = vpop.f32.mrf.mxu0  ;;  %v1921_v61 = vadd.f32 %v1920_v30, %v4698_v41  ;;  %v2266_v21 = vmul.bf16 1069105081, %v2241_v51  ;;  %3454 = vrcp.bf16 %v2035_v42  ;;  %v3443_v25 = vpop.eup %3442 }
 0x4fe   : > { %v2005_v5 = vand.u32 2147450879, %v5268_v40  ;;  %v5271_v36 = vmul.bf16 1060454197, %v4774_v23  ;;  %v4787_v57 = vmul.bf16 1065369472, %v3437_v38  ;;  %v1923_v51 = vadd.f32 %v1922_v32, %v4700_v48  ;;  %v4799_v14 = vpop.eup %3444 }
 0x4ff   : > { %v2157_v49 = vadd.bf16 3197288082, %v2141_v13  ;;  %v1924_v34 = vpop.f32.mrf.mxu0  ;;  %v2272_v42 = vmul.bf16 1069105081, %v2243_v44  ;;  %3456 = vrcp.bf16 %v2036_v62  ;;  %v2244_v37 = vmul.bf16 %v2228_v53, %v2004_v22 }
 0x500   : > { %v2021_v39 = vmul.bf16 1051213480, %v2005_v5  ;;  %v2229_v17 = vsub.bf16 0, %v2005_v5  ;;  %v2006_v8 = vand.u32 2147450879, %v5271_v36  ;;  %v1925_v13 = vadd.f32 %v1924_v34, %v4698_v41 }
 0x501   : > { %v2173_v4 = vmul.bf16 %v2157_v49, %v4748_v46  ;;  %v1926_v15 = vpop.f32.mrf.mxu0  ;;  %v2269_v36 = vmul.bf16 1069105081, %v2242_v10  ;;  %3458 = vpow.bf16 %v2266_v21  ;;  %v2275_v56 = vmul.bf16 1069105081, %v2244_v37 }
 0x502   : > { %v2022_v54 = vmul.bf16 1051213480, %v2006_v8  ;;  %v4789_v49 = vpack.c.bf16 %v1925_v13, %v1921_v61  ;;  %v1927_v3 = vadd.f32 %v1926_v15, %v4700_v48  ;;  %v2037_v34 = vadd.bf16 1065369472, %v2021_v39 }
 0x503   : > { %v2189_v40 = vadd.bf16 1048723074, %v2173_v4  ;;  %v1930_v52 = vpop.f32.mrf.mxu0  ;;  %v2245_v38 = vmul.bf16 %v2229_v17, %v2005_v5  ;;  %v2230_v29 = vsub.bf16 0, %v2006_v8  ;;  %v3447_v17 = vpop.eup %3446 }
 0x504   : > { %v5275_v61 = vmul.bf16 1060454197, %v4789_v49  ;;  %v4797_v13 = vpack.c.bf16 %v1927_v3, %v1923_v51  ;;  %v2038_v44 = vadd.bf16 1065369472, %v2022_v54  ;;  %v1931_v32 = vadd.f32 %v1930_v52, %v4698_v41 }
 0x505   : > { %v2205_v30 = vmul.bf16 %v2189_v40, %v4748_v46  ;;  %v1932_v4 = vpop.f32.mrf.mxu0  ;;  %3460 = vrcp.bf16 %v2037_v34  ;;  %v2278_v39 = vmul.bf16 1069105081, %v2245_v38  ;;  %v2246_v21 = vmul.bf16 %v2230_v29, %v2006_v8 }
 0x506   : > { %v2007_v3 = vand.u32 2147450879, %v5275_v61  ;;  %3462 = vpow.bf16 %v2269_v36  ;;  %v5276_v5 = vmul.bf16 1060454197, %v4797_v13  ;;  %v4822_v8 = vmul.bf16 1065369472, %v3443_v25 }
 0x507   : > { %v2301_v47 = vmul.bf16 %v3439_v55, %v2205_v30  ;;  %v1934_v15 = vpop.f32.mrf.mxu0  ;;  %3464 = vpow.bf16 %v2272_v42  ;;  %v1933_v30 = vadd.f32 %v1932_v4, %v4700_v48 }
 0x508   : > { %v1935_v10 = vadd.f32 %v1934_v15, %v4698_v41  ;;  %v2023_v52 = vmul.bf16 1051213480, %v2007_v3  ;;  %3466 = vrcp.bf16 %v2038_v44  ;;  %v2008_v54 = vand.u32 2147450879, %v5276_v5 }
 0x509   : > { %v2317_v22 = vsub.bf16 1065369472, %v2301_v47  ;;  %v1936_v53 = vpop.f32.mrf.mxu0  ;;  %v4815_v47 = vpop.eup %3448  ;;  %v2231_v15 = vsub.bf16 0, %v2007_v3  ;;  %3468 = vpow.bf16 %v2275_v56  ;;  %v2281_v5 = vmul.bf16 1069105081, %v2246_v21 }
 0x50a   : > { %v4813_v62 = vpack.c.bf16 %v1935_v10, %v1931_v32  ;;  %v1937_v36 = vadd.f32 %v1936_v53, %v4700_v48  ;;  %v3451_v37 = vpop.eup %3450  ;;  %v2039_v51 = vadd.bf16 1065369472, %v2023_v52  ;;  %v2024_v32 = vmul.bf16 1051213480, %v2008_v54 }
 0x50b   : > { %v1940_v55 = vpop.f32.mrf.mxu0  ;;  %v2349_v34 = vsub.bf16 0, %v2317_v22  ;;  %v3453_v29 = vpop.eup %3452  ;;  %v4826_v10 = vmul.bf16 1065369472, %v3447_v17  ;;  %3470 = vpow.bf16 %v2278_v39  ;;  %v2232_v4 = vsub.bf16 0, %v2008_v54 }
 0x50c   : > { %v5278_v42 = vmul.bf16 1060454197, %v4813_v62  ;;  %v4824_v44 = vpack.c.bf16 %v1937_v36, %v1933_v30  ;;  %3472 = vrcp.bf16 %v2039_v51  ;;  %v2040_v40 = vadd.bf16 1065369472, %v2024_v32  ;;  %v3455_v58 = vpop.eup %3454 }
 0x50d   : > { %v1942_v38 = vpop.f32.mrf.mxu0  ;;  %v2365_v25 = vsel %vm4803_vm0, %v2317_v22, %v2349_v34  ;;  %v2247_v56 = vmul.bf16 %v2231_v15, %v2007_v3  ;;  %v4833_v17 = vmul.bf16 1065369472, %v3451_v37  ;;  %v4835_v39 = vmul.bf16 1065369472, %v3453_v29  ;;  %v3457_v32 = vpop.eup %3456 }
 0x50e   : > { %v2009_v53 = vand.u32 2147450879, %v5278_v42  ;;  %3474 = vrcp.bf16 %v2040_v40  ;;  %v5282_v42 = vmul.bf16 1060454197, %v4824_v44  ;;  %v2248_v19 = vmul.bf16 %v2232_v4, %v2008_v54 }
 0x50f   : > { %v1944_v61 = vpop.f32.mrf.mxu0  ;;  %v1941_v21 = vadd.f32 %v1940_v55, %v4698_v41  ;;  %v2381_v46 = vadd.bf16 1065369472, %v2365_v25  ;;  %v4840_v22 = vmul.bf16 1065369472, %v3455_v58  ;;  %3476 = vpow.bf16 %v2281_v5  ;;  %v4847_v54 = vpop.eup %3458 }
 0x510   : > { %v2025_v30 = vmul.bf16 1051213480, %v2009_v53  ;;  %v2233_v36 = vsub.bf16 0, %v2009_v53  ;;  %v1945_v51 = vadd.f32 %v1944_v61, %v4698_v41  ;;  %v2010_v3 = vand.u32 2147450879, %v5282_v42 }
 0x511   : > { %v1946_v12 = vpop.f32.mrf.mxu0  ;;  %v2284_v37 = vmul.bf16 1069105081, %v2247_v56  ;;  %v1943_v41 = vadd.f32 %v1942_v38, %v4700_v48  ;;  %v2078_v61 = vmul.bf16 1065893768, %v4787_v57  ;;  %v4851_v4 = vmul.bf16 1065369472, %v3457_v32 }
 0x512   : > { %v2041_v52 = vadd.bf16 1065369472, %v2025_v30  ;;  %v2249_v34 = vmul.bf16 %v2233_v36, %v2009_v53  ;;  %v4844_v40 = vpack.c.bf16 %v1945_v51, %v1941_v21  ;;  %v1947_v15 = vadd.f32 %v1946_v12, %v4700_v48 }
 0x513   : > { %v2026_v29 = vmul.bf16 1051213480, %v2010_v3  ;;  %v2234_v55 = vsub.bf16 0, %v2010_v3  ;;  %v3461_v58 = vpop.eup %3460  ;;  %v2287_v5 = vmul.bf16 1069105081, %v2248_v19 }
 0x514   : > { %3478 = vrcp.bf16 %v2041_v52  ;;  %v5281_v25 = vmul.bf16 1060454197, %v4844_v40  ;;  %v4854_v53 = vpop.eup %3462  ;;  %v4856_v12 = vpack.c.bf16 %v1947_v15, %v1943_v41  ;;  %v2094_v36 = vadd.bf16 3216687034, %v2078_v61 }
 0x515   : > { %v2042_v56 = vadd.bf16 1065369472, %v2026_v29  ;;  %v2250_v30 = vmul.bf16 %v2234_v55, %v2010_v3  ;;  %v4858_v21 = vpop.eup %3464  ;;  %v5380_v48 = vmul.bf16 1056980736, %v4704_v7  ;;  %3480 = vpow.bf16 %v2284_v37 }
 0x516   : > { %v2011_v19 = vand.u32 2147450879, %v5281_v25  ;;  %v2080_v52 = vmul.bf16 1065893768, %v4826_v10  ;;  %v3467_v51 = vpop.eup %3466  ;;  %v4867_v32 = vmul.bf16 1065369472, %v3461_v58  ;;  %v2110_v41 = vmul.bf16 %v2094_v36, %v4787_v57 }
 0x517   : > { %v4862_v38 = vmul.bf16 %v2381_v46, %v5380_v48  ;;  %v2290_v29 = vmul.bf16 1069105081, %v2249_v34  ;;  %3482 = vrcp.bf16 %v2042_v56  ;;  %v5285_v3 = vmul.bf16 1060454197, %v4856_v12  ;;  %v4871_v46 = vpop.eup %3468 }
 0x518   : > { %v2027_v15 = vmul.bf16 1051213480, %v2011_v19  ;;  %v2235_v55 = vsub.bf16 0, %v2011_v19  ;;  %v2096_v7 = vadd.bf16 3216687034, %v2080_v52  ;;  %3484 = vpow.bf16 %v2287_v5 }
 0x519   : > { %v2293_v37 = vmul.bf16 1069105081, %v2250_v30  ;;  %v2012_v61 = vand.u32 2147450879, %v5285_v3  ;;  %v2079_v48 = vmul.bf16 1065893768, %v4822_v8  ;;  %v4876_v58 = vpop.eup %3470  ;;  %3486 = vpow.bf16 %v2290_v29 }
 0x51a   : > { %v2043_v34 = vadd.bf16 1065369472, %v2027_v15  ;;  %v2251_v56 = vmul.bf16 %v2235_v55, %v2011_v19  ;;  %v2126_v25 = vadd.bf16 1068908470, %v2110_v41  ;;  %v2112_v42 = vmul.bf16 %v2096_v7, %v4826_v10  ;;  %v3473_v16 = vpop.eup %3472 }
 0x51b   : > { %v4879_v1 = vmul.bf16 1065369472, %v3467_v51  ;;  %v2028_v36 = vmul.bf16 1051213480, %v2012_v61  ;;  %v2236_v52 = vsub.bf16 0, %v2012_v61 }
 0x51c   : > { %3488 = vrcp.bf16 %v2043_v34  ;;  %v2296_v5 = vmul.bf16 1069105081, %v2251_v56  ;;  %v2142_v30 = vmul.bf16 %v2126_v25, %v4787_v57  ;;  %v2128_v3 = vadd.bf16 1068908470, %v2112_v42  ;;  %v3475_v6 = vpop.eup %3474 }
 0x51d   : > { %v2044_v18 = vadd.bf16 1065369472, %v2028_v36  ;;  %v2252_v45 = vmul.bf16 %v2236_v52, %v2012_v61  ;;  %v2095_v50 = vadd.bf16 3216687034, %v2079_v48  ;;  %v2082_v19 = vmul.bf16 1065893768, %v4835_v39  ;;  %v4886_v29 = vpop.eup %3476 }
 0x51e   : > { %v4883_v15 = vmul.bf16 1065369472, %v3473_v16  ;;  %3490 = vpow.bf16 %v2293_v37  ;;  %v2158_v55 = vadd.bf16 3197288082, %v2142_v30  ;;  %v2144_v51 = vmul.bf16 %v2128_v3, %v4826_v10 }
 0x51f   : > { %v4888_v41 = vmul.bf16 1065369472, %v3475_v6  ;;  %3492 = vpow.bf16 %v2296_v5  ;;  %v2111_v25 = vmul.bf16 %v2095_v50, %v4822_v8  ;;  %v2098_v42 = vadd.bf16 3216687034, %v2082_v19 }
 0x520   : > { %v2174_v7 = vmul.bf16 %v2158_v55, %v4787_v57  ;;  %v2160_v61 = vadd.bf16 3197288082, %v2144_v51  ;;  %v2081_v48 = vmul.bf16 1065893768, %v4833_v17  ;;  %v2084_v16 = vmul.bf16 1065893768, %v4851_v4 }
 0x521   : > { %3494 = vrcp.bf16 %v2044_v18  ;;  %v2299_v37 = vmul.bf16 1069105081, %v2252_v45  ;;  %v2127_v34 = vadd.bf16 1068908470, %v2111_v25  ;;  %v2114_v3 = vmul.bf16 %v2098_v42, %v4835_v39 }
 0x522   : > { %v3479_v56 = vpop.eup %3478  ;;  %v2190_v36 = vadd.bf16 1048723074, %v2174_v7  ;;  %v2176_v6 = vmul.bf16 %v2160_v61, %v4826_v10  ;;  %v2097_v52 = vadd.bf16 3216687034, %v2081_v48  ;;  %v2100_v5 = vadd.bf16 3216687034, %v2084_v16 }
 0x523   : > { %v5381_v50 = vmul.bf16 1060454197, %v4709_v2  ;;  %v2143_v19 = vmul.bf16 %v2127_v34, %v4822_v8  ;;  %v2130_v55 = vadd.bf16 1068908470, %v2114_v3  ;;  %v2083_v45 = vmul.bf16 1065893768, %v4840_v22  ;;  %v4905_v51 = vpop.eup %3480 }
 0x524   : > { %v2086_v18 = vmul.bf16 1065893768, %v4879_v1  ;;  %v2206_v25 = vmul.bf16 %v2190_v36, %v4787_v57  ;;  %v2192_v42 = vadd.bf16 1048723074, %v2176_v6  ;;  %v2113_v7 = vmul.bf16 %v2097_v52, %v4833_v17 }
 0x525   : > { %vm4898_vm1 = vcmp.ge.bf16.partialorder %v5381_v50, 0  ;;  %v2116_v61 = vmul.bf16 %v2100_v5, %v4851_v4  ;;  %v3483_v48 = vpop.eup %3482  ;;  %v5384_v16 = vmul.bf16 1060454197, %v4722_v35  ;;  %v4916_v34 = vmul.bf16 1065369472, %v3479_v56 }
 0x526   : > { %v2159_v3 = vadd.bf16 3197288082, %v2143_v19  ;;  %v2146_v26 = vmul.bf16 %v2130_v55, %v4835_v39  ;;  %v2099_v28 = vadd.bf16 3216687034, %v2083_v45  ;;  %v2302_v57 = vmul.bf16 %v4792_v43, %v2206_v25  ;;  %v4921_v5 = vpop.eup %3484 }
 0x527   : > { %vm4912_vm2 = vcmp.ge.bf16.partialorder %v5384_v16, 0  ;;  %v2208_v36 = vmul.bf16 %v2192_v42, %v4826_v10  ;;  %v2129_v6 = vadd.bf16 1068908470, %v2113_v7  ;;  %v2102_v52 = vadd.bf16 3216687034, %v2086_v18  ;;  %v4929_v43 = vpop.eup %3486 }
 0x528   : > { %v2175_v59 = vmul.bf16 %v2159_v3, %v4822_v8  ;;  %v2162_v16 = vadd.bf16 3197288082, %v2146_v26  ;;  %v2132_v9 = vadd.bf16 1068908470, %v2116_v61  ;;  %v2115_v33 = vmul.bf16 %v2099_v28, %v4840_v22 }
 0x529   : > { %v4925_v56 = vmul.bf16 1065369472, %v3483_v48  ;;  %v2318_v19 = vsub.bf16 1065369472, %v2302_v57  ;;  %v2304_v55 = vmul.bf16 %v4815_v47, %v2208_v36  ;;  %v2145_v45 = vmul.bf16 %v2129_v6, %v4833_v17 }
 0x52a   : > { %v2191_v10 = vadd.bf16 1048723074, %v2175_v59  ;;  %v2178_v18 = vmul.bf16 %v2162_v16, %v4835_v39  ;;  %v2148_v25 = vmul.bf16 %v2132_v9, %v4851_v4  ;;  %v2131_v42 = vadd.bf16 1068908470, %v2115_v33  ;;  %v3489_v7 = vpop.eup %3488 }
 0x52b   : > { %v5387_v26 = vmul.bf16 1060454197, %v4716_v24  ;;  %3496 = vpow.bf16 %v2299_v37  ;;  %v2350_v61 = vsub.bf16 0, %v2318_v19  ;;  %v2320_v47 = vsub.bf16 1065369472, %v2304_v55 }
 0x52c   : > { %v2161_v48 = vadd.bf16 3197288082, %v2145_v45  ;;  %v2207_v3 = vmul.bf16 %v2191_v10, %v4822_v8  ;;  %v2194_v57 = vadd.bf16 1048723074, %v2178_v18  ;;  %v2164_v59 = vadd.bf16 3197288082, %v2148_v25  ;;  %v4941_v6 = vpop.eup %3490 }
 0x52d   : > { %vm4935_vm3 = vcmp.ge.bf16.partialorder %v5387_v26, 0  ;;  %v2118_v36 = vmul.bf16 %v2102_v52, %v4879_v1  ;;  %v5390_v33 = vmul.bf16 1060454197, %v4736_v60  ;;  %v2366_v37 = vsel %vm4898_vm1, %v2318_v19, %v2350_v61  ;;  %v4953_v45 = vpop.eup %3492 }
 0x52e   : > { %v2352_v16 = vsub.bf16 0, %v2320_v47  ;;  %v2177_v55 = vmul.bf16 %v2161_v48, %v4833_v17  ;;  %v2147_v8 = vmul.bf16 %v2131_v42, %v4840_v22  ;;  %v2382_v10 = vadd.bf16 1065369472, %v2366_v37 }
 0x52f   : > { %vm4945_vm4 = vcmp.ge.bf16.partialorder %v5390_v33, 0  ;;  %v2303_v52 = vmul.bf16 %v4799_v14, %v2207_v3  ;;  %v2210_v18 = vmul.bf16 %v2194_v57, %v4835_v39  ;;  %v2180_v25 = vmul.bf16 %v2164_v59, %v4851_v4  ;;  %v3495_v33 = vpop.eup %3494 }
 0x530   : > { %v4958_v26 = vmul.bf16 1065369472, %v3489_v7  ;;  %v2368_v30 = vsel %vm4912_vm2, %v2320_v47, %v2352_v16  ;;  %v2193_v19 = vadd.bf16 1048723074, %v2177_v55  ;;  %v2163_v61 = vadd.bf16 3197288082, %v2147_v8 }
 0x531   : > { %v5393_v48 = vmul.bf16 1060454197, %v4730_v31  ;;  %v5396_v14 = vmul.bf16 1056980736, %v4709_v2  ;;  %v2384_v39 = vadd.bf16 1065369472, %v2368_v30  ;;  %v2306_v7 = vmul.bf16 %v4854_v53, %v2210_v18 }
 0x532   : > { %v2319_v57 = vsub.bf16 1065369472, %v2303_v52  ;;  %v2209_v59 = vmul.bf16 %v2193_v19, %v4833_v17  ;;  %v2196_v50 = vadd.bf16 1048723074, %v2180_v25  ;;  %v2179_v47 = vmul.bf16 %v2163_v61, %v4840_v22 }
 0x533   : > { %vm4964_vm5 = vcmp.ge.bf16.partialorder %v5393_v48, 0  ;;  %v2398_v3 = vmul.bf16 %v2382_v10, %v5396_v14  ;;  %v2134_v37 = vadd.bf16 1068908470, %v2118_v36  ;;  %v5397_v16 = vmul.bf16 1060454197, %v4757_v27 }
 0x534   : > { %v5400_v2 = vmul.bf16 1056980736, %v4722_v35  ;;  %v2351_v10 = vsub.bf16 0, %v2319_v57  ;;  %v2322_v52 = vsub.bf16 1065369472, %v2306_v7  ;;  %v2305_v17 = vmul.bf16 %v4847_v54, %v2209_v59 }
 0x535   : > { %vm4975_vm6 = vcmp.ge.bf16.partialorder %v5397_v16, 0  ;;  %2547 = vmatprep.mubr.bf16.mxu1 %v2398_v3  ;;  %v2085_v53 = vmul.bf16 1065893768, %v4867_v32  ;;  %v2212_v36 = vmul.bf16 %v2196_v50, %v4851_v4  ;;  %v2195_v18 = vadd.bf16 1048723074, %v2179_v47 }
 0x536   : > { %v2400_v8 = vmul.bf16 %v2384_v39, %v5400_v2  ;;  %2548 = vmatmul.mubr.bf16.vlgmr.msra.gmra.mxu1 %v4862_v38  ;;  %v2150_v25 = vmul.bf16 %v2134_v37, %v4879_v1  ;;  %v2367_v30 = vsel %vm4935_vm3, %v2319_v57, %v2351_v10  ;;  %v2354_v19 = vsub.bf16 0, %v2322_v52 }
 0x537   : > { %v2101_v35 = vadd.bf16 3216687034, %v2085_v53  ;;  %v2088_v61 = vmul.bf16 1065893768, %v4888_v41  ;;  %v5401_v48 = vmul.bf16 1060454197, %v4745_v0  ;;  %v2308_v4 = vmul.bf16 %v4871_v46, %v2212_v36 }
 0x538   : > { %2555 = vmatprep.mubr.bf16.mxu1 %v2400_v8  ;;  %v2383_v54 = vadd.bf16 1065369472, %v2367_v30  ;;  %v2321_v38 = vsub.bf16 1065369472, %v2305_v17  ;;  %v2211_v3 = vmul.bf16 %v2195_v18, %v4840_v22  ;;  %v2370_v28 = vsel %vm4945_vm4, %v2322_v52, %v2354_v19 }
 0x539   : > { %vm4991_vm7 = vcmp.ge.bf16.partialorder %v5401_v48, 0  ;;  %v2166_v39 = vadd.bf16 3197288082, %v2150_v25  ;;  %v2117_v57 = vmul.bf16 %v2101_v35, %v4867_v32  ;;  %v2104_v7 = vadd.bf16 3216687034, %v2088_v61  ;;  %v5005_v10 = vpop.eup %3496 }
 0x53a   : > { %v5404_v59 = vmul.bf16 1056980736, %v4716_v24  ;;  %v2386_v47 = vadd.bf16 1065369472, %v2370_v28  ;;  %v2353_v37 = vsub.bf16 0, %v2321_v38  ;;  %v2307_v2 = vmul.bf16 %v4858_v21, %v2211_v3 }
 0x53b   : > { %v2324_v16 = vsub.bf16 1065369472, %v2308_v4  ;;  %v2182_v8 = vmul.bf16 %v2166_v39, %v4879_v1  ;;  %v2133_v46 = vadd.bf16 1068908470, %v2117_v57  ;;  %v2120_v22 = vmul.bf16 %v2104_v7, %v4888_v41 }
 0x53c   : > { %v2399_v50 = vmul.bf16 %v2383_v54, %v5404_v59  ;;  %v5405_v9 = vmul.bf16 1056980736, %v4736_v60  ;;  %v2369_v53 = vsel %vm4964_vm5, %v2321_v38, %v2353_v37  ;;  %v2087_v17 = vmul.bf16 1065893768, %v4883_v15 }
 0x53d   : > { %v2356_v24 = vsub.bf16 0, %v2324_v16  ;;  %v2385_v36 = vadd.bf16 1065369472, %v2369_v53  ;;  %v2323_v18 = vsub.bf16 1065369472, %v2307_v2  ;;  %v2149_v21 = vmul.bf16 %v2133_v46, %v4867_v32 }
 0x53e   : > { %v2402_v52 = vmul.bf16 %v2386_v47, %v5405_v9  ;;  %v2198_v25 = vadd.bf16 1048723074, %v2182_v8  ;;  %v5406_v30 = vmul.bf16 1060454197, %v4774_v23  ;;  %2556 = vmatmul.mubr.bf16.gmra.mxu1 %v2399_v50  ;;  %v2136_v42 = vadd.bf16 1068908470, %v2120_v22 }
 0x53f   : > { %v2372_v60 = vsel %vm4975_vm6, %v2324_v16, %v2356_v24  ;;  %v2103_v35 = vadd.bf16 3216687034, %v2087_v17  ;;  %v2090_v61 = vmul.bf16 1065893768, %v4925_v56  ;;  %v5022_v48 = vmul.bf16 1065369472, %v3495_v33 }
 0x540   : > { %vm5015_vm8 = vcmp.ge.bf16.partialorder %v5406_v30, 0  ;;  %2563 = vmatprep.mubr.bf16.mxu1 %v2402_v52  ;;  %v2388_v54 = vadd.bf16 1065369472, %v2372_v60  ;;  %v2355_v38 = vsub.bf16 0, %v2323_v18  ;;  %v2214_v4 = vmul.bf16 %v2198_v25, %v4879_v1 }
 0x541   : > { %v2165_v3 = vadd.bf16 3197288082, %v2149_v21  ;;  %v2152_v28 = vmul.bf16 %v2136_v42, %v4888_v41  ;;  %v2119_v39 = vmul.bf16 %v2103_v35, %v4883_v15  ;;  %v2106_v57 = vadd.bf16 3216687034, %v2090_v61 }
 0x542   : > { %v5409_v55 = vmul.bf16 1056980736, %v4730_v31  ;;  %v2371_v59 = vsel %vm4991_vm7, %v2323_v18, %v2355_v38  ;;  %v2310_v33 = vmul.bf16 %v4886_v29, %v2214_v4  ;;  %v2089_v50 = vmul.bf16 1065893768, %v4916_v34 }
 0x543   : > { %v5410_v47 = vmul.bf16 1056980736, %v4757_v27  ;;  %v2181_v1 = vmul.bf16 %v2165_v3, %v4867_v32  ;;  %v2168_v16 = vadd.bf16 3197288082, %v2152_v28  ;;  %v2135_v2 = vadd.bf16 1068908470, %v2119_v39 }
 0x544   : > { %v2401_v7 = vmul.bf16 %v2385_v36, %v5409_v55  ;;  %v2326_v8 = vsub.bf16 1065369472, %v2310_v33  ;;  %v2122_v46 = vmul.bf16 %v2106_v57, %v4925_v56  ;;  %v2105_v22 = vadd.bf16 3216687034, %v2089_v50 }
 0x545   : > { %v2404_v37 = vmul.bf16 %v2388_v54, %v5410_v47  ;;  %v2092_v31 = vmul.bf16 1065893768, %v5022_v48  ;;  %v2387_v9 = vadd.bf16 1065369472, %v2371_v59  ;;  %v2197_v14 = vadd.bf16 1048723074, %v2181_v1 }
 0x546   : > { %v2184_v52 = vmul.bf16 %v2168_v16, %v4888_v41  ;;  %v2151_v29 = vmul.bf16 %v2135_v2, %v4883_v15  ;;  %v5411_v53 = vmul.bf16 1060454197, %v4769_v11  ;;  %v2358_v24 = vsub.bf16 0, %v2326_v8  ;;  %2564 = vmatmul.mubr.bf16.gmra.mxu1 %v2401_v7 }
 0x547   : > { %v2138_v17 = vadd.bf16 1068908470, %v2122_v46  ;;  %v2121_v36 = vmul.bf16 %v2105_v22, %v4916_v34  ;;  %v2108_v18 = vadd.bf16 3216687034, %v2092_v31  ;;  %v2213_v25 = vmul.bf16 %v2197_v14, %v4867_v32  ;;  %2571 = vmatprep.mubr.bf16.mxu1 %v2404_v37 }
 0x548   : > { %vm5042_vm9 = vcmp.ge.bf16.partialorder %v5411_v53, 0  ;;  %v2200_v21 = vadd.bf16 1048723074, %v2184_v52  ;;  %v2167_v30 = vadd.bf16 3197288082, %v2151_v29  ;;  %v2374_v42 = vsel %vm5015_vm8, %v2326_v8, %v2358_v24 }
 0x549   : > { %v2091_v60 = vmul.bf16 1065893768, %v4958_v26  ;;  %v2154_v35 = vmul.bf16 %v2138_v17, %v4925_v56  ;;  %v2137_v61 = vadd.bf16 1068908470, %v2121_v36  ;;  %v2124_v54 = vmul.bf16 %v2108_v18, %v5022_v48 }
 0x54a   : > { %v2390_v38 = vadd.bf16 1065369472, %v2374_v42  ;;  %v2309_v4 = vmul.bf16 %v4876_v58, %v2213_v25  ;;  %v2216_v3 = vmul.bf16 %v2200_v21, %v4888_v41  ;;  %v2183_v32 = vmul.bf16 %v2167_v30, %v4883_v15 }
 0x54b   : > { %v2170_v28 = vadd.bf16 3197288082, %v2154_v35  ;;  %v2153_v39 = vmul.bf16 %v2137_v61, %v4916_v34  ;;  %v2140_v57 = vadd.bf16 1068908470, %v2124_v54  ;;  %v2107_v55 = vadd.bf16 3216687034, %v2091_v60 }
 0x54c   : > { %v5414_v19 = vmul.bf16 1056980736, %v4774_v23  ;;  %v2325_v59 = vsub.bf16 1065369472, %v2309_v4  ;;  %v2312_v33 = vmul.bf16 %v4921_v5, %v2216_v3  ;;  %v2199_v50 = vadd.bf16 1048723074, %v2183_v32 }
 0x54d   : > { %v2186_v47 = vmul.bf16 %v2170_v28, %v4925_v56  ;;  %v2169_v37 = vadd.bf16 3197288082, %v2153_v39  ;;  %v2156_v58 = vmul.bf16 %v2140_v57, %v5022_v48  ;;  %v2123_v41 = vmul.bf16 %v2107_v55, %v4958_v26 }
 0x54e   : > { %v2406_v7 = vmul.bf16 %v2390_v38, %v5414_v19  ;;  %v5415_v1 = vmul.bf16 1056980736, %v4745_v0  ;;  %v2357_v2 = vsub.bf16 0, %v2325_v59  ;;  %v2328_v8 = vsub.bf16 1065369472, %v2312_v33 }
 0x54f   : > { %v2215_v46 = vmul.bf16 %v2199_v50, %v4883_v15  ;;  %v2202_v23 = vadd.bf16 1048723074, %v2186_v47  ;;  %v2185_v22 = vmul.bf16 %v2169_v37, %v4916_v34  ;;  %v2172_v31 = vadd.bf16 3197288082, %v2156_v58 }
 0x550   : > { %v2403_v16 = vmul.bf16 %v2387_v9, %v5415_v1  ;;  %v2139_v5 = vadd.bf16 1068908470, %v2123_v41  ;;  %v1973_v14 = vmul.bf16 1056980736, %v4769_v11  ;;  %v2373_v52 = vsel %vm5042_vm9, %v2325_v59, %v2357_v2 }
 0x551   : > { %v2360_v29 = vsub.bf16 0, %v2328_v8  ;;  %v2311_v53 = vmul.bf16 %v4905_v51, %v2215_v46  ;;  %v5416_v0 = vmul.bf16 1060454197, %v4797_v13  ;;  %v2218_v15 = vmul.bf16 %v2202_v23, %v4925_v56 }
 0x552   : > { %2572 = vmatmul.mubr.bf16.gmra.mxu1 %v2403_v16  ;;  %v2201_v9 = vadd.bf16 1048723074, %v2185_v22  ;;  %v2188_v24 = vmul.bf16 %v2172_v31, %v5022_v48  ;;  %v2389_v17 = vadd.bf16 1065369472, %v2373_v52  ;;  %v2155_v11 = vmul.bf16 %v2139_v5, %v4958_v26 }
 0x553   : > { %vm2344_vm10 = vcmp.ge.bf16.partialorder %v5416_v0, 0  ;;  %2579 = vmatprep.mubr.bf16.mxu1 %v2406_v7  ;;  %v2327_v18 = vsub.bf16 1065369472, %v2311_v53  ;;  %v1976_v27 = vmul.bf16 1056980736, %v4797_v13  ;;  %v2314_v21 = vmul.bf16 %v4941_v6, %v2218_v15 }
 0x554   : > { %v2376_v36 = vsel %vm2344_vm10, %v2328_v8, %v2360_v29  ;;  %v2217_v51 = vmul.bf16 %v2201_v9, %v4916_v34  ;;  %v2204_v60 = vadd.bf16 1048723074, %v2188_v24  ;;  %v2171_v42 = vadd.bf16 3197288082, %v2155_v11 }
 0x555   : > { %v2392_v25 = vadd.bf16 1065369472, %v2376_v36  ;;  %v2359_v30 = vsub.bf16 0, %v2327_v18  ;;  %v2330_v56 = vsub.bf16 1065369472, %v2314_v21  ;;  %v2405_v38 = vmul.bf16 %v2389_v17, %v1973_v14 }
 0x556   : > { %v2313_v61 = vmul.bf16 %v4929_v43, %v2217_v51  ;;  %v5417_v54 = vmul.bf16 1060454197, %v4789_v49  ;;  %v2220_v4 = vmul.bf16 %v2204_v60, %v5022_v48  ;;  %v2187_v13 = vmul.bf16 %v2171_v42, %v4958_v26 }
 0x557   : > { %v2408_v35 = vmul.bf16 %v2392_v25, %v1976_v27  ;;  %v2362_v32 = vsub.bf16 0, %v2330_v56  ;;  %v5418_v34 = vmul.bf16 1060454197, %v4824_v44  ;;  %v1978_v48 = vmul.bf16 1056980736, %v4824_v44 }
 0x558   : > { %vm2343_vm11 = vcmp.ge.bf16.partialorder %v5417_v54, 0  ;;  %v2329_v6 = vsub.bf16 1065369472, %v2313_v61  ;;  %v2316_v28 = vmul.bf16 %v5005_v10, %v2220_v4  ;;  %v2203_v39 = vadd.bf16 1048723074, %v2187_v13  ;;  %v5424_v61 = vld [vmem:[#allocation36_spill] sm:$0xff] }
 0x559   : > { %v2375_v3 = vsel %vm2343_vm11, %v2327_v18, %v2359_v30  ;;  %vm2346_vm12 = vcmp.ge.bf16.partialorder %v5418_v34, 0  ;;  %v1975_v33 = vmul.bf16 1056980736, %v4789_v49  ;;  %v5419_v37 = vmul.bf16 1060454197, %v4856_v12  ;;  %v5423_v30 = vld [vmem:[#allocation35_spill] sm:$0xff] }
 0x55a   : > { %2580 = vmatmul.mubr.bf16.gmra.mxu1 %v2405_v38  ;;  %v2378_v43 = vsel %vm2346_vm12, %v2330_v56, %v2362_v32  ;;  %v2391_v57 = vadd.bf16 1065369472, %v2375_v3  ;;  %v2332_v19 = vsub.bf16 1065369472, %v2316_v28  ;;  %v2219_v7 = vmul.bf16 %v2203_v39, %v4958_v26  ;;  %v5425_v3 = vld [vmem:[#allocation37_spill] sm:$0xff] }
 0x55b   : > { %2587 = vmatprep.mubr.bf16.mxu1 %v2408_v35  ;;  %v2394_v55 = vadd.bf16 1065369472, %v2378_v43  ;;  %v2361_v59 = vsub.bf16 0, %v2329_v6  ;;  %vm2348_vm13 = vcmp.ge.bf16.partialorder %v5419_v37, 0  ;;  %v5420_v58 = vmul.bf16 1060454197, %v4813_v62 }
 0x55c   : > { %v2364_v50 = vsub.bf16 0, %v2332_v19  ;;  %v2315_v47 = vmul.bf16 %v4953_v45, %v2219_v7  ;;  %v2407_v41 = vmul.bf16 %v2391_v57, %v1975_v33  ;;  %v1980_v49 = vmul.bf16 1056980736, %v4856_v12  ;;  %v5105_v12 = vld [vmem:[%s626_s24] ss:$0 sm:$0xff]  ;;  %s5437_s24 = sld [smem:[#allocation24_spill]] }
 0x55d   : > { %v2410_v10 = vmul.bf16 %v2394_v55, %v1978_v48  ;;  %vm2345_vm14 = vcmp.ge.bf16.partialorder %v5420_v58, 0  ;;  %v1977_v45 = vmul.bf16 1056980736, %v4813_v62  ;;  %v5421_v23 = vmul.bf16 1060454197, %v4844_v40  ;;  %v5426_v43 = vld [vmem:[#allocation38_spill] sm:$0xff] }
 0x55e   : > { %v2380_v1 = vsel %vm2348_vm13, %v2332_v19, %v2364_v50  ;;  %v2377_v16 = vsel %vm2345_vm14, %v2329_v6, %v2361_v59  ;;  %v2331_v2 = vsub.bf16 1065369472, %v2315_v47  ;;  %v1979_v14 = vmul.bf16 1056980736, %v4844_v40  ;;  %v5427_v59 = vld [vmem:[#allocation39_spill] sm:$0xff]  ;;  %v5428_v58 = vld [vmem:[#allocation40_spill] sm:$0xff] }
 0x55f   : > { %v2396_v44 = vadd.bf16 1065369472, %v2380_v1  ;;  %v2393_v26 = vadd.bf16 1065369472, %v2377_v16  ;;  %vm2347_vm15 = vcmp.ge.bf16.partialorder %v5421_v23, 0 }
 0x560   : > { %v2363_v8 = vsub.bf16 0, %v2331_v2 }
 0x561   : > { %v2412_v46 = vmul.bf16 %v2396_v44, %v1980_v49  ;;  %v2409_v22 = vmul.bf16 %v2393_v26, %v1977_v45  ;;  %v5429_v26 = vld [vmem:[#allocation41_spill] sm:$0xff] }
 0x562   : > { %2588 = vmatmul.mubr.bf16.gmra.mxu1 %v2407_v41  ;;  %v2379_v31 = vsel %vm2347_vm15, %v2331_v2, %v2363_v8  ;;  %p2999_p6 = scmp.ne.s32.totalorder %s5437_s24, 1 }
 0x563   : > { %2595 = vmatprep.mubr.bf16.mxu1 %v2410_v10  ;;  %v2395_v5 = vadd.bf16 1065369472, %v2379_v31 }
 0x565   : > { %v2411_v52 = vmul.bf16 %v2395_v5, %v1979_v14 }
 0x56a   : > { %2596 = vmatmul.mubr.bf16.gmra.mxu1 %v2409_v22  ;;  %v5430_v22 = vld [vmem:[#allocation42_spill] sm:$0xff] }
 0x56b   : > { %2603 = vmatprep.mubr.bf16.mxu1 %v2412_v46 }
 0x572   : > { %2604 = vmatmul.mubr.bf16.gmra.mxu1 %v2411_v52 }
 0x5f6   : > { %v3089_v29 = vpop.f32.mrf.mxu1 }
 0x5f8   : > { %v3090_v62 = vpop.f32.mrf.mxu1 }
 0x5f9   : > { %v3091_v53 = vadd.f32 %v3090_v62, %v3089_v29  ;;  %v5431_v62 = vld [vmem:[#allocation43_spill] sm:$0xff] }
 0x5fa   : > { %v3092_v0 = vpop.f32.mrf.mxu1 }
 0x5fb   : > { %v2550_v15 = vadd.f32 %v3091_v53, %v5105_v12 }
 0x5fc   : > { %v3093_v9 = vpop.f32.mrf.mxu1 }
 0x5fd   : > { %v2612_v24 = vadd.f32 %v2550_v15, %v4446_v20  ;;  %v3094_v17 = vadd.f32 %v3093_v9, %v3092_v0 }
 0x5fe   : > { %v3095_v36 = vpop.f32.mrf.mxu1 }
 0x5ff   : > { %2628 = vst [vmem:[#allocation2 + $0x30] sm:$0xff] %v2612_v24  ;;  %v2553_v40 = vadd.f32 %v3094_v17, %v5105_v12  ;;  %v5432_v17 = vld [vmem:[#allocation44_spill] sm:$0xff] }
 0x600   : > { %v3096_v18 = vpop.f32.mrf.mxu1 }
 0x601   : > { %v2613_v11 = vadd.f32 %v2553_v40, %v4449_v63  ;;  %v3097_v27 = vadd.f32 %v3096_v18, %v3095_v36 }
 0x602   : > { %v3098_v25 = vpop.f32.mrf.mxu1 }
 0x603   : > { %2629 = vst [vmem:[#allocation2] sm:$0xff] %v2613_v11  ;;  %v2558_v21 = vadd.f32 %v3097_v27, %v5105_v12 }
 0x604   : > { %v3099_v51 = vpop.f32.mrf.mxu1 }
 0x605   : > { %v2614_v60 = vadd.f32 %v2558_v21, %v5423_v30  ;;  %v3100_v42 = vadd.f32 %v3099_v51, %v3098_v25  ;;  %v5433_v25 = vld [vmem:[#allocation45_spill] sm:$0xff] }
 0x606   : > { %v3101_v35 = vpop.f32.mrf.mxu1 }
 0x607   : > { %2630 = vst [vmem:[#allocation2 + $0x58] sm:$0xff] %v2614_v60  ;;  %v2561_v20 = vadd.f32 %v3100_v42, %v5105_v12 }
 0x608   : > { %v3102_v56 = vpop.f32.mrf.mxu1 }
 0x609   : > { %v2615_v54 = vadd.f32 %v2561_v20, %v5424_v61  ;;  %v3103_v38 = vadd.f32 %v3102_v56, %v3101_v35  ;;  %v5434_v35 = vld [vmem:[#allocation46_spill] sm:$0xff] }
 0x60a   : > { %v3104_v4 = vpop.f32.mrf.mxu1 }
 0x60b   : > { %2631 = vst [vmem:[#allocation2 + $0x18] sm:$0xff] %v2615_v54  ;;  %v2566_v63 = vadd.f32 %v3103_v38, %v5105_v12 }
 0x60c   : > { %v3105_v13 = vpop.f32.mrf.mxu1 }
 0x60d   : > { %v2616_v32 = vadd.f32 %v2566_v63, %v5425_v3  ;;  %v3106_v6 = vadd.f32 %v3105_v13, %v3104_v4  ;;  %v5435_v4 = vld [vmem:[#allocation47_spill] sm:$0xff] }
 0x60f   : > { %2632 = vst [vmem:[#allocation2 + $0x50] sm:$0xff] %v2616_v32  ;;  %v2569_v28 = vadd.f32 %v3106_v6, %v5105_v12  ;;  %v5436_v32 = vld [vmem:[#allocation48_spill] sm:$0xff] }
 0x611   : > { %v2617_v57 = vadd.f32 %v2569_v28, %v5426_v43 }
 0x612   : > { %v3107_v34 = vpop.f32.mrf.mxu1 }
 0x613   : > { %2633 = vst [vmem:[#allocation2 + $0x68] sm:$0xff] %v2617_v57 }
 0x614   : > { %v3108_v39 = vpop.f32.mrf.mxu1 }
 0x615   : > { %v3109_v55 = vadd.f32 %v3108_v39, %v3107_v34 }
 0x616   : > { %v3110_v19 = vpop.f32.mrf.mxu1 }
 0x617   : > { %v2574_v7 = vadd.f32 %v3109_v55, %v5105_v12 }
 0x618   : > { %v3111_v48 = vpop.f32.mrf.mxu1 }
 0x619   : > { %v2618_v33 = vadd.f32 %v2574_v7, %v5427_v59  ;;  %v3112_v50 = vadd.f32 %v3111_v48, %v3110_v19 }
 0x61a   : > { %v3113_v47 = vpop.f32.mrf.mxu1 }
 0x61b   : > { %2634 = vst [vmem:[#allocation2 + $0x8] sm:$0xff] %v2618_v33  ;;  %v2577_v37 = vadd.f32 %v3112_v50, %v5105_v12 }
 0x61c   : > { %v3114_v10 = vpop.f32.mrf.mxu1 }
 0x61d   : > { %v2619_v41 = vadd.f32 %v2577_v37, %v5428_v58  ;;  %v3115_v1 = vadd.f32 %v3114_v10, %v3113_v47 }
 0x61e   : > { %v3116_v16 = vpop.f32.mrf.mxu1 }
 0x61f   : > { %2635 = vst [vmem:[#allocation2 + $0x48] sm:$0xff] %v2619_v41  ;;  %v2582_v2 = vadd.f32 %v3115_v1, %v5105_v12 }
 0x620   : > { %v3117_v44 = vpop.f32.mrf.mxu1 }
 0x621   : > { %v2620_v49 = vadd.f32 %v2582_v2, %v5429_v26  ;;  %v3118_v8 = vadd.f32 %v3117_v44, %v3116_v16 }
 0x622   : > { %v3119_v45 = vpop.f32.mrf.mxu1 }
 0x623   : > { %2636 = vst [vmem:[#allocation2 + $0x40] sm:$0xff] %v2620_v49  ;;  %v2585_v46 = vadd.f32 %v3118_v8, %v5105_v12 }
 0x624   : > { %v3120_v23 = vpop.f32.mrf.mxu1 }
 0x625   : > { %v2621_v31 = vadd.f32 %v2585_v46, %v5430_v22  ;;  %v3121_v5 = vadd.f32 %v3120_v23, %v3119_v45 }
 0x626   : > { %v3122_v14 = vpop.f32.mrf.mxu1 }
 0x627   : > { %2637 = vst [vmem:[#allocation2 + $0x20] sm:$0xff] %v2621_v31  ;;  %v2590_v52 = vadd.f32 %v3121_v5, %v5105_v12 }
 0x628   : > { %v3123_v29 = vpop.f32.mrf.mxu1 }
 0x629   : > { %v2622_v53 = vadd.f32 %v2590_v52, %v5431_v62  ;;  %v3124_v0 = vadd.f32 %v3123_v29, %v3122_v14 }
 0x62a   : > { %v3125_v15 = vpop.f32.mrf.mxu1 }
 0x62b   : > { %2638 = vst [vmem:[#allocation2 + $0x10] sm:$0xff] %v2622_v53  ;;  %v2593_v9 = vadd.f32 %v3124_v0, %v5105_v12 }
 0x62c   : > { %v3126_v24 = vpop.f32.mrf.mxu1 }
 0x62d   : > { %v2623_v36 = vadd.f32 %v2593_v9, %v5432_v17  ;;  %v3127_v40 = vadd.f32 %v3126_v24, %v3125_v15 }
 0x62e   : > { %v3128_v18 = vpop.f32.mrf.mxu1 }
 0x62f   : > { %2639 = vst [vmem:[#allocation2 + $0x38] sm:$0xff] %v2623_v36  ;;  %v2598_v11 = vadd.f32 %v3127_v40, %v5105_v12 }
 0x630   : > { %v3129_v27 = vpop.f32.mrf.mxu1 }
 0x631   : > { %v2624_v21 = vadd.f32 %v2598_v11, %v5433_v25  ;;  %v3130_v51 = vadd.f32 %v3129_v27, %v3128_v18 }
 0x632   : > { %v3131_v30 = vpop.f32.mrf.mxu1 }
 0x633   : > { %2640 = vst [vmem:[#allocation2 + $0x60] sm:$0xff] %v2624_v21  ;;  %v2601_v60 = vadd.f32 %v3130_v51, %v5105_v12 }
 0x634   : > { %v3132_v42 = vpop.f32.mrf.mxu1 }
 0x635   : > { %v2625_v20 = vadd.f32 %v2601_v60, %v5434_v35  ;;  %v3133_v56 = vadd.f32 %v3132_v42, %v3131_v30 }
 0x636   : > { %v3134_v61 = vpop.f32.mrf.mxu1 }
 0x637   : > { %2641 = vst [vmem:[#allocation2 + $0x70] sm:$0xff] %v2625_v20  ;;  %v2606_v54 = vadd.f32 %v3133_v56, %v5105_v12 }
 0x638   : > { %v3135_v38 = vpop.f32.mrf.mxu1 }
 0x639   : > { %v2626_v63 = vadd.f32 %v2606_v54, %v5435_v4  ;;  %v3136_v13 = vadd.f32 %v3135_v38, %v3134_v61 }
 0x63b   : > { %2642 = vst [vmem:[#allocation2 + $0x78] sm:$0xff] %v2626_v63  ;;  %v2609_v3 = vadd.f32 %v3136_v13, %v5105_v12  ;;  %2647 = sbr.rel (%p2999_p6) target bundleno = 1609 (0x649), region = 96 }
 0x63d   : > { %v2627_v6 = vadd.f32 %v2609_v3, %v5436_v32 }
 0x63f   : > { %2643 = vst [vmem:[#allocation2 + $0x28] sm:$0xff] %v2627_v6 }
 0x640   : > { %v2648_v34 = vld [vmem:[#allocation2 + $0x30] sm:$0xff]  ;;  %v2649_v28 = vld [vmem:[#allocation2] sm:$0xff]  ;;  %v2650_v39 = vld [vmem:[#allocation2 + $0x58] sm:$0xff] }
 0x641   : > { %2664 = vst [vmem:[%s4204_s22] sm:$0xff] %v2648_v34  ;;  %2665 = vst [vmem:[%s4204_s22 + $0x8] sm:$0xff] %v2649_v28  ;;  %v2651_v12 = vld [vmem:[#allocation2 + $0x18] sm:$0xff]  ;;  %v2652_v43 = vld [vmem:[#allocation2 + $0x50] sm:$0xff] }
 0x642   : > { %2666 = vst [vmem:[%s4204_s22 + $0x10] sm:$0xff] %v2650_v39  ;;  %v2653_v57 = vld [vmem:[#allocation2 + $0x68] sm:$0xff]  ;;  %2667 = vst [vmem:[%s4204_s22 + $0x18] sm:$0xff] %v2651_v12  ;;  %v2656_v7 = vld [vmem:[#allocation2 + $0x40] sm:$0xff] }
 0x643   : > { %2668 = vst [vmem:[%s4204_s22 + $0x20] sm:$0xff] %v2652_v43  ;;  %2669 = vst [vmem:[%s4204_s22 + $0x28] sm:$0xff] %v2653_v57  ;;  %v2654_v55 = vld [vmem:[#allocation2 + $0x8] sm:$0xff]  ;;  %v2657_v48 = vld [vmem:[#allocation2 + $0x20] sm:$0xff] }
 0x644   : > { %v2655_v19 = vld [vmem:[#allocation2 + $0x48] sm:$0xff]  ;;  %2670 = vst [vmem:[%s4204_s22 + $0x30] sm:$0xff] %v2654_v55  ;;  %2672 = vst [vmem:[%s4204_s22 + $0x40] sm:$0xff] %v2656_v7  ;;  %v2658_v59 = vld [vmem:[#allocation2 + $0x10] sm:$0xff] }
 0x645   : > { %2671 = vst [vmem:[%s4204_s22 + $0x38] sm:$0xff] %v2655_v19  ;;  %v2659_v33 = vld [vmem:[#allocation2 + $0x38] sm:$0xff]  ;;  %2673 = vst [vmem:[%s4204_s22 + $0x48] sm:$0xff] %v2657_v48  ;;  %v2660_v50 = vld [vmem:[#allocation2 + $0x60] sm:$0xff] }
 0x646   : > { %2674 = vst [vmem:[%s4204_s22 + $0x50] sm:$0xff] %v2658_v59  ;;  %2675 = vst [vmem:[%s4204_s22 + $0x58] sm:$0xff] %v2659_v33  ;;  %v2661_v47 = vld [vmem:[#allocation2 + $0x70] sm:$0xff]  ;;  %v2662_v37 = vld [vmem:[#allocation2 + $0x78] sm:$0xff] }
 0x647   : > { %2676 = vst [vmem:[%s4204_s22 + $0x60] sm:$0xff] %v2660_v50  ;;  %2677 = vst [vmem:[%s4204_s22 + $0x68] sm:$0xff] %v2661_v47  ;;  %v2663_v10 = vld [vmem:[#allocation2 + $0x28] sm:$0xff] }
 0x648   : > { %2678 = vst [vmem:[%s4204_s22 + $0x70] sm:$0xff] %v2662_v37  ;;  %2679 = vst [vmem:[%s4204_s22 + $0x78] sm:$0xff] %v2663_v10 }
 0x649 PF: > { %s5438_s28 = sld [smem:[#allocation25_spill]]  ;;  %s2694_s13 = sshll.u32 %s4204_s22, 4  ;;  %s5163_s13 = int_to_ptr.vmem [resolvable:$true] %s2694_s13 }
 0x64a   : > { %s5440_s1 = sld [smem:[#allocation60_spill]]  ;;  %s5441_s11 = sand.u32 1, %s3786_s21  }
 0x64b   : > { %s5167_s2 = scalar_lea.sflag [#allocation5], %s5441_s11  ;;  %s3670_s20 = scalar_lea.vmem %s5163_s13, 2048 }
 0x64c   : > { %p3671_p5 = scmp.ne.s32.totalorder %s5163_s13, %s3670_s20  ;;  %s3823_s3 = smov [#allocation13]  }
 0x64d   : > { %s3674_s30 = sshll.u32 %s3823_s3, 4  ;;  %s3675_s30 = int_to_ptr.vmem [resolvable:$false] %s3674_s30 }
 0x64e   : > { %p3672_p2 = pnand %p3671_p5, %p3994_p0  ;;  %s3676_s4 = scalar_lea.vmem %s3675_s30, 4096 }
 0x64f   : > { %s3008_s5 = sshll.u32 %s5438_s28, 11  ;;  %p3677_p12 = scmp.lt.s32.totalorder %s5163_s13, %s3675_s30 }
 0x650   : > { %s5160_s26 = scalar_lea.hbm %s5440_s1, %s3008_s5  ;;  %p3673_p13 = pneg %p3672_p2 }
 0x651   : > { %p3678_p7 = scmp.lt.s32.totalorder %s3676_s4, %s3670_s20 }
 0x653   : > { %p3679_p1 = por %p3678_p7, %p3677_p12 }
 0x655   : > { %p3680_p8 = pnand %p3679_p1, %p3673_p13 }
 0x657   : > { %3683 = shalt.err (!%p3680_p8)
}
 0x658   : > { %s3684_s22 = scalar_lea.hbm %s5160_s26, 2048  ;;  %s3688_s10 = scalar_lea.hbm %s5440_s1, 4096 }
 0x659   : > { %p3685_p9 = scmp.ne.s32.totalorder %s5160_s26, %s3684_s22  ;;  %p3689_p10 = scmp.lt.s32.totalorder %s5160_s26, %s5440_s1 }
 0x65a   : > { %p3690_p3 = scmp.lt.s32.totalorder %s3688_s10, %s3684_s22 }
 0x65b   : > { %p3686_p11 = pnand %p3685_p9, %p3994_p0 }
 0x65c   : > { %p3691_p6 = por %p3690_p3, %p3689_p10 }
 0x65d   : > { %p3687_p4 = pneg %p3686_p11 }
 0x65f   : > { %p3692_p5 = pnand %p3691_p6, %p3687_p4 }
 0x661   : > { %3695 = shalt.err (!%p3692_p5)
}
 0x662   : > { %s3824_s16 = smov 128   ;;  %s3825_s0 = smov 8  }
 0x663   : > { %3153 = dma.vmem_to_hbm [thread:$0]  (%p3994_p0), %s5163_s13, 2048, %s5160_s26, %s5167_s2, %s3824_s16, %s3824_s16, %s3825_s0  }
 0x664 PF: > { %s5442_s18 = sld [smem:[#allocation22_spill]]  ;;  %p3184_p2 = scmp.ge.s32.totalorder %s3810_s27, 2 }
 0x665   : > { %s5443_s9 = sld [smem:[#allocation29_spill]] }
 0x66a   : > { %s2709_s29 = sand.u32 1, %s5442_s18  }
 0x66b   : > { %p5444_p13 = scmp.ne.s32.totalorder %s5443_s9, 0  ;;  %s2710_s15 = scalar_lea.sflag [#allocation5], %s2709_s29 }
 0x66d   : > { %p3176_p12 = pnand %p3184_p2, %p5444_p13 }
 0x66f   : > { %p3177_p7 = pneg %p3176_p12 }
 0x671   : > { %3765 = dma.done.wait (%p3177_p7), %s2710_s15, 2048  }
 0x672   : > { %3767 = vsyncadd (%p3177_p7), %s2710_s15, 4294965248  ;;  %s31_s27 = sadd.s32 1, %s3810_s27   ;;  %s5445_s24 = sld [smem:[#allocation21_spill]] }
 0x673   : > { %p28_p1 = scmp.ge.s32.totalorder %s31_s27, 6   ;;  %s5446_s28 = smov %s4052_s17 }
 0x674   : > { %s5447_s14 = sld [smem:[#allocation23_spill]]  ;;  %s5454_s18 = smov %s3778_s19 }
 0x675   : > { %s5448_s22 = sld [smem:[#allocation34_spill]]  ;;  %s5455_s19 = smov %s5446_s28 }
 0x676   : > { %s5449_s23 = sld [smem:[#allocation26_spill]]  ;;  %s5456_s20 = smov %s3786_s21 }
 0x677   : > { %s5450_s5 = sld [smem:[#allocation27_spill]] }
 0x678   : > { %s5451_s25 = sld [smem:[#allocation31_spill]]  ;;  %s5453_s17 = smov %s5445_s24 }
 0x679   : > { %s5452_s26 = sld [smem:[#allocation33_spill]]  ;;  %30 = sbr.rel (!%p28_p1) target bundleno = 25 (0x19), region = 175 }
 0x67a   : > { %s5457_s21 = smov %s5447_s14 }
 0x67d   : > { %s5458_s24 = smov %s5450_s5 }
 0x67e   :  { %2715 = vsyncpa [#allocation4], 1 }
 0x67f   :  { %2717 = vsyncpa [#allocation4 + $0x1], 1 }
 0x680   :  { %2718 = vsyncpa [#allocation7], 1 }
 0x681   :  { %2720 = vsyncpa [#allocation7 + $0x1], 1 }
 0x682   :  { %2721 = vsyncpa [#allocation10], 1 }
 0x683   :  { %2722 = vsyncpa [#allocation5], 1 }
 0x684   :  { %2724 = vsyncpa [#allocation5 + $0x1], 1 }

</bundles_post_ra>
